<compile_context>
chip_gen: v7x
topology: tpu7x:2x2x1
jax: 0.10.0
libtpu: 0.0.40
codegen_flags: <defaults>
</compile_context>

<pallas_src>
import functools
import math

import numpy as np
import jax
import jax.numpy as jnp
from jax import lax
from jax.experimental import pallas as pl
from jax.experimental.pallas import tpu as pltpu

BN_EPS = 1e-5
F32 = jnp.float32
BF16 = jnp.bfloat16


# ------------------------------- Pallas kernel ---------------------------------
def _fused_block_kernel(*refs, heads, dim_head, do_pool):
    if do_pool:
        (x_ref, w1_ref, b1_ref, wqkv_ref, embT_ref, pool_ref,
         s_mid_ref, b_mid_ref, w2_ref, b_fin_ref, sc_ref, o_ref) = refs
    else:
        (x_ref, w1_ref, b1_ref, wqkv_ref, embT_ref,
         s_mid_ref, b_mid_ref, w2_ref, b_fin_ref, sc_ref, o_ref) = refs
        pool_ref = None

    n = x_ref.shape[-1]
    inner = heads * dim_head

    # 1x1 conv + folded eval-mode BatchNorm + ReLU (bf16 MXU operands, f32 accumulate)
    x = x_ref[...].astype(BF16)                                       # (C_in, N)
    t = jnp.dot(w1_ref[...], x, preferred_element_type=F32) + b1_ref[...]
    t = jnp.maximum(t, 0.0)                                           # (C_attn, N) f32

    # to_qkv 1x1 conv (q rows pre-scaled by dim_head**-0.5 in the prepare step)
    qkv = jnp.dot(wqkv_ref[...], t.astype(BF16), preferred_element_type=F32)
    q = qkv[:inner].reshape(heads, dim_head, n)
    k = qkv[inner:2 * inner].reshape(heads, dim_head, n)
    v = qkv[2 * inner:].reshape(heads, dim_head, n)

    # AbsPosEmb folded into k:  q·kT + q·embT == q·(k + emb)T
    kmod = (k + embT_ref[...][None, :, :]).astype(BF16)               # (H, Dh, N)

    # sim[h,i,j] = sum_d q[h,d,i] * kmod[h,d,j]  — batched MXU matmul, no explicit
    # transposes materialised.
    sim = lax.dot_general(q.astype(BF16), kmod,
                          dimension_numbers=(((1,), (1,)), ((0,), (0,))),
                          preferred_element_type=F32)                 # (H, N, N)

    # softmax (elementwise kept in f32; v5e has no bf16 VPU/EUP) with DEFERRED
    # normalisation: e is fed unnormalised into attn·v and the result is scaled.
    m = jnp.max(sim, axis=-1, keepdims=True)
    e = jnp.exp(sim - m)                                              # (H, N, N) f32
    inv = pl.reciprocal(jnp.sum(e, axis=-1), approx=True)             # (H, N)

    # out[h,d,i] = sum_j v[h,d,j] * e[h,i,j]  — batched MXU matmul
    out = lax.dot_general(v.astype(BF16), e.astype(BF16),
                          dimension_numbers=(((2,), (2,)), ((0,), (0,))),
                          preferred_element_type=F32)                 # (H, Dh, N)
    out = out * inv[:, None, :]                                       # deferred softmax norm

    # lane-dense (inner, N) slab: channel (h*Dh + d) on sublanes, spatial on lanes
    z = out.reshape(inner, n)

    # fused 2x2 AvgPool as one MXU matmul with a constant (N, N/4) pooling matrix
    if do_pool:
        z = jnp.dot(z.astype(BF16), pool_ref[...], preferred_element_type=F32)

    # BN_mid + ReLU, 1x1 conv2 + folded BN_fin, residual add, final ReLU
    z = jnp.maximum(z * s_mid_ref[...] + b_mid_ref[...], 0.0)
    y = jnp.dot(w2_ref[...], z.astype(BF16), preferred_element_type=F32) + b_fin_ref[...]
    o_ref[...] = jnp.maximum(y + sc_ref[...], 0.0)


# ------------------------------- pallas wrapper ---------------------------------
def _fused_block(x_flat, sc, fp):
    B, c_in, n = x_flat.shape
    heads, dh = fp["heads"], fp["dim_head"]
    inner = heads * dh
    c_attn = fp["w1f"].shape[0]
    c_out = fp["w2f"].shape[0]
    cols = sc.shape[-1]
    do_pool = fp["downsample"]

    kernel = functools.partial(_fused_block_kernel, heads=heads, dim_head=dh,
                               do_pool=do_pool)

    args = [x_flat, fp["w1f"], fp["b1f"], fp["wqkv"], fp["embT"]]
    in_specs = [
        pl.BlockSpec((pl.Squeezed(), c_in, n), lambda b: (b, 0, 0)),   # x row (per batch)
        pl.BlockSpec((c_attn, c_in), lambda b: (0, 0)),                # folded conv1 W
        pl.BlockSpec((c_attn, 1), lambda b: (0, 0)),                   # folded conv1 b
        pl.BlockSpec((3 * inner, c_attn), lambda b: (0, 0)),           # to_qkv W (q scaled)
        pl.BlockSpec((dh, n), lambda b: (0, 0)),                       # abs-pos emb (Dh, N)
    ]
    if do_pool:
        args.append(fp["pool"])
        in_specs.append(pl.BlockSpec((n, cols), lambda b: (0, 0)))     # pooling matrix
    args += [fp["s_mid"], fp["b_mid"], fp["w2f"], fp["b_fin"], sc]
    in_specs += [
        pl.BlockSpec((inner, 1), lambda b: (0, 0)),                    # BN_mid scale
        pl.BlockSpec((inner, 1), lambda b: (0, 0)),                    # BN_mid shift
        pl.BlockSpec((c_out, inner), lambda b: (0, 0)),                # folded conv2 W
        pl.BlockSpec((c_out, 1), lambda b: (0, 0)),                    # folded conv2 b
        pl.BlockSpec((pl.Squeezed(), c_out, cols), lambda b: (b, 0, 0)),  # shortcut slab
    ]

    flops = 2 * B * (c_attn * c_in * n + 3 * inner * c_attn * n
                     + 2 * heads * n * n * dh
                     + (inner * n * cols if do_pool else 0)
                     + c_out * inner * cols)
    transcendentals = B * heads * n * n
    bytes_accessed = int(sum(a.size * a.dtype.itemsize for a in args)
                         + B * c_out * cols * 4)

    return pl.pallas_call(
        kernel,
        out_shape=jax.ShapeDtypeStruct((B, c_out, cols), F32),
        grid=(B,),
        in_specs=in_specs,
        out_specs=pl.BlockSpec((pl.Squeezed(), c_out, cols), lambda b: (b, 0, 0)),
        compiler_params=pltpu.CompilerParams(
            dimension_semantics=("parallel",),          # both TCs on v7x megacore
            vmem_limit_bytes=32 * 1024 * 1024),         # explicit guard for O(N^2) buffers
        cost_estimate=pl.CostEstimate(flops=int(flops),
                                      transcendentals=int(transcendentals),
                                      bytes_accessed=bytes_accessed),
    )(*args)


# -------------------- one-time parameter folding (off hot path) -----------------
def prepare_block_params(lp):
    eps = BN_EPS
    heads, dh = lp["heads"], lp["dim_head"]
    inner = heads * dh
    hf, wf = lp["pos_h"].shape[0], lp["pos_w"].shape[0]
    n = hf * wf

    fp = dict(heads=heads, dim_head=dh, downsample=lp["downsample"])

    # conv1 + BN1 fold (eval mode)
    s1 = lp["bn1_gamma"] / jnp.sqrt(lp["bn1_var"] + eps)
    fp["w1f"] = (lp["conv1_w"] * s1[:, None]).astype(BF16)
    fp["b1f"] = (lp["bn1_beta"] - lp["bn1_mean"] * s1)[:, None]

    # to_qkv with q rows pre-scaled by dim_head**-0.5
    fp["wqkv"] = lp["qkv_w"].at[:inner].multiply(dh ** -0.5).astype(BF16)

    # AbsPosEmb table as (Dh, N)
    emb = (lp["pos_h"][:, None, :] + lp["pos_w"][None, :, :]).reshape(n, dh)
    fp["embT"] = emb.T

    # constant pooling matrix for the in-kernel 2x2 AvgPool
    if lp["downsample"]:
        hp, wp = hf // 2, wf // 2
        idx = np.arange(n)
        tgt = ((idx // wf) // 2) * wp + (idx % wf) // 2
        P = np.zeros((n, hp * wp), np.float32)
        P[idx, tgt] = 0.25
        fp["pool"] = jnp.asarray(P, dtype=BF16)
    else:
        hp, wp = hf, wf
        fp["pool"] = None
    fp["out_fmap"] = (hp, wp)

    # BN_mid scale/shift and conv2 + BN_fin fold
    s_mid = lp["bn_mid_gamma"] / jnp.sqrt(lp["bn_mid_var"] + eps)
    fp["s_mid"] = s_mid[:, None]
    fp["b_mid"] = (lp["bn_mid_beta"] - lp["bn_mid_mean"] * s_mid)[:, None]
    s_fin = lp["bn_fin_gamma"] / jnp.sqrt(lp["bn_fin_var"] + eps)
    fp["w2f"] = (lp["conv2_w"] * s_fin[:, None]).astype(BF16)
    fp["b_fin"] = (lp["bn_fin_beta"] - lp["bn_fin_mean"] * s_fin)[:, None]

    # shortcut branch: fold BN into the conv weight / bias
    if lp["shortcut"] is not None:
        sp = lp["shortcut"]
        sc_scale = sp["bn_gamma"] / jnp.sqrt(sp["bn_var"] + eps)
        fp["sc_w"] = sp["conv_w"] * sc_scale[:, None, None, None]
        fp["sc_b"] = sp["bn_beta"] - sp["bn_mean"] * sc_scale
        fp["sc_stride"] = sp["stride"]
        fp["sc_pad"] = sp["padding"]
    else:
        fp["sc_w"] = None
    return fp


def prepare_bottle_stack(layers):
    return [prepare_block_params(lp) for lp in layers]


# ------------------------------ block / stack ----------------------------------
def bottle_block_forward(x, fp):
    B, C, hf, wf = x.shape
    c_out = fp["w2f"].shape[0]
    hp, wp = fp["out_fmap"]
    cols = hp * wp

    # shortcut branch (3x3 stride-2 spatial conv stays in XLA; BN already folded)
    if fp["sc_w"] is not None:
        s = lax.conv_general_dilated(x, fp["sc_w"], window_strides=fp["sc_stride"],
                                     padding=fp["sc_pad"],
                                     dimension_numbers=("NCHW", "OIHW", "NCHW"))
        s = s + fp["sc_b"][None, :, None, None]
    else:
        s = x
    sc = s.reshape(B, c_out, cols)

    x_flat = x.reshape(B, C, hf * wf)
    y = _fused_block(x_flat, sc, fp)                  # (B, c_out, cols)
    return y.reshape(B, c_out, hp, wp)


def bottle_stack_forward(x, folded_layers):
    for fp in folded_layers:
        x = bottle_block_forward(x, fp)
    return x


# --------------------------- pure-JAX reference -------------------------------
def _bn_eval(x, gamma, beta, mean, var, axis=1):
    shp = [1] * x.ndim
    shp[axis] = -1
    return ((x - mean.reshape(shp)) / jnp.sqrt(var.reshape(shp) + BN_EPS)
            * gamma.reshape(shp) + beta.reshape(shp))


def bottle_block_reference(x, lp):
    B, C, hf, wf = x.shape
    heads, dh = lp["heads"], lp["dim_head"]
    inner = heads * dh
    n = hf * wf

    if lp["shortcut"] is not None:
        sp = lp["shortcut"]
        s = lax.conv_general_dilated(x, sp["conv_w"], window_strides=sp["stride"],
                                     padding=sp["padding"],
                                     dimension_numbers=("NCHW", "OIHW", "NCHW"))
        s = _bn_eval(s, sp["bn_gamma"], sp["bn_beta"], sp["bn_mean"], sp["bn_var"])
    else:
        s = x

    t = jnp.einsum("oc,bchw->bohw", lp["conv1_w"], x)
    t = jax.nn.relu(_bn_eval(t, lp["bn1_gamma"], lp["bn1_beta"], lp["bn1_mean"], lp["bn1_var"]))

    qkv = jnp.einsum("oc,bchw->bohw", lp["qkv_w"], t)
    q, k, v = qkv[:, :inner], qkv[:, inner:2 * inner], qkv[:, 2 * inner:]
    to_bhnd = lambda z: z.reshape(B, heads, dh, n).transpose(0, 1, 3, 2)
    q, k, v = map(to_bhnd, (q, k, v))
    q = q * (dh ** -0.5)
    sim = jnp.einsum("bhid,bhjd->bhij", q, k)
    emb = (lp["pos_h"][:, None, :] + lp["pos_w"][None, :, :]).reshape(n, dh)
    sim = sim + jnp.einsum("bhid,jd->bhij", q, emb)
    attn = jax.nn.softmax(sim, axis=-1)
    out = jnp.einsum("bhij,bhjd->bhid", attn, v)
    out = out.transpose(0, 1, 3, 2).reshape(B, inner, hf, wf)

    if lp["downsample"]:
        out = out.reshape(B, inner, hf // 2, 2, wf // 2, 2).mean(axis=(3, 5))

    out = jax.nn.relu(_bn_eval(out, lp["bn_mid_gamma"], lp["bn_mid_beta"],
                               lp["bn_mid_mean"], lp["bn_mid_var"]))
    out = jnp.einsum("oc,bchw->bohw", lp["conv2_w"], out)
    out = _bn_eval(out, lp["bn_fin_gamma"], lp["bn_fin_beta"],
                   lp["bn_fin_mean"], lp["bn_fin_var"])
    return jax.nn.relu(out + s)


def bottle_stack_reference(x, layers):
    for lp in layers:
        x = bottle_block_reference(x, lp)
    return x


# --------------------------------- main ----------------------------------------
if __name__ == "__main__":
    B, dim, fmap = 2, 32, 16
    dim_out, proj_factor, num_layers = 64, 4, 2
    heads, dim_head, downsample = 4, 16, True
    f32 = jnp.float32

    def make_bn(k, c):
        k1, k2, k3, k4 = jax.random.split(k, 4)
        return dict(gamma=1.0 + 0.1 * jax.random.normal(k1, (c,), f32),
                    beta=0.1 * jax.random.normal(k2, (c,), f32),
                    mean=0.1 * jax.random.normal(k3, (c,), f32),
                    var=1.0 + 0.1 * jnp.abs(jax.random.normal(k4, (c,), f32)))

    def make_block_params(key, dim_in, d_out, fmap_size, layer_downsample):
        attn_dim_in = d_out // proj_factor
        inner = heads * dim_head
        hf, wf = fmap_size
        ks = jax.random.split(key, 10)
        p = dict(
            heads=heads, dim_head=dim_head, downsample=layer_downsample,
            conv1_w=jax.random.normal(ks[0], (attn_dim_in, dim_in), f32) / math.sqrt(dim_in),
            qkv_w=jax.random.normal(ks[1], (3 * inner, attn_dim_in), f32) / math.sqrt(attn_dim_in),
            pos_h=jax.random.normal(ks[2], (hf, dim_head), f32) * dim_head ** -0.5,
            pos_w=jax.random.normal(ks[3], (wf, dim_head), f32) * dim_head ** -0.5,
            conv2_w=jax.random.normal(ks[4], (d_out, inner), f32) / math.sqrt(inner),
        )
        for name, kk, c in (("bn1", ks[5], attn_dim_in), ("bn_mid", ks[6], inner),
                            ("bn_fin", ks[7], d_out)):
            p.update({f"{name}_{kname}": v for kname, v in make_bn(kk, c).items()})
        if layer_downsample or dim_in != d_out:
            ksz, stride, pad = (3, 2, 1) if layer_downsample else (1, 1, 0)
            sbn = make_bn(ks[8], d_out)
            p["shortcut"] = dict(
                conv_w=jax.random.normal(ks[9], (d_out, dim_in, ksz, ksz), f32)
                / math.sqrt(dim_in * ksz * ksz),
                stride=(stride, stride), padding=((pad, pad), (pad, pad)),
                bn_gamma=sbn["gamma"], bn_beta=sbn["beta"],
                bn_mean=sbn["mean"], bn_var=sbn["var"])
        else:
            p["shortcut"] = None
        return p

    key = jax.random.PRNGKey(0)
    keys = jax.random.split(key, num_layers + 1)
    layers = []
    for i in range(num_layers):
        is_first = i == 0
        dim_in = dim if is_first else dim_out
        layer_downsample = is_first and downsample
        fdiv = 2 if downsample and not is_first else 1
        layers.append(make_block_params(keys[i], dim_in, dim_out,
                                        (fmap // fdiv, fmap // fdiv), layer_downsample))

    x = jax.random.normal(keys[-1], (B, dim, fmap, fmap), f32)

    folded = prepare_bottle_stack(layers)             # one-time fold, off the hot path
    y = jax.block_until_ready(bottle_stack_forward(x, folded))
    y_ref = jax.block_until_ready(bottle_stack_reference(x, layers))

    assert y.shape == (B, dim_out, fmap // 2, fmap // 2), y.shape
    # bf16 MXU operands (f32 accumulation) + approx-reciprocal softmax vs a pure-f32
    # XLA reference across two stacked blocks -> slightly looser tolerance than f32.
    np.testing.assert_allclose(np.asarray(y), np.asarray(y_ref), atol=5e-2, rtol=5e-2)
    print("KERNEL_OK")
</pallas_src>

<mosaic_0001>
module attributes {stable_mosaic.version = 11 : i64} {
  func.func @_fused_block_kernel(%arg0: i32, %arg1: memref<1x32x256xf32, #tpu.memory_space<vmem>>, %arg2: memref<16x32xbf16, #tpu.memory_space<vmem>>, %arg3: memref<16x1xf32, #tpu.memory_space<vmem>>, %arg4: memref<192x16xbf16, #tpu.memory_space<vmem>>, %arg5: memref<16x256xf32, #tpu.memory_space<vmem>>, %arg6: memref<256x64xbf16, #tpu.memory_space<vmem>>, %arg7: memref<64x1xf32, #tpu.memory_space<vmem>>, %arg8: memref<64x1xf32, #tpu.memory_space<vmem>>, %arg9: memref<64x64xbf16, #tpu.memory_space<vmem>>, %arg10: memref<64x1xf32, #tpu.memory_space<vmem>>, %arg11: memref<1x64x64xf32, #tpu.memory_space<vmem>>, %arg12: memref<1x64x64xf32, #tpu.memory_space<vmem>>) attributes {dimension_semantics = [#tpu.dimension_semantics<parallel>], iteration_bounds = array<i64: 2>, scalar_prefetch = 0 : i64, scratch_operands = 0 : i64, tpu.core_type = #tpu.core_type<tc>, window_params = [{transform_indices = @transform_0, window_bounds = array<i64: 1, 32, 256>}, {pipeline_mode = #tpu.pipeline_mode<synchronous>, transform_indices = @transform_1, window_bounds = array<i64: 16, 32>}, {pipeline_mode = #tpu.pipeline_mode<synchronous>, transform_indices = @transform_2, window_bounds = array<i64: 16, 1>}, {pipeline_mode = #tpu.pipeline_mode<synchronous>, transform_indices = @transform_3, window_bounds = array<i64: 192, 16>}, {pipeline_mode = #tpu.pipeline_mode<synchronous>, transform_indices = @transform_4, window_bounds = array<i64: 16, 256>}, {pipeline_mode = #tpu.pipeline_mode<synchronous>, transform_indices = @transform_5, window_bounds = array<i64: 256, 64>}, {pipeline_mode = #tpu.pipeline_mode<synchronous>, transform_indices = @transform_6, window_bounds = array<i64: 64, 1>}, {pipeline_mode = #tpu.pipeline_mode<synchronous>, transform_indices = @transform_7, window_bounds = array<i64: 64, 1>}, {pipeline_mode = #tpu.pipeline_mode<synchronous>, transform_indices = @transform_8, window_bounds = array<i64: 64, 64>}, {pipeline_mode = #tpu.pipeline_mode<synchronous>, transform_indices = @transform_9, window_bounds = array<i64: 64, 1>}, {transform_indices = @transform_10, window_bounds = array<i64: 1, 64, 64>}, {transform_indices = @transform_11, window_bounds = array<i64: 1, 64, 64>}]} {
    %c0 = arith.constant 0 : index
    %c0_0 = arith.constant 0 : index
    %c0_1 = arith.constant 0 : index
    %0 = vector.load %arg1[%c0, %c0_0, %c0_1] : memref<1x32x256xf32, #tpu.memory_space<vmem>>, vector<1x32x256xf32>
    %1 = vector.shape_cast %0 : vector<1x32x256xf32> to vector<32x256xf32>
    %2 = arith.truncf %1 : vector<32x256xf32> to vector<32x256xbf16>
    %c0_2 = arith.constant 0 : index
    %c0_3 = arith.constant 0 : index
    %3 = vector.load %arg2[%c0_2, %c0_3] : memref<16x32xbf16, #tpu.memory_space<vmem>>, vector<16x32xbf16>
    %cst = arith.constant dense<0.000000e+00> : vector<16x256xf32>
    %4 = tpu.matmul %3, %2, %cst {dimension_numbers = #tpu.dot_dimension_numbers<[1], [0], [0], [1], [0, 0, 1, 1], [], []>} : vector<16x32xbf16>, vector<32x256xbf16>, vector<16x256xf32> -> vector<16x256xf32>
    %c0_4 = arith.constant 0 : index
    %c0_5 = arith.constant 0 : index
    %5 = vector.load %arg3[%c0_4, %c0_5] : memref<16x1xf32, #tpu.memory_space<vmem>>, vector<16x1xf32>
    %6 = vector.broadcast %5 : vector<16x1xf32> to vector<16x256xf32>
    %7 = arith.addf %4, %6 : vector<16x256xf32>
    %cst_6 = arith.constant 0.000000e+00 : f32
    %8 = vector.broadcast %cst_6 : f32 to vector<16x256xf32>
    %9 = arith.maximumf %7, %8 : vector<16x256xf32>
    %c0_7 = arith.constant 0 : index
    %c0_8 = arith.constant 0 : index
    %10 = vector.load %arg4[%c0_7, %c0_8] : memref<192x16xbf16, #tpu.memory_space<vmem>>, vector<192x16xbf16>
    %11 = arith.truncf %9 : vector<16x256xf32> to vector<16x256xbf16>
    %cst_9 = arith.constant dense<0.000000e+00> : vector<192x256xf32>
    %12 = tpu.matmul %10, %11, %cst_9 {dimension_numbers = #tpu.dot_dimension_numbers<[1], [0], [0], [1], [0, 0, 1, 1], [], []>} : vector<192x16xbf16>, vector<16x256xbf16>, vector<192x256xf32> -> vector<192x256xf32>
    %13 = vector.extract_strided_slice %12 {offsets = [0, 0], sizes = [64, 256], strides = [1, 1]} : vector<192x256xf32> to vector<64x256xf32>
    %14 = vector.shape_cast %13 : vector<64x256xf32> to vector<4x16x256xf32>
    %15 = vector.extract_strided_slice %12 {offsets = [64, 0], sizes = [64, 256], strides = [1, 1]} : vector<192x256xf32> to vector<64x256xf32>
    %16 = vector.shape_cast %15 : vector<64x256xf32> to vector<4x16x256xf32>
    %17 = vector.extract_strided_slice %12 {offsets = [128, 0], sizes = [64, 256], strides = [1, 1]} : vector<192x256xf32> to vector<64x256xf32>
    %18 = vector.shape_cast %17 : vector<64x256xf32> to vector<4x16x256xf32>
    %c0_10 = arith.constant 0 : index
    %c0_11 = arith.constant 0 : index
    %19 = vector.load %arg5[%c0_10, %c0_11] : memref<16x256xf32, #tpu.memory_space<vmem>>, vector<16x256xf32>
    %20 = vector.shape_cast %19 : vector<16x256xf32> to vector<1x16x256xf32>
    %21 = vector.broadcast %20 : vector<1x16x256xf32> to vector<4x16x256xf32>
    %22 = arith.addf %16, %21 : vector<4x16x256xf32>
    %23 = arith.truncf %22 : vector<4x16x256xf32> to vector<4x16x256xbf16>
    %24 = arith.truncf %14 : vector<4x16x256xf32> to vector<4x16x256xbf16>
    %cst_12 = arith.constant dense<0.000000e+00> : vector<4x256x256xf32>
    %25 = tpu.matmul %24, %23, %cst_12 {dimension_numbers = #tpu.dot_dimension_numbers<[1], [1], [2], [2], [0, 0, 0, 2, 1, 2], [0], [0]>} : vector<4x16x256xbf16>, vector<4x16x256xbf16>, vector<4x256x256xf32> -> vector<4x256x256xf32>
    %cst_13 = arith.constant dense<0xFF800000> : vector<4x256xf32>
    %26 = vector.multi_reduction <maximumf>, %25, %cst_13 [2] : vector<4x256x256xf32> to vector<4x256xf32>
    %27 = vector.shape_cast %26 : vector<4x256xf32> to vector<4x256x1xf32>
    %28 = vector.broadcast %27 : vector<4x256x1xf32> to vector<4x256x256xf32>
    %29 = arith.subf %25, %28 : vector<4x256x256xf32>
    %30 = math.exp %29 : vector<4x256x256xf32>
    %cst_14 = arith.constant dense<0.000000e+00> : vector<4x256xf32>
    %31 = vector.multi_reduction <add>, %30, %cst_14 [2] : vector<4x256x256xf32> to vector<4x256xf32>
    %32 = tpu.reciprocal %31 {approx = true} : vector<4x256xf32> -> vector<4x256xf32>
    %33 = arith.truncf %18 : vector<4x16x256xf32> to vector<4x16x256xbf16>
    %34 = arith.truncf %30 : vector<4x256x256xf32> to vector<4x256x256xbf16>
    %cst_15 = arith.constant dense<0.000000e+00> : vector<4x16x256xf32>
    %35 = tpu.matmul %33, %34, %cst_15 {dimension_numbers = #tpu.dot_dimension_numbers<[2], [2], [1], [1], [0, 0, 0, 1, 1, 1], [0], [0]>} : vector<4x16x256xbf16>, vector<4x256x256xbf16>, vector<4x16x256xf32> -> vector<4x16x256xf32>
    %36 = vector.shape_cast %32 : vector<4x256xf32> to vector<4x1x256xf32>
    %37 = vector.broadcast %36 : vector<4x1x256xf32> to vector<4x16x256xf32>
    %38 = arith.mulf %35, %37 : vector<4x16x256xf32>
    %39 = vector.shape_cast %38 : vector<4x16x256xf32> to vector<64x256xf32>
    %40 = arith.truncf %39 : vector<64x256xf32> to vector<64x256xbf16>
    %c0_16 = arith.constant 0 : index
    %c0_17 = arith.constant 0 : index
    %41 = vector.load %arg6[%c0_16, %c0_17] : memref<256x64xbf16, #tpu.memory_space<vmem>>, vector<256x64xbf16>
    %cst_18 = arith.constant dense<0.000000e+00> : vector<64x64xf32>
    %42 = tpu.matmul %40, %41, %cst_18 {dimension_numbers = #tpu.dot_dimension_numbers<[1], [0], [0], [1], [0, 0, 1, 1], [], []>} : vector<64x256xbf16>, vector<256x64xbf16>, vector<64x64xf32> -> vector<64x64xf32>
    %c0_19 = arith.constant 0 : index
    %c0_20 = arith.constant 0 : index
    %43 = vector.load %arg7[%c0_19, %c0_20] : memref<64x1xf32, #tpu.memory_space<vmem>>, vector<64x1xf32>
    %44 = vector.broadcast %43 : vector<64x1xf32> to vector<64x64xf32>
    %45 = arith.mulf %42, %44 : vector<64x64xf32>
    %c0_21 = arith.constant 0 : index
    %c0_22 = arith.constant 0 : index
    %46 = vector.load %arg8[%c0_21, %c0_22] : memref<64x1xf32, #tpu.memory_space<vmem>>, vector<64x1xf32>
    %47 = vector.broadcast %46 : vector<64x1xf32> to vector<64x64xf32>
    %48 = arith.addf %45, %47 : vector<64x64xf32>
    %cst_23 = arith.constant 0.000000e+00 : f32
    %49 = vector.broadcast %cst_23 : f32 to vector<64x64xf32>
    %50 = arith.maximumf %48, %49 : vector<64x64xf32>
    %c0_24 = arith.constant 0 : index
    %c0_25 = arith.constant 0 : index
    %51 = vector.load %arg9[%c0_24, %c0_25] : memref<64x64xbf16, #tpu.memory_space<vmem>>, vector<64x64xbf16>
    %52 = arith.truncf %50 : vector<64x64xf32> to vector<64x64xbf16>
    %cst_26 = arith.constant dense<0.000000e+00> : vector<64x64xf32>
    %53 = tpu.matmul %51, %52, %cst_26 {dimension_numbers = #tpu.dot_dimension_numbers<[1], [0], [0], [1], [0, 0, 1, 1], [], []>} : vector<64x64xbf16>, vector<64x64xbf16>, vector<64x64xf32> -> vector<64x64xf32>
    %c0_27 = arith.constant 0 : index
    %c0_28 = arith.constant 0 : index
    %54 = vector.load %arg10[%c0_27, %c0_28] : memref<64x1xf32, #tpu.memory_space<vmem>>, vector<64x1xf32>
    %55 = vector.broadcast %54 : vector<64x1xf32> to vector<64x64xf32>
    %56 = arith.addf %53, %55 : vector<64x64xf32>
    %c0_29 = arith.constant 0 : index
    %c0_30 = arith.constant 0 : index
    %c0_31 = arith.constant 0 : index
    %57 = vector.load %arg11[%c0_29, %c0_30, %c0_31] : memref<1x64x64xf32, #tpu.memory_space<vmem>>, vector<1x64x64xf32>
    %58 = vector.shape_cast %57 : vector<1x64x64xf32> to vector<64x64xf32>
    %59 = arith.addf %56, %58 : vector<64x64xf32>
    %cst_32 = arith.constant 0.000000e+00 : f32
    %60 = vector.broadcast %cst_32 : f32 to vector<64x64xf32>
    %61 = arith.maximumf %59, %60 : vector<64x64xf32>
    %c0_33 = arith.constant 0 : index
    %c0_34 = arith.constant 0 : index
    %c0_35 = arith.constant 0 : index
    %62 = vector.load %arg12[%c0_33, %c0_34, %c0_35] : memref<1x64x64xf32, #tpu.memory_space<vmem>>, vector<1x64x64xf32>
    %63 = vector.shape_cast %62 : vector<1x64x64xf32> to vector<64x64xf32>
    %64 = vector.shape_cast %61 : vector<64x64xf32> to vector<1x64x64xf32>
    tpu.vector_store %arg12[%c0_33, %c0_34, %c0_35], %64 {strides = array<i32>} : memref<1x64x64xf32, #tpu.memory_space<vmem>>, vector<1x64x64xf32>,
    return
  }
  func.func @transform_0(%arg0: i32) -> (i32, i32, i32) {
    %c0_i32 = arith.constant 0 : i32
    %c0_i32_0 = arith.constant 0 : i32
    %c0_i32_1 = arith.constant 0 : i32
    return %arg0, %c0_i32, %c0_i32_0 : i32, i32, i32
  }
  func.func @transform_1(%arg0: i32) -> (i32, i32) {
    %c0_i32 = arith.constant 0 : i32
    %c0_i32_0 = arith.constant 0 : i32
    %c0_i32_1 = arith.constant 0 : i32
    return %c0_i32, %c0_i32_0 : i32, i32
  }
  func.func @transform_2(%arg0: i32) -> (i32, i32) {
    %c0_i32 = arith.constant 0 : i32
    %c0_i32_0 = arith.constant 0 : i32
    %c0_i32_1 = arith.constant 0 : i32
    return %c0_i32, %c0_i32_0 : i32, i32
  }
  func.func @transform_3(%arg0: i32) -> (i32, i32) {
    %c0_i32 = arith.constant 0 : i32
    %c0_i32_0 = arith.constant 0 : i32
    %c0_i32_1 = arith.constant 0 : i32
    return %c0_i32, %c0_i32_0 : i32, i32
  }
  func.func @transform_4(%arg0: i32) -> (i32, i32) {
    %c0_i32 = arith.constant 0 : i32
    %c0_i32_0 = arith.constant 0 : i32
    %c0_i32_1 = arith.constant 0 : i32
    return %c0_i32, %c0_i32_0 : i32, i32
  }
  func.func @transform_5(%arg0: i32) -> (i32, i32) {
    %c0_i32 = arith.constant 0 : i32
    %c0_i32_0 = arith.constant 0 : i32
    %c0_i32_1 = arith.constant 0 : i32
    return %c0_i32, %c0_i32_0 : i32, i32
  }
  func.func @transform_6(%arg0: i32) -> (i32, i32) {
    %c0_i32 = arith.constant 0 : i32
    %c0_i32_0 = arith.constant 0 : i32
    %c0_i32_1 = arith.constant 0 : i32
    return %c0_i32, %c0_i32_0 : i32, i32
  }
  func.func @transform_7(%arg0: i32) -> (i32, i32) {
    %c0_i32 = arith.constant 0 : i32
    %c0_i32_0 = arith.constant 0 : i32
    %c0_i32_1 = arith.constant 0 : i32
    return %c0_i32, %c0_i32_0 : i32, i32
  }
  func.func @transform_8(%arg0: i32) -> (i32, i32) {
    %c0_i32 = arith.constant 0 : i32
    %c0_i32_0 = arith.constant 0 : i32
    %c0_i32_1 = arith.constant 0 : i32
    return %c0_i32, %c0_i32_0 : i32, i32
  }
  func.func @transform_9(%arg0: i32) -> (i32, i32) {
    %c0_i32 = arith.constant 0 : i32
    %c0_i32_0 = arith.constant 0 : i32
    %c0_i32_1 = arith.constant 0 : i32
    return %c0_i32, %c0_i32_0 : i32, i32
  }
  func.func @transform_10(%arg0: i32) -> (i32, i32, i32) {
    %c0_i32 = arith.constant 0 : i32
    %c0_i32_0 = arith.constant 0 : i32
    %c0_i32_1 = arith.constant 0 : i32
    return %arg0, %c0_i32, %c0_i32_0 : i32, i32, i32
  }
  func.func @transform_11(%arg0: i32) -> (i32, i32, i32) {
    %c0_i32 = arith.constant 0 : i32
    %c0_i32_0 = arith.constant 0 : i32
    %c0_i32_1 = arith.constant 0 : i32
    return %arg0, %c0_i32, %c0_i32_0 : i32, i32, i32
  }
}

</mosaic_0001>

<bundles_post_ra>
// kernel: tpu_custom_call.1
= control target key start
LH: loop header
LB: loop body
LE: loop exit
PB: predicated region body
PF: predicated region fallthrough
CT: control target
= control target key end

     0   :  { %16 = vsyncpa [#allocation3], 0  ;;  %s9973_s0 = inlined_call_operand.vmem [shape: f32[2,32,256], index: 0, kind: input, shape index: {}]   ;;  %s9974_s1 = inlined_call_operand.vmem [shape: bf16[16,32], index: 1, kind: input, shape index: {}]   ;;  %s9975_s2 = inlined_call_operand.vmem [shape: f32[16,1], index: 2, kind: input, shape index: {}]   ;;  %s9976_s3 = inlined_call_operand.vmem [shape: bf16[192,16], index: 3, kind: input, shape index: {}]   ;;  %s9977_s4 = inlined_call_operand.vmem [shape: f32[16,256], index: 4, kind: input, shape index: {}]   ;;  %s9978_s5 = inlined_call_operand.vmem [shape: bf16[256,64], index: 5, kind: input, shape index: {}]   ;;  %s9979_s6 = inlined_call_operand.vmem [shape: f32[64,1], index: 6, kind: input, shape index: {}]   ;;  %s9980_s7 = inlined_call_operand.vmem [shape: f32[64,1], index: 7, kind: input, shape index: {}]   ;;  %s9981_s8 = inlined_call_operand.vmem [shape: bf16[64,64], index: 8, kind: input, shape index: {}]   ;;  %s9982_s9 = inlined_call_operand.vmem [shape: f32[64,1], index: 9, kind: input, shape index: {}]   ;;  %s9983_s10 = inlined_call_operand.vmem [shape: f32[2,64,64], index: 10, kind: input, shape index: {}]   ;;  %s9984_s11 = inlined_call_operand.hbm [shape: f32[2,64,64], index: 11, kind: output, shape index: {}]  }
   0x1   :  { %18 = vsyncpa [#allocation3 + $0x1], 0  ;;  %s6501_s17 = smov 0   ;;  %s6503_s18 = smov 0  }
   0x2   :  { %s6505_s19 = smov 0   ;;  %s6507_s20 = smov 0  }
   0x3 LB: > { %s6522_s21 = sadd.s32 4294967295, %s6435_s20   ;;  %s5333_s22 = sadd.s32 4294967294, %s6435_s20   ;;  %s6435_s20 = sphi %s6507_s20, %s11089_s20   ;;  %s6431_s19 = sphi %s6505_s19, %s11088_s19   ;;  %s6427_s18 = sphi %s6503_s18, %s11087_s18   ;;  %s6423_s17 = sphi %s6501_s17, %s11086_s17  }
   0x4   : > { %s6526_s23 = sadd.s32 1, %s6435_s20   ;;  %s272_s24 = sadd.s32 1, %s6431_s19 }
   0x5   : > { %s269_s25 = ssub.s32 %s6435_s20, %s6526_s23  ;;  %p282_p0 = scmp.ne.s32.totalorder %s6431_s19, %s6427_s18 }
   0x6   : > { %p270_p1 = scmp.eq.s32.totalorder %s269_s25, 0  ;;  %p283_p2 = scmp.eq.s32.totalorder %s6522_s21, 1 }
   0x7   : > { %p288_p3 = scmp.ne.s32.totalorder %s6427_s18, %s6423_s17  ;;  %p289_p4 = scmp.eq.s32.totalorder %s5333_s22, 1 }
   0x8   : > { %s6537_s26 = scalar_select %p270_p1, %s6431_s19, %s272_s24  }
   0x9   : > { %p6539_p5 = por %p283_p2, %p282_p0  ;;  %p6543_p6 = por %p289_p4, %p288_p3 }
   0xa   : > { %p5336_p7 = scmp.ge.s32.totalorder %s6435_s20, 1  ;;  %p350_p8 = scmp.lt.s32.totalorder %s6435_s20, 3 }
   0xc   : > { %p351_p9 = pnand %p5336_p7, %p350_p8 }
   0xe   : > { %354 = sbr.rel (%p351_p9) target bundleno = 1994 (0x7ca), region = 64 }
  0x15   : > { %p395_p10 = scmp.lt.s32.totalorder %s6522_s21, 1  ;;  %v9989_v0 = vmov 0   ;;  %v420_v1 = vld [vmem:[%s9975_s2] sm:$0xff]  ;;  %v421_v2 = vld [vmem:[%s9975_s2 + $0x8] sm:$0xff]  ;;  %vm437_vm0 = vcmask 261120   ;;  %vm574_vm1 = vcmask 130048  }
  0x16   : > { %473 = vmatprep.mubr.bf16.mxu0 %v9989_v0  ;;  %5570 = vset.pattern.permute.xlu0 %v9989_v0  ;;  %v5572_v15 = vld [vmem:[%s9974_s1] sm:$0xff]   ;;  %v5574_v33 = vld [vmem:[%s9976_s3 + $0x8] sm:$0xff]   ;;  %v5575_v34 = vld [vmem:[%s9976_s3 + $0x10] sm:$0xff]   ;;  %vm4003_vm2 = vcmask 130112   ;;  %vm4010_vm3 = vcmask 195712   ;;  %vm4017_vm4 = vcmask 261312  }
  0x17   : > { %s6556_s12 = scalar_select %p395_p10, %s6522_s21, 1  ;;  %424 = vperm.xlu0 %5570, %v420_v1   ;;  %643 = vmatprep.mubr.bf16.mxu1 %v9989_v0  ;;  %v5573_v32 = vld [vmem:[%s9976_s3] sm:$0xff]   ;;  %v5576_v35 = vld [vmem:[%s9976_s3 + $0x18] sm:$0xff]   ;;  %v5578_v37 = vld [vmem:[%s9976_s3 + $0x28] sm:$0xff]   ;;  %vm4024_vm5 = vcmask 326912   ;;  %vm4031_vm6 = vcmask 392512  }
  0x18   : > { %v5577_v36 = vld [vmem:[%s9976_s3 + $0x20] sm:$0xff]   ;;  %v5579_v38 = vld [vmem:[%s9976_s3 + $0x30] sm:$0xff]   ;;  %v5580_v39 = vld [vmem:[%s9976_s3 + $0x38] sm:$0xff]   ;;  %vm4038_vm7 = vcmask 458112   ;;  %vm4045_vm8 = vcmask 523712   ;;  %vm4052_vm9 = vcmask 589312  }
  0x19   : > { %s5461_s15 = sshll.u32 %s6556_s12, 6  ;;  %v5581_v40 = vld [vmem:[%s9976_s3 + $0x40] sm:$0xff]   ;;  %v5582_v41 = vld [vmem:[%s9976_s3 + $0x48] sm:$0xff]   ;;  %v5583_v42 = vld [vmem:[%s9976_s3 + $0x50] sm:$0xff]   ;;  %vm4059_vm10 = vcmask 654912   ;;  %vm4066_vm11 = vcmask 720512  }
  0x1a   : > { %s399_s24 = scalar_lea.vmem %s9973_s0, %s5461_s15  ;;  %v5584_v43 = vld [vmem:[%s9976_s3 + $0x58] sm:$0xff]   ;;  %vm4073_vm12 = vcmask 786112   ;;  %vm4080_vm13 = vcmask 851712   ;;  %vm4087_vm14 = vcmask 917312   ;;  %vm4094_vm15 = vcmask 982912   ;;  %s9890_s14 = scalar_lea.vmem %s9983_s10, %s5461_s15 }
  0x1b   : > { %v407_v3 = vld [vmem:[%s399_s24 + $0x8] sm:$0xff]  ;;  %v409_v4 = vld [vmem:[%s399_s24 + $0x18] sm:$0xff]  ;;  %v406_v5 = vld [vmem:[%s399_s24] sm:$0xff]  ;;  %429 = vperm.xlu0 %5570, %v421_v2   ;;  %s392_s16 = sand.u32 1, %s6427_s18   ;;  %s5463_s15 = sshll.u32 %s6522_s21, 10 }
  0x1c   : > { %v415_v6 = vpack.c.bf16 %v409_v4, %v407_v3  ;;  %v408_v7 = vld [vmem:[%s399_s24 + $0x10] sm:$0xff]  ;;  %v411_v8 = vld [vmem:[%s399_s24 + $0x28] sm:$0xff]  ;;  %v413_v9 = vld [vmem:[%s399_s24 + $0x38] sm:$0xff]  ;;  %s5337_s22 = sshll.u32 %s392_s16, 6  ;;  %s9920_s30 = scalar_lea.hbm %s9984_s11, %s5463_s15 }
  0x1d   : > { %v414_v10 = vpack.c.bf16 %v408_v7, %v406_v5  ;;  %v417_v11 = vpack.c.bf16 %v413_v9, %v411_v8  ;;  %v410_v12 = vld [vmem:[%s399_s24 + $0x20] sm:$0xff]  ;;  %v412_v13 = vld [vmem:[%s399_s24 + $0x30] sm:$0xff]  ;;  %s9899_s12 = scalar_lea.vmem [#allocation2], %s5337_s22  ;;  %s9932_s21 = scalar_lea.sflag [#allocation3], %s392_s16 }
  0x1e   : > { %441 = vmatprep.subr.bf16.mxu0 %v415_v6  ;;  %v416_v14 = vpack.c.bf16 %v412_v13, %v410_v12  ;;  %v764_v5 = vld [vmem:[%s9977_s4] sm:$0xff]  ;;  %v765_v6 = vld [vmem:[%s9977_s4 + $0x8] sm:$0xff]  ;;  %v766_v8 = vld [vmem:[%s9977_s4 + $0x10] sm:$0xff]  ;;  %s5259_s24 = sshll.u32 %s9899_s12, 4  ;;  %s9922_s24 = int_to_ptr.vmem [resolvable:$true] %s5259_s24 }
  0x1f   : > { %442 = vmatpush1.bf16.msra.mxu0 %v414_v10  ;;  %s6373_s13 = scalar_lea.vmem %s9922_s24, 1024 }
  0x20   : > { %443 = vmatprep.subr.bf16.mxu0 %v417_v11  ;;  %v767_v11 = vld [vmem:[%s9977_s4 + $0x18] sm:$0xff]  ;;  %p6374_p11 = scmp.ne.s32.totalorder %s9922_s24, %s6373_s13 }
  0x22   : > { %p6375_p12 = pnand %p6374_p11, %p6539_p5 }
  0x23   : > { %444 = vmatpush1.bf16.msra.mxu0 %v416_v14 }
  0x24   : > { %p6376_p13 = pneg %p6375_p12 }
  0x26   : > { %5343 = vmatmul.mubr.msk.bf16.vlgmr.msra.gmra.mrb[0].mxu0 %vm437_vm0, %v5572_v15  ;;  %vm4101_vm0 = vcmask 1048512  }
  0x27   : > { %912 = vmatprep.mubr.bf16.mxu0 %v9989_v0 }
  0x96   : > { %v425_v16 = vpop.permute.xlu0 %424 }
  0x9a   : > { %v430_v20 = vpop.permute.xlu0 %429 }
  0xf9   : > { %v475_v17 = vpop.f32.mrb[0].mxu0 }
  0xfa   : > { %v476_v18 = vadd.f32 %v475_v17, %v425_v16  ;;  %v477_v19 = vpop.f32.mrb[1].mxu0 }
  0xfb   : > { %v478_v21 = vadd.f32 %v477_v19, %v425_v16  ;;  %v479_v22 = vpop.f32.mrb[2].mxu0 }
  0xfc   : > { %v480_v23 = vadd.f32 %v479_v22, %v430_v20  ;;  %v481_v24 = vpop.f32.mrb[3].mxu0  ;;  %v484_v26 = vmax.f32 %v476_v18, 0.0 }
  0xfd   : > { %v482_v25 = vadd.f32 %v481_v24, %v430_v20  ;;  %v485_v28 = vmax.f32 %v478_v21, 0.0 }
  0xfe   : > { %v486_v27 = vmax.f32 %v480_v23, 0.0 }
  0xff   : > { %v487_v29 = vmax.f32 %v482_v25, 0.0 }
 0x100   : > { %v512_v30 = vpack.c.bf16 %v486_v27, %v484_v26 }
 0x101   : > { %v513_v31 = vpack.c.bf16 %v487_v29, %v485_v28 }
 0x103   : > { %611 = vmatprep.subr.bf16.mxu1 %v513_v31 }
 0x104   : > { %612 = vmatpush1.bf16.msra.mxu1 %v512_v30 }
 0x107   : > { %5356 = vmatmul.mubr.msk.bf16.vlgmr.msra.gmra.mrb[0].mxu1 %vm574_vm1, %v5573_v32 }
 0x108   : > { %653 = vmatprep.mubr.bf16.mxu1 %v9989_v0 }
 0x10f   : > { %5357 = vmatmul.mubr.msk.bf16.gmra.mrb[4].mxu1 %vm574_vm1, %v5574_v33 }
 0x110   : > { %663 = vmatprep.mubr.bf16.mxu1 %v9989_v0 }
 0x117   : > { %5358 = vmatmul.mubr.msk.bf16.gmra.mrb[8].mxu1 %vm574_vm1, %v5575_v34 }
 0x118   : > { %673 = vmatprep.mubr.bf16.mxu1 %v9989_v0 }
 0x11f   : > { %5359 = vmatmul.mubr.msk.bf16.gmra.mrb[12].mxu1 %vm574_vm1, %v5576_v35 }
 0x120   : > { %683 = vmatprep.mubr.bf16.mxu1 %v9989_v0 }
 0x127   : > { %5360 = vmatmul.mubr.msk.bf16.gmra.mrb[16].mxu1 %vm574_vm1, %v5577_v36 }
 0x128   : > { %693 = vmatprep.mubr.bf16.mxu1 %v9989_v0 }
 0x12f   : > { %5361 = vmatmul.mubr.msk.bf16.gmra.mrb[20].mxu1 %vm574_vm1, %v5578_v37 }
 0x130   : > { %703 = vmatprep.mubr.bf16.mxu1 %v9989_v0 }
 0x137   : > { %5362 = vmatmul.mubr.msk.bf16.gmra.mrb[24].mxu1 %vm574_vm1, %v5579_v38 }
 0x138   : > { %713 = vmatprep.mubr.bf16.mxu1 %v9989_v0 }
 0x13f   : > { %5363 = vmatmul.mubr.msk.bf16.gmra.mrb[28].mxu1 %vm574_vm1, %v5580_v39 }
 0x140   : > { %723 = vmatprep.mubr.bf16.mxu1 %v9989_v0 }
 0x147   : > { %5364 = vmatmul.mubr.msk.bf16.gmra.mrb[32].mxu1 %vm574_vm1, %v5581_v40 }
 0x148   : > { %733 = vmatprep.mubr.bf16.mxu1 %v9989_v0 }
 0x14f   : > { %5365 = vmatmul.mubr.msk.bf16.gmra.mrb[36].mxu1 %vm574_vm1, %v5582_v41 }
 0x150   : > { %743 = vmatprep.mubr.bf16.mxu1 %v9989_v0 }
 0x157   : > { %5366 = vmatmul.mubr.msk.bf16.gmra.mrb[40].mxu1 %vm574_vm1, %v5583_v42 }
 0x158   : > { %753 = vmatprep.mubr.bf16.mxu1 %v9989_v0 }
 0x15f   : > { %5367 = vmatmul.mubr.msk.bf16.gmra.mrb[44].mxu1 %vm574_vm1, %v5584_v43 }
 0x160   : > { %1185 = vmatprep.mubr.bf16.mxu1 %v9989_v0 }
 0x1da   : > { %v645_v44 = vpop.f32.mrb[0].mxu1 }
 0x1db   : > { %v647_v45 = vpop.f32.mrb[1].mxu1 }
 0x1dc   : > { %v649_v46 = vpop.f32.mrb[2].mxu1 }
 0x1dd   : > { %v651_v47 = vpop.f32.mrb[3].mxu1  ;;  %v792_v48 = vpack.c.bf16 %v649_v46, %v645_v44 }
 0x1de   : > { %v793_v49 = vpack.c.bf16 %v651_v47, %v647_v45 }
 0x1df   : > { %800 = vxpose.xlu1.c.b16.start.end [1/1] (short) %v792_v48, 128 }
 0x1e0   : > { %816 = vxpose.xlu0.c.b16.start.end [1/1] (short) %v793_v49, 128 }
 0x1e2   : > { %v655_v50 = vpop.f32.mrb[4].mxu1 }
 0x1e3   : > { %v6632_v51 = vpop.f32.mrb[5].mxu1 }
 0x1e4   : > { %v659_v52 = vpop.f32.mrb[6].mxu1 }
 0x1e5   : > { %v794_v53 = vpack.c.bf16 %v659_v52, %v655_v50  ;;  %v6634_v54 = vpop.f32.mrb[7].mxu1 }
 0x1e6   : > { %v795_v55 = vpack.c.bf16 %v6634_v54, %v6632_v51 }
 0x1ea   : > { %v665_v56 = vpop.f32.mrb[8].mxu1 }
 0x1eb   : > { %v6638_v57 = vpop.f32.mrb[9].mxu1 }
 0x1ec   : > { %v669_v58 = vpop.f32.mrb[10].mxu1 }
 0x1ed   : > { %v796_v59 = vpack.c.bf16 %v669_v58, %v665_v56  ;;  %v671_v60 = vpop.f32.mrb[11].mxu1 }
 0x1ee   : > { %v797_v61 = vpack.c.bf16 %v671_v60, %v6638_v57 }
 0x1f2   : > { %v675_v62 = vpop.f32.mrb[12].mxu1 }
 0x1f3   : > { %v6641_v63 = vpop.f32.mrb[13].mxu1 }
 0x1f4   : > { %v679_v1 = vpop.f32.mrb[14].mxu1 }
 0x1f5   : > { %v798_v2 = vpack.c.bf16 %v679_v1, %v675_v62  ;;  %v6643_v3 = vpop.f32.mrb[15].mxu1 }
 0x1f6   : > { %v799_v4 = vpack.c.bf16 %v6643_v3, %v6641_v63 }
 0x1fa   : > { %v685_v7 = vpop.f32.mrb[16].mxu1 }
 0x1fb   : > { %v768_v9 = vadd.f32 %v764_v5, %v685_v7  ;;  %v687_v10 = vpop.f32.mrb[17].mxu1 }
 0x1fc   : > { %v769_v12 = vadd.f32 %v765_v6, %v687_v10  ;;  %1073 = vxpose.xlu1.c.b16.start.end [1/1] (short) %v794_v53, 128  ;;  %v689_v13 = vpop.f32.mrb[18].mxu1 }
 0x1fd   : > { %v770_v14 = vadd.f32 %v766_v8, %v689_v13  ;;  %1346 = vxpose.xlu0.c.b16.start.end [1/1] (short) %v796_v59, 128  ;;  %v691_v15 = vpop.f32.mrb[19].mxu1 }
 0x1fe   : > { %v771_v16 = vadd.f32 %v767_v11, %v691_v15 }
 0x1ff   : > { %v784_v17 = vpack.c.bf16 %v770_v14, %v768_v9 }
 0x200   : > { %v785_v18 = vpack.c.bf16 %v771_v16, %v769_v12 }
 0x202   : > { %v695_v19 = vpop.f32.mrb[20].mxu1  ;;  %880 = vmatprep.subr.bf16.mxu0 %v785_v18 }
 0x203   : > { %v772_v20 = vadd.f32 %v764_v5, %v695_v19  ;;  %v697_v21 = vpop.f32.mrb[21].mxu1  ;;  %881 = vmatpush1.bf16.msra.mxu0 %v784_v17 }
 0x204   : > { %v773_v22 = vadd.f32 %v765_v6, %v697_v21  ;;  %v699_v23 = vpop.f32.mrb[22].mxu1 }
 0x205   : > { %v774_v24 = vadd.f32 %v766_v8, %v699_v23  ;;  %v701_v25 = vpop.f32.mrb[23].mxu1 }
 0x206   : > { %v775_v26 = vadd.f32 %v767_v11, %v701_v25 }
 0x207   : > { %v786_v27 = vpack.c.bf16 %v774_v24, %v772_v20 }
 0x208   : > { %v787_v28 = vpack.c.bf16 %v775_v26, %v773_v22 }
 0x20a   : > { %1153 = vmatprep.subr.bf16.mxu1 %v787_v28  ;;  %v705_v29 = vpop.f32.mrb[24].mxu1 }
 0x20b   : > { %1154 = vmatpush1.bf16.msra.mxu1 %v786_v27  ;;  %v776_v30 = vadd.f32 %v764_v5, %v705_v29  ;;  %v707_v31 = vpop.f32.mrb[25].mxu1 }
 0x20c   : > { %v777_v32 = vadd.f32 %v765_v6, %v707_v31  ;;  %v709_v33 = vpop.f32.mrb[26].mxu1 }
 0x20d   : > { %v778_v34 = vadd.f32 %v766_v8, %v709_v33  ;;  %v711_v35 = vpop.f32.mrb[27].mxu1 }
 0x20e   : > { %v779_v36 = vadd.f32 %v767_v11, %v711_v35 }
 0x20f   : > { %v788_v37 = vpack.c.bf16 %v778_v34, %v776_v30 }
 0x210   : > { %v789_v38 = vpack.c.bf16 %v779_v36, %v777_v32 }
 0x212   : > { %1426 = vmatprep.subr.bf16.mxu0 %v789_v38  ;;  %v715_v39 = vpop.f32.mrb[28].mxu1 }
 0x213   : > { %v780_v40 = vadd.f32 %v764_v5, %v715_v39  ;;  %v717_v41 = vpop.f32.mrb[29].mxu1 }
 0x214   : > { %v781_v42 = vadd.f32 %v765_v6, %v717_v41  ;;  %v719_v43 = vpop.f32.mrb[30].mxu1 }
 0x215   : > { %v782_v44 = vadd.f32 %v766_v8, %v719_v43  ;;  %v721_v45 = vpop.f32.mrb[31].mxu1 }
 0x216   : > { %v783_v46 = vadd.f32 %v767_v11, %v721_v45 }
 0x217   : > { %v790_v47 = vpack.c.bf16 %v782_v44, %v780_v40 }
 0x218   : > { %v791_v48 = vpack.c.bf16 %v783_v46, %v781_v42 }
 0x219   : > { %1089 = vxpose.xlu1.c.b16.start.end [1/1] (short) %v795_v55, 128 }
 0x21a   : > { %1362 = vxpose.xlu0.c.b16.start.end [1/1] (short) %v797_v61, 128  ;;  %1699 = vmatprep.subr.bf16.mxu1 %v791_v48 }
 0x236   : > { %1619 = vxpose.xlu1.c.b16.start.end [1/1] (short) %v798_v2, 128  ;;  %v6698_v2 = vpop.f32.mrb[32].mxu1 }
 0x237   : > { %10323 = vst [vmem:[#allocation5_spill] sm:$0xff] %v6698_v2  ;;  %v6702_v5 = vpop.f32.mrb[33].mxu1 }
 0x238   : > { %v6706_v6 = vpop.f32.mrb[34].mxu1 }
 0x239   : > { %10324 = vst [vmem:[#allocation6_spill] sm:$0xff] %v6706_v6  ;;  %v6710_v8 = vpop.f32.mrb[35].mxu1 }
 0x23a   : > { %v3557_v9 = vpack.c.bf16 %v6710_v8, %v6702_v5  ;;  %v6716_v12 = vpop.f32.mrb[36].mxu1 }
 0x23b   : > { %10325 = vst [vmem:[#allocation7_spill] sm:$0xff] %v6716_v12  ;;  %v6720_v13 = vpop.f32.mrb[37].mxu1 }
 0x23c   : > { %v6722_v14 = vpop.f32.mrb[38].mxu1 }
 0x23d   : > { %10326 = vst [vmem:[#allocation8_spill] sm:$0xff] %v6722_v14  ;;  %v6726_v16 = vpop.f32.mrb[39].mxu1  ;;  %v10350_v14 = vmov 0  }
 0x23e   : > { %v6732_v20 = vpop.f32.mrb[40].mxu1 }
 0x23f   : > { %10327 = vst [vmem:[#allocation9_spill] sm:$0xff] %v6732_v20  ;;  %v6736_v21 = vpop.f32.mrb[41].mxu1 }
 0x240   : > { %10328 = vst [vmem:[#allocation10_spill] sm:$0xff] %v6736_v21  ;;  %v6738_v22 = vpop.f32.mrb[42].mxu1 }
 0x241   : > { %10329 = vst [vmem:[#allocation11_spill] sm:$0xff] %v6738_v22  ;;  %v6742_v24 = vpop.f32.mrb[43].mxu1 }
 0x242   : > { %10330 = vst [vmem:[#allocation12_spill] sm:$0xff] %v6742_v24  ;;  %v6748_v28 = vpop.f32.mrb[44].mxu1 }
 0x243   : > { %10331 = vst [vmem:[#allocation13_spill] sm:$0xff] %v6748_v28  ;;  %v6752_v29 = vpop.f32.mrb[45].mxu1 }
 0x244   : > { %10332 = vst [vmem:[#allocation14_spill] sm:$0xff] %v6752_v29  ;;  %v6754_v30 = vpop.f32.mrb[46].mxu1 }
 0x245   : > { %v808_v49 = vpop.trf.xlu1  ;;  %10333 = vst [vmem:[#allocation15_spill] sm:$0xff] %v6754_v30  ;;  %v6758_v32 = vpop.f32.mrb[47].mxu1 }
 0x246   : > { %5368 = vmatmul.mubr.msk.bf16.vlgmr.msra.gmra.mrb[4].mxu0 %vm574_vm1, %v808_v49  ;;  %v824_v61 = vpop.trf.xlu0  ;;  %10334 = vst [vmem:[#allocation16_spill] sm:$0xff] %v6758_v32 }
 0x247   : > { %922 = vmatprep.mubr.bf16.mxu0 %v9989_v0  ;;  %1427 = vmatpush1.bf16.msra.mxu0 %v788_v37 }
 0x249   : > { %v809_v50 = vpop.trf.xlu1 }
 0x24a   : > { %v825_v63 = vpop.trf.xlu0 }
 0x24d   : > { %v810_v52 = vpop.trf.xlu1 }
 0x24e   : > { %5369 = vmatmul.mubr.msk.bf16.gmra.mrb[8].mxu0 %vm574_vm1, %v809_v50  ;;  %v826_v3 = vpop.trf.xlu0 }
 0x24f   : > { %932 = vmatprep.mubr.bf16.mxu0 %v9989_v0 }
 0x251   : > { %v811_v53 = vpop.trf.xlu1 }
 0x252   : > { %v827_v10 = vpop.trf.xlu0 }
 0x253   : > { %1635 = vxpose.xlu1.c.b16.start.end [1/1] (short) %v799_v4, 128 }
 0x255   : > { %v812_v51 = vpop.trf.xlu1 }
 0x256   : > { %5370 = vmatmul.mubr.msk.bf16.gmra.mrb[12].mxu0 %vm574_vm1, %v810_v52  ;;  %v828_v18 = vpop.trf.xlu0 }
 0x257   : > { %942 = vmatprep.mubr.bf16.mxu0 %v9989_v0  ;;  %5571 = vset.pattern.permute.xlu1 %v9989_v0 }
 0x259   : > { %v813_v54 = vpop.trf.xlu1 }
 0x25a   : > { %v829_v26 = vpop.trf.xlu0 }
 0x25d   : > { %v814_v55 = vpop.trf.xlu1 }
 0x25e   : > { %5371 = vmatmul.mubr.msk.bf16.gmra.mrb[16].mxu0 %vm574_vm1, %v811_v53  ;;  %v830_v34 = vpop.trf.xlu0 }
 0x25f   : > { %952 = vmatprep.mubr.bf16.mxu0 %v9989_v0 }
 0x261   : > { %v815_v56 = vpop.trf.xlu1 }
 0x262   : > { %v831_v36 = vpop.trf.xlu0 }
 0x265   : > { %v1081_v57 = vpop.trf.xlu1 }
 0x266   : > { %5372 = vmatmul.mubr.msk.bf16.gmra.mrb[20].mxu0 %vm574_vm1, %v812_v51  ;;  %5384 = vmatmul.mubr.msk.bf16.vlgmr.msra.gmra.mrb[48].mxu1 %vm574_vm1, %v1081_v57  ;;  %v1354_v39 = vpop.trf.xlu0 }
 0x267   : > { %962 = vmatprep.mubr.bf16.mxu0 %v9989_v0  ;;  %1195 = vmatprep.mubr.bf16.mxu1 %v9989_v0 }
 0x268   : > { %1700 = vmatpush1.bf16.msra.mxu1 %v790_v47 }
 0x269   : > { %v1082_v58 = vpop.trf.xlu1 }
 0x26a   : > { %v1355_v41 = vpop.trf.xlu0 }
 0x26d   : > { %v1083_v59 = vpop.trf.xlu1 }
 0x26e   : > { %5373 = vmatmul.mubr.msk.bf16.gmra.mrb[24].mxu0 %vm574_vm1, %v813_v54  ;;  %5385 = vmatmul.mubr.msk.bf16.gmra.mrb[52].mxu1 %vm574_vm1, %v1082_v58  ;;  %v1356_v43 = vpop.trf.xlu0 }
 0x26f   : > { %972 = vmatprep.mubr.bf16.mxu0 %v9989_v0  ;;  %1205 = vmatprep.mubr.bf16.mxu1 %v9989_v0 }
 0x271   : > { %v1084_v60 = vpop.trf.xlu1 }
 0x272   : > { %v1357_v45 = vpop.trf.xlu0 }
 0x275   : > { %v1085_v62 = vpop.trf.xlu1 }
 0x276   : > { %5374 = vmatmul.mubr.msk.bf16.gmra.mrb[28].mxu0 %vm574_vm1, %v814_v55  ;;  %5386 = vmatmul.mubr.msk.bf16.gmra.mrb[56].mxu1 %vm574_vm1, %v1083_v59  ;;  %v1358_v46 = vpop.trf.xlu0 }
 0x277   : > { %982 = vmatprep.mubr.bf16.mxu0 %v9989_v0  ;;  %1215 = vmatprep.mubr.bf16.mxu1 %v9989_v0 }
 0x279   : > { %v1086_v1 = vpop.trf.xlu1 }
 0x27a   : > { %v1359_v48 = vpop.trf.xlu0 }
 0x27d   : > { %v1087_v4 = vpop.trf.xlu1 }
 0x27e   : > { %5375 = vmatmul.mubr.msk.bf16.gmra.mrb[32].mxu0 %vm574_vm1, %v815_v56  ;;  %5387 = vmatmul.mubr.msk.bf16.gmra.mrb[60].mxu1 %vm574_vm1, %v1084_v60  ;;  %v1360_v50 = vpop.trf.xlu0 }
 0x27f   : > { %992 = vmatprep.mubr.bf16.mxu0 %v9989_v0  ;;  %1225 = vmatprep.mubr.bf16.mxu1 %v9989_v0 }
 0x281   : > { %v1088_v11 = vpop.trf.xlu1 }
 0x282   : > { %v1361_v53 = vpop.trf.xlu0 }
 0x285   : > { %v1097_v19 = vpop.trf.xlu1 }
 0x286   : > { %5376 = vmatmul.mubr.msk.bf16.gmra.mrb[36].mxu0 %vm574_vm1, %v824_v61  ;;  %5388 = vmatmul.mubr.msk.bf16.gmra.mrb[64].mxu1 %vm574_vm1, %v1085_v62  ;;  %v1370_v54 = vpop.trf.xlu0 }
 0x287   : > { %1002 = vmatprep.mubr.bf16.mxu0 %v9989_v0  ;;  %1235 = vmatprep.mubr.bf16.mxu1 %v9989_v0 }
 0x289   : > { %v1098_v27 = vpop.trf.xlu1 }
 0x28a   : > { %v1371_v56 = vpop.trf.xlu0 }
 0x28d   : > { %v1099_v35 = vpop.trf.xlu1 }
 0x28e   : > { %5377 = vmatmul.mubr.msk.bf16.gmra.mrb[40].mxu0 %vm574_vm1, %v825_v63  ;;  %5389 = vmatmul.mubr.msk.bf16.gmra.mrb[68].mxu1 %vm574_vm1, %v1086_v1  ;;  %v1372_v58 = vpop.trf.xlu0 }
 0x28f   : > { %1012 = vmatprep.mubr.bf16.mxu0 %v9989_v0  ;;  %1245 = vmatprep.mubr.bf16.mxu1 %v9989_v0 }
 0x291   : > { %v1100_v37 = vpop.trf.xlu1 }
 0x292   : > { %v1373_v62 = vpop.trf.xlu0 }
 0x295   : > { %v1101_v38 = vpop.trf.xlu1 }
 0x296   : > { %5378 = vmatmul.mubr.msk.bf16.gmra.mrb[44].mxu0 %vm574_vm1, %v826_v3  ;;  %5390 = vmatmul.mubr.msk.bf16.gmra.mrb[72].mxu1 %vm574_vm1, %v1087_v4 }
 0x297   : > { %1022 = vmatprep.mubr.bf16.mxu0 %v9989_v0  ;;  %1255 = vmatprep.mubr.bf16.mxu1 %v9989_v0 }
 0x299   : > { %v1102_v40 = vpop.trf.xlu1 }
 0x29d   : > { %v1103_v42 = vpop.trf.xlu1 }
 0x29e   : > { %5379 = vmatmul.mubr.msk.bf16.gmra.mrb[48].mxu0 %vm574_vm1, %v827_v10  ;;  %5391 = vmatmul.mubr.msk.bf16.gmra.mrb[76].mxu1 %vm574_vm1, %v1088_v11 }
 0x29f   : > { %1032 = vmatprep.mubr.bf16.mxu0 %v9989_v0  ;;  %1265 = vmatprep.mubr.bf16.mxu1 %v9989_v0 }
 0x2a1   : > { %v1104_v44 = vpop.trf.xlu1 }
 0x2a5   : > { %v1627_v47 = vpop.trf.xlu1 }
 0x2a6   : > { %5380 = vmatmul.mubr.msk.bf16.gmra.mrb[52].mxu0 %vm574_vm1, %v828_v18  ;;  %5392 = vmatmul.mubr.msk.bf16.gmra.mrb[80].mxu1 %vm574_vm1, %v1097_v19  ;;  %v1374_v19 = vpop.trf.xlu0 }
 0x2a7   : > { %1042 = vmatprep.mubr.bf16.mxu0 %v9989_v0  ;;  %1275 = vmatprep.mubr.bf16.mxu1 %v9989_v0 }
 0x2a9   : > { %v1628_v49 = vpop.trf.xlu1 }
 0x2ad   : > { %v1629_v52 = vpop.trf.xlu1 }
 0x2ae   : > { %5381 = vmatmul.mubr.msk.bf16.gmra.mrb[56].mxu0 %vm574_vm1, %v829_v26  ;;  %5393 = vmatmul.mubr.msk.bf16.gmra.mrb[84].mxu1 %vm574_vm1, %v1098_v27 }
 0x2af   : > { %1052 = vmatprep.mubr.bf16.mxu0 %v9989_v0  ;;  %1285 = vmatprep.mubr.bf16.mxu1 %v9989_v0 }
 0x2b1   : > { %v1630_v51 = vpop.trf.xlu1 }
 0x2b5   : > { %v1631_v55 = vpop.trf.xlu1 }
 0x2b6   : > { %5382 = vmatmul.mubr.msk.bf16.gmra.mrb[60].mxu0 %vm574_vm1, %v830_v34  ;;  %5394 = vmatmul.mubr.msk.bf16.gmra.mrb[88].mxu1 %vm574_vm1, %v1099_v35 }
 0x2b7   : > { %1062 = vmatprep.mubr.bf16.mxu0 %v9989_v0  ;;  %1295 = vmatprep.mubr.bf16.mxu1 %v9989_v0 }
 0x2b9   : > { %v1632_v57 = vpop.trf.xlu1 }
 0x2bd   : > { %v1633_v59 = vpop.trf.xlu1 }
 0x2be   : > { %5383 = vmatmul.mubr.msk.bf16.gmra.mrb[64].mxu0 %vm574_vm1, %v831_v36  ;;  %5395 = vmatmul.mubr.msk.bf16.gmra.mrb[92].mxu1 %vm574_vm1, %v1100_v37 }
 0x2bf   : > { %1305 = vmatprep.mubr.bf16.mxu1 %v9989_v0  ;;  %1458 = vmatprep.mubr.bf16.mxu0 %v9989_v0 }
 0x2c1   : > { %v1634_v1 = vpop.trf.xlu1 }
 0x2c5   : > { %v1643_v27 = vpop.trf.xlu1 }
 0x2c6   : > { %5396 = vmatmul.mubr.msk.bf16.gmra.mrb[96].mxu1 %vm574_vm1, %v1101_v38  ;;  %5400 = vmatmul.mubr.msk.bf16.vlgmr.msra.gmra.mrb[68].mxu0 %vm574_vm1, %v1354_v39  ;;  %v1375_v39 = vpop.trf.xlu0 }
 0x2c7   : > { %1315 = vmatprep.mubr.bf16.mxu1 %v9989_v0  ;;  %1468 = vmatprep.mubr.bf16.mxu0 %v9989_v0 }
 0x2ce   : > { %5397 = vmatmul.mubr.msk.bf16.gmra.mrb[100].mxu1 %vm574_vm1, %v1102_v40  ;;  %5401 = vmatmul.mubr.msk.bf16.gmra.mrb[72].mxu0 %vm574_vm1, %v1355_v41  ;;  %v1644_v41 = vpop.trf.xlu1 }
 0x2cf   : > { %1325 = vmatprep.mubr.bf16.mxu1 %v9989_v0  ;;  %1478 = vmatprep.mubr.bf16.mxu0 %v9989_v0 }
 0x2d6   : > { %5398 = vmatmul.mubr.msk.bf16.gmra.mrb[104].mxu1 %vm574_vm1, %v1103_v42  ;;  %5402 = vmatmul.mubr.msk.bf16.gmra.mrb[76].mxu0 %vm574_vm1, %v1356_v43 }
 0x2d7   : > { %1335 = vmatprep.mubr.bf16.mxu1 %v9989_v0  ;;  %1488 = vmatprep.mubr.bf16.mxu0 %v9989_v0 }
 0x2de   : > { %5399 = vmatmul.mubr.msk.bf16.gmra.mrb[108].mxu1 %vm574_vm1, %v1104_v44  ;;  %5403 = vmatmul.mubr.msk.bf16.gmra.mrb[80].mxu0 %vm574_vm1, %v1357_v45 }
 0x2df   : > { %1498 = vmatprep.mubr.bf16.mxu0 %v9989_v0  ;;  %1731 = vmatprep.mubr.bf16.mxu1 %v9989_v0 }
 0x2e6   : > { %5404 = vmatmul.mubr.msk.bf16.gmra.mrb[84].mxu0 %vm574_vm1, %v1358_v46  ;;  %5416 = vmatmul.mubr.msk.bf16.vlgmr.msra.gmra.mrb[112].mxu1 %vm574_vm1, %v1627_v47  ;;  %v1376_v47 = vpop.trf.xlu0 }
 0x2e7   : > { %1508 = vmatprep.mubr.bf16.mxu0 %v9989_v0  ;;  %1741 = vmatprep.mubr.bf16.mxu1 %v9989_v0 }
 0x2ee   : > { %5405 = vmatmul.mubr.msk.bf16.gmra.mrb[88].mxu0 %vm574_vm1, %v1359_v48  ;;  %5417 = vmatmul.mubr.msk.bf16.gmra.mrb[116].mxu1 %vm574_vm1, %v1628_v49  ;;  %v1645_v49 = vpop.trf.xlu1 }
 0x2ef   : > { %1518 = vmatprep.mubr.bf16.mxu0 %v9989_v0  ;;  %1751 = vmatprep.mubr.bf16.mxu1 %v9989_v0 }
 0x2f6   : > { %5406 = vmatmul.mubr.msk.bf16.gmra.mrb[92].mxu0 %vm574_vm1, %v1360_v50  ;;  %5418 = vmatmul.mubr.msk.bf16.gmra.mrb[120].mxu1 %vm574_vm1, %v1629_v52 }
 0x2f7   : > { %1528 = vmatprep.mubr.bf16.mxu0 %v9989_v0  ;;  %1761 = vmatprep.mubr.bf16.mxu1 %v9989_v0 }
 0x2fe   : > { %5407 = vmatmul.mubr.msk.bf16.gmra.mrb[96].mxu0 %vm574_vm1, %v1361_v53  ;;  %5419 = vmatmul.mubr.msk.bf16.gmra.mrb[124].mxu1 %vm574_vm1, %v1630_v51  ;;  %v1377_v51 = vpop.trf.xlu0 }
 0x2ff   : > { %1538 = vmatprep.mubr.bf16.mxu0 %v9989_v0  ;;  %1771 = vmatprep.mubr.bf16.mxu1 %v9989_v0 }
 0x306   : > { %5408 = vmatmul.mubr.msk.bf16.gmra.mrb[100].mxu0 %vm574_vm1, %v1370_v54  ;;  %5420 = vmatmul.mubr.msk.bf16.gmra.mrb[128].mxu1 %vm574_vm1, %v1631_v55  ;;  %v1646_v54 = vpop.trf.xlu1 }
 0x307   : > { %1548 = vmatprep.mubr.bf16.mxu0 %v9989_v0  ;;  %1781 = vmatprep.mubr.bf16.mxu1 %v9989_v0 }
 0x30e   : > { %5409 = vmatmul.mubr.msk.bf16.gmra.mrb[104].mxu0 %vm574_vm1, %v1371_v56  ;;  %5421 = vmatmul.mubr.msk.bf16.gmra.mrb[132].mxu1 %vm574_vm1, %v1632_v57 }
 0x30f   : > { %1558 = vmatprep.mubr.bf16.mxu0 %v9989_v0  ;;  %1791 = vmatprep.mubr.bf16.mxu1 %v9989_v0 }
 0x316   : > { %5410 = vmatmul.mubr.msk.bf16.gmra.mrb[108].mxu0 %vm574_vm1, %v1372_v58  ;;  %5422 = vmatmul.mubr.msk.bf16.gmra.mrb[136].mxu1 %vm574_vm1, %v1633_v59 }
 0x317   : > { %1568 = vmatprep.mubr.bf16.mxu0 %v9989_v0  ;;  %1801 = vmatprep.mubr.bf16.mxu1 %v9989_v0 }
 0x319   : > { %v6814_v60 = vpop.f32.mrb[4].mxu0 }
 0x31a   : > { %v6816_v61 = vpop.f32.mrb[5].mxu0 }
 0x31b   : > { %v6818_v63 = vpop.f32.mrb[6].mxu0  ;;  %v1892_v3 = vmax.f32 %v6814_v60, %v6816_v61 }
 0x31c   : > { %v6822_v4 = vpop.f32.mrb[7].mxu0 }
 0x31d   : > { %1893 = vmax.xlane.f32.xlu0 %v1892_v3  ;;  %v1895_v10 = vmax.f32 %v6818_v63, %v6822_v4 }
 0x31e   : > { %5411 = vmatmul.mubr.msk.bf16.gmra.mrb[112].mxu0 %vm574_vm1, %v1373_v62  ;;  %5423 = vmatmul.mubr.msk.bf16.gmra.mrb[140].mxu1 %vm574_vm1, %v1634_v1 }
 0x31f   : > { %1896 = vmax.xlane.f32.xlu1 %v1895_v10  ;;  %1578 = vmatprep.mubr.bf16.mxu0 %v9989_v0 }
 0x320   : > { %1811 = vmatprep.mubr.bf16.mxu1 %v9989_v0 }
 0x321   : > { %v6830_v11 = vpop.f32.mrb[8].mxu0 }
 0x322   : > { %v6832_v18 = vpop.f32.mrb[9].mxu0 }
 0x323   : > { %v6834_v26 = vpop.f32.mrb[10].mxu0  ;;  %v1898_v34 = vmax.f32 %v6830_v11, %v6832_v18 }
 0x324   : > { %v6838_v35 = vpop.f32.mrb[11].mxu0 }
 0x325   : > { %1899 = vmax.xlane.f32.xlu0 %v1898_v34  ;;  %v1901_v36 = vmax.f32 %v6834_v26, %v6838_v35 }
 0x326   : > { %5412 = vmatmul.mubr.msk.bf16.gmra.mrb[116].mxu0 %vm574_vm1, %v1374_v19  ;;  %5424 = vmatmul.mubr.msk.bf16.gmra.mrb[144].mxu1 %vm574_vm1, %v1643_v27 }
 0x327   : > { %1588 = vmatprep.mubr.bf16.mxu0 %v9989_v0  ;;  %1821 = vmatprep.mubr.bf16.mxu1 %v9989_v0 }
 0x329   : > { %v6846_v37 = vpop.f32.mrb[12].mxu0 }
 0x32a   : > { %v6848_v38 = vpop.f32.mrb[13].mxu0 }
 0x32b   : > { %v6850_v40 = vpop.f32.mrb[14].mxu0  ;;  %v1904_v42 = vmax.f32 %v6846_v37, %v6848_v38 }
 0x32c   : > { %v6854_v43 = vpop.f32.mrb[15].mxu0 }
 0x32e   : > { %5413 = vmatmul.mubr.msk.bf16.gmra.mrb[120].mxu0 %vm574_vm1, %v1375_v39  ;;  %5425 = vmatmul.mubr.msk.bf16.gmra.mrb[148].mxu1 %vm574_vm1, %v1644_v41  ;;  %v1647_v39 = vpop.trf.xlu1 }
 0x32f   : > { %1598 = vmatprep.mubr.bf16.mxu0 %v9989_v0  ;;  %1831 = vmatprep.mubr.bf16.mxu1 %v9989_v0 }
 0x331   : > { %v6862_v45 = vpop.f32.mrb[16].mxu0 }
 0x332   : > { %v6864_v46 = vpop.f32.mrb[17].mxu0  ;;  %v1648_v33 = vpop.trf.xlu1 }
 0x333   : > { %v6866_v48 = vpop.f32.mrb[18].mxu0  ;;  %v10349_v12 = vmax.f32 %v6862_v45, %v6864_v46 }
 0x334   : > { %v6870_v52 = vpop.f32.mrb[19].mxu0 }
 0x335   : > { %v1913_v53 = vmax.f32 %v6866_v48, %v6870_v52 }
 0x336   : > { %5414 = vmatmul.mubr.msk.bf16.gmra.mrb[124].mxu0 %vm574_vm1, %v1376_v47  ;;  %5426 = vmatmul.mubr.msk.bf16.gmra.mrb[152].mxu1 %vm574_vm1, %v1645_v49 }
 0x337   : > { %1608 = vmatprep.mubr.bf16.mxu0 %v9989_v0  ;;  %1841 = vmatprep.mubr.bf16.mxu1 %v9989_v0 }
 0x339   : > { %v6878_v55 = vpop.f32.mrb[20].mxu0  ;;  %v6880_v56 = vpop.f32.mrb[48].mxu1 }
 0x33a   : > { %v6882_v57 = vpop.f32.mrb[21].mxu0  ;;  %v6884_v58 = vpop.f32.mrb[49].mxu1 }
 0x33b   : > { %10335 = vst [vmem:[#allocation17_spill] sm:$0xff] %v6882_v57  ;;  %v6886_v59 = vpop.f32.mrb[22].mxu0  ;;  %v6888_v62 = vpop.f32.mrb[50].mxu1  ;;  %v1988_v1 = vmax.f32 %v6880_v56, %v6884_v58 }
 0x33c   : > { %v6894_v10 = vpop.f32.mrb[23].mxu0  ;;  %v6896_v19 = vpop.f32.mrb[51].mxu1 }
 0x33d   : > { %1989 = vmax.xlane.f32.xlu0 %v1988_v1  ;;  %v1991_v27 = vmax.f32 %v6888_v62, %v6896_v19  ;;  %v1919_v34 = vmax.f32 %v6886_v59, %v6894_v10 }
 0x33e   : > { %5415 = vmatmul.mubr.msk.bf16.gmra.mrb[128].mxu0 %vm574_vm1, %v1377_v51  ;;  %5427 = vmatmul.mubr.msk.bf16.gmra.mrb[156].mxu1 %vm574_vm1, %v1646_v54 }
 0x33f   : > { %3724 = vmatprep.mubr.bf16.mxu0 %v3557_v9  ;;  %1851 = vmatprep.mubr.bf16.mxu1 %v9989_v0 }
 0x341   : > { %v6908_v41 = vpop.f32.mrb[24].mxu0  ;;  %1902 = vmax.xlane.f32.xlu0 %v1901_v36  ;;  %v6910_v47 = vpop.f32.mrb[52].mxu1 }
 0x342   : > { %10336 = vst [vmem:[#allocation18_spill] sm:$0xff] %v6908_v41  ;;  %v6912_v49 = vpop.f32.mrb[25].mxu0  ;;  %v6914_v1 = vpop.f32.mrb[53].mxu1 }
 0x343   : > { %10337 = vst [vmem:[#allocation19_spill] sm:$0xff] %v6912_v49  ;;  %v6916_v31 = vpop.f32.mrb[26].mxu0  ;;  %v6918_v51 = vpop.f32.mrb[54].mxu1  ;;  %v1994_v5 = vmax.f32 %v6910_v47, %v6914_v1 }
 0x344   : > { %v6924_v9 = vpop.f32.mrb[27].mxu0  ;;  %v6926_v54 = vpop.f32.mrb[55].mxu1 }
 0x345   : > { %1992 = vmax.xlane.f32.xlu0 %v1991_v27  ;;  %v1997_v36 = vmax.f32 %v6918_v51, %v6926_v54  ;;  %v1925_v23 = vmax.f32 %v6916_v31, %v6924_v9 }
 0x346   : > { %5428 = vmatmul.mubr.msk.bf16.gmra.mrb[160].mxu1 %vm574_vm1, %v1647_v39 }
 0x347   : > { %1998 = vmax.xlane.f32.xlu1 %v1997_v36  ;;  %1861 = vmatprep.mubr.bf16.mxu1 %v9989_v0  ;;  %v10343_v36 = vmax.f32 %v6850_v40, %v6854_v43 }
 0x349   : > { %v6934_v15 = vpop.f32.mrb[28].mxu0  ;;  %1905 = vmax.xlane.f32.xlu0 %v1904_v42  ;;  %v6936_v25 = vpop.f32.mrb[56].mxu1 }
 0x34a   : > { %10338 = vst [vmem:[#allocation20_spill] sm:$0xff] %v6934_v15  ;;  %v6938_v7 = vpop.f32.mrb[29].mxu0  ;;  %v6940_v27 = vpop.f32.mrb[57].mxu1 }
 0x34b   : > { %10339 = vst [vmem:[#allocation21_spill] sm:$0xff] %v6938_v7  ;;  %v6942_v8 = vpop.f32.mrb[30].mxu0  ;;  %1914 = vmax.xlane.f32.xlu1 %v1913_v53  ;;  %v6944_v17 = vpop.f32.mrb[58].mxu1  ;;  %v2000_v39 = vmax.f32 %v6936_v25, %v6940_v27 }
 0x34c   : > { %10340 = vst [vmem:[#allocation22_spill] sm:$0xff] %v6942_v8  ;;  %v6950_v3 = vpop.f32.mrb[31].mxu0  ;;  %v6952_v42 = vpop.f32.mrb[59].mxu1 }
 0x34d   : > { %10341 = vst [vmem:[#allocation23_spill] sm:$0xff] %v6950_v3  ;;  %1995 = vmax.xlane.f32.xlu0 %v1994_v5  ;;  %v2003_v50 = vmax.f32 %v6944_v17, %v6952_v42  ;;  %v1931_v44 = vmax.f32 %v6942_v8, %v6950_v3  ;;  %v1649_v53 = vpop.trf.xlu1 }
 0x34e   : > { %5429 = vmatmul.mubr.msk.bf16.gmra.mrb[164].mxu1 %vm574_vm1, %v1648_v33 }
 0x34f   : > { %2004 = vmax.xlane.f32.xlu1 %v2003_v50  ;;  %1871 = vmatprep.mubr.bf16.mxu1 %v9989_v0 }
 0x351   : > { %v6960_v28 = vpop.f32.mrb[32].mxu0  ;;  %1908 = vmax.xlane.f32.xlu0 %v10343_v36  ;;  %v6965_v30 = vpop.f32.mrb[60].mxu1 }
 0x352   : > { %10342 = vst [vmem:[#allocation24_spill] sm:$0xff] %v6960_v28  ;;  %10344 = vst [vmem:[#allocation25_spill] sm:$0xff] %v6965_v30  ;;  %v6967_v5 = vpop.f32.mrb[33].mxu0  ;;  %v6969_v20 = vpop.f32.mrb[61].mxu1 }
 0x353   : > { %10345 = vst [vmem:[#allocation26_spill] sm:$0xff] %v6967_v5  ;;  %10346 = vst [vmem:[#allocation27_spill] sm:$0xff] %v6969_v20  ;;  %v6971_v22 = vpop.f32.mrb[34].mxu0  ;;  %1920 = vmax.xlane.f32.xlu1 %v1919_v34  ;;  %v6973_v33 = vpop.f32.mrb[62].mxu1  ;;  %v2006_v50 = vmax.f32 %v6965_v30, %v6969_v20 }
 0x354   : > { %10347 = vst [vmem:[#allocation28_spill] sm:$0xff] %v6971_v22  ;;  %v6979_v29 = vpop.f32.mrb[35].mxu0  ;;  %v6981_v36 = vpop.f32.mrb[63].mxu1 }
 0x355   : > { %10348 = vst [vmem:[#allocation29_spill] sm:$0xff] %v6979_v29  ;;  %v1937_v32 = vmax.f32 %v6971_v22, %v6979_v29  ;;  %1911 = vmax.xlane.f32.xlu0 %v10349_v12  ;;  %v2009_v34 = vmax.f32 %v6973_v33, %v6981_v36  ;;  %v1650_v0 = vpop.trf.xlu1  ;;  %v10359_v22 = vmax.f32 %v6878_v55, %v6882_v57 }
 0x356   : > { %5430 = vmatmul.mubr.msk.bf16.gmra.mrb[168].mxu1 %vm574_vm1, %v1649_v53 }
 0x357   : > { %2010 = vmax.xlane.f32.xlu1 %v2009_v34  ;;  %1881 = vmatprep.mubr.bf16.mxu1 %v10350_v14 }
 0x359   : > { %2001 = vmax.xlane.f32.xlu0 %v2000_v39  ;;  %v6992_v21 = vpop.f32.mrb[64].mxu1  ;;  %v6994_v24 = vpop.f32.mrb[36].mxu0 }
 0x35a   : > { %10351 = vst [vmem:[#allocation30_spill] sm:$0xff] %v6992_v21  ;;  %10352 = vst [vmem:[#allocation31_spill] sm:$0xff] %v6994_v24  ;;  %v6996_v2 = vpop.f32.mrb[65].mxu1  ;;  %v6998_v6 = vpop.f32.mrb[37].mxu0 }
 0x35b   : > { %10353 = vst [vmem:[#allocation32_spill] sm:$0xff] %v6996_v2  ;;  %10354 = vst [vmem:[#allocation33_spill] sm:$0xff] %v6998_v6  ;;  %1926 = vmax.xlane.f32.xlu1 %v1925_v23  ;;  %v7000_v12 = vpop.f32.mrb[66].mxu1  ;;  %v2012_v29 = vmax.f32 %v6992_v21, %v6996_v2  ;;  %v7004_v53 = vpop.f32.mrb[38].mxu0  ;;  %v10360_v2 = vpack.c.bf16 %v6726_v16, %v6720_v13 }
 0x35c   : > { %10355 = vst [vmem:[#allocation34_spill] sm:$0xff] %v7000_v12  ;;  %10356 = vst [vmem:[#allocation35_spill] sm:$0xff] %v7004_v53  ;;  %v7008_v39 = vpop.f32.mrb[67].mxu1  ;;  %v7010_v34 = vpop.f32.mrb[39].mxu0 }
 0x35d   : > { %10357 = vst [vmem:[#allocation36_spill] sm:$0xff] %v7008_v39  ;;  %10358 = vst [vmem:[#allocation37_spill] sm:$0xff] %v7010_v34  ;;  %1917 = vmax.xlane.f32.xlu0 %v10359_v22  ;;  %v2015_v23 = vmax.f32 %v7000_v12, %v7008_v39  ;;  %v1943_v3 = vmax.f32 %v7004_v53, %v7010_v34 }
 0x35e   : > { %5431 = vmatmul.mubr.msk.bf16.gmra.mrb[172].mxu1 %vm574_vm1, %v1650_v0  ;;  %vm5135_vm1 = vcmask 523264  }
 0x35f   : > { %3767 = vmatprep.mubr.bf16.mxu1 %v10360_v2  ;;  %2016 = vmax.xlane.f32.xlu1 %v2015_v23 }
 0x361   : > { %2007 = vmax.xlane.f32.xlu0 %v2006_v50  ;;  %v7023_v14 = vpop.f32.mrb[68].mxu1  ;;  %v7025_v21 = vpop.f32.mrb[40].mxu0 }
 0x362   : > { %10361 = vst [vmem:[#allocation38_spill] sm:$0xff] %v7023_v14  ;;  %10362 = vst [vmem:[#allocation39_spill] sm:$0xff] %v7025_v21  ;;  %v7027_v8 = vpop.f32.mrb[69].mxu1  ;;  %v7029_v22 = vpop.f32.mrb[41].mxu0 }
 0x363   : > { %10363 = vst [vmem:[#allocation40_spill] sm:$0xff] %v7027_v8  ;;  %10364 = vst [vmem:[#allocation41_spill] sm:$0xff] %v7029_v22  ;;  %1932 = vmax.xlane.f32.xlu1 %v1931_v44  ;;  %v7031_v20 = vpop.f32.mrb[70].mxu1  ;;  %v2018_v0 = vmax.f32 %v7023_v14, %v7027_v8  ;;  %v7035_v34 = vpop.f32.mrb[42].mxu0  ;;  %v10369_v44 = vmax.f32 %v6908_v41, %v6912_v49 }
 0x364   : > { %10365 = vst [vmem:[#allocation42_spill] sm:$0xff] %v7031_v20  ;;  %10366 = vst [vmem:[#allocation43_spill] sm:$0xff] %v7035_v34  ;;  %v7039_v13 = vpop.f32.mrb[71].mxu1  ;;  %v7041_v16 = vpop.f32.mrb[43].mxu0 }
 0x365   : > { %10367 = vst [vmem:[#allocation44_spill] sm:$0xff] %v7039_v13  ;;  %10368 = vst [vmem:[#allocation45_spill] sm:$0xff] %v7041_v16  ;;  %v2021_v50 = vmax.f32 %v7031_v20, %v7039_v13  ;;  %1923 = vmax.xlane.f32.xlu0 %v10369_v44  ;;  %v1949_v23 = vmax.f32 %v7035_v34, %v7041_v16 }
 0x367   : > { %2022 = vmax.xlane.f32.xlu1 %v2021_v50 }
 0x369   : > { %2013 = vmax.xlane.f32.xlu0 %v2012_v29  ;;  %v7050_v53 = vpop.f32.mrb[72].mxu1  ;;  %v7052_v8 = vpop.f32.mrb[44].mxu0 }
 0x36a   : > { %10370 = vst [vmem:[#allocation46_spill] sm:$0xff] %v7050_v53  ;;  %10371 = vst [vmem:[#allocation47_spill] sm:$0xff] %v7052_v8  ;;  %v7054_v2 = vpop.f32.mrb[73].mxu1  ;;  %v7056_v14 = vpop.f32.mrb[45].mxu0 }
 0x36b   : > { %10372 = vst [vmem:[#allocation48_spill] sm:$0xff] %v7054_v2  ;;  %10373 = vst [vmem:[#allocation49_spill] sm:$0xff] %v7056_v14  ;;  %1938 = vmax.xlane.f32.xlu1 %v1937_v32  ;;  %v7058_v30 = vpop.f32.mrb[74].mxu1  ;;  %v2024_v13 = vmax.f32 %v7050_v53, %v7054_v2  ;;  %v7062_v44 = vpop.f32.mrb[46].mxu0  ;;  %v10378_v32 = vmax.f32 %v6934_v15, %v6938_v7 }
 0x36c   : > { %10374 = vst [vmem:[#allocation50_spill] sm:$0xff] %v7058_v30  ;;  %10375 = vst [vmem:[#allocation51_spill] sm:$0xff] %v7062_v44  ;;  %v7066_v29 = vpop.f32.mrb[75].mxu1  ;;  %v7068_v16 = vpop.f32.mrb[47].mxu0 }
 0x36d   : > { %10376 = vst [vmem:[#allocation52_spill] sm:$0xff] %v7066_v29  ;;  %10377 = vst [vmem:[#allocation53_spill] sm:$0xff] %v7068_v16  ;;  %v2027_v34 = vmax.f32 %v7058_v30, %v7066_v29  ;;  %1929 = vmax.xlane.f32.xlu0 %v10378_v32  ;;  %v1955_v20 = vmax.f32 %v7062_v44, %v7068_v16 }
 0x36f   : > { %2028 = vmax.xlane.f32.xlu1 %v2027_v34 }
 0x371   : > { %2019 = vmax.xlane.f32.xlu0 %v2018_v0  ;;  %v7077_v2 = vpop.f32.mrb[76].mxu1  ;;  %v7079_v53 = vpop.f32.mrb[48].mxu0 }
 0x372   : > { %10379 = vst [vmem:[#allocation54_spill] sm:$0xff] %v7077_v2  ;;  %10380 = vst [vmem:[#allocation55_spill] sm:$0xff] %v7079_v53  ;;  %v7081_v50 = vpop.f32.mrb[77].mxu1  ;;  %v7083_v49 = vpop.f32.mrb[49].mxu0 }
 0x373   : > { %10381 = vst [vmem:[#allocation56_spill] sm:$0xff] %v7081_v50  ;;  %10382 = vst [vmem:[#allocation57_spill] sm:$0xff] %v7083_v49  ;;  %1944 = vmax.xlane.f32.xlu1 %v1943_v3  ;;  %v7085_v41 = vpop.f32.mrb[78].mxu1  ;;  %v2030_v29 = vmax.f32 %v7077_v2, %v7081_v50  ;;  %v7091_v16 = vpop.f32.mrb[50].mxu0  ;;  %v10387_v3 = vmax.f32 %v6960_v28, %v6967_v5 }
 0x374   : > { %10383 = vst [vmem:[#allocation58_spill] sm:$0xff] %v7085_v41  ;;  %10384 = vst [vmem:[#allocation59_spill] sm:$0xff] %v7091_v16  ;;  %v7093_v34 = vpop.f32.mrb[79].mxu1  ;;  %v7095_v0 = vpop.f32.mrb[51].mxu0 }
 0x375   : > { %10385 = vst [vmem:[#allocation60_spill] sm:$0xff] %v7093_v34  ;;  %10386 = vst [vmem:[#allocation61_spill] sm:$0xff] %v7095_v0  ;;  %v2033_v44 = vmax.f32 %v7085_v41, %v7093_v34  ;;  %1935 = vmax.xlane.f32.xlu0 %v10387_v3  ;;  %v1961_v30 = vmax.f32 %v7091_v16, %v7095_v0 }
 0x377   : > { %2034 = vmax.xlane.f32.xlu1 %v2033_v44 }
 0x379   : > { %2025 = vmax.xlane.f32.xlu0 %v2024_v13  ;;  %v7104_v50 = vpop.f32.mrb[80].mxu1  ;;  %v7106_v32 = vpop.f32.mrb[52].mxu0 }
 0x37a   : > { %10388 = vst [vmem:[#allocation62_spill] sm:$0xff] %v7104_v50  ;;  %10389 = vst [vmem:[#allocation63_spill] sm:$0xff] %v7106_v32  ;;  %v7108_v2 = vpop.f32.mrb[81].mxu1  ;;  %v7110_v7 = vpop.f32.mrb[53].mxu0 }
 0x37b   : > { %10390 = vst [vmem:[#allocation64_spill] sm:$0xff] %v7108_v2  ;;  %10391 = vst [vmem:[#allocation65_spill] sm:$0xff] %v7110_v7  ;;  %1950 = vmax.xlane.f32.xlu1 %v1949_v23  ;;  %v7112_v15 = vpop.f32.mrb[82].mxu1  ;;  %v2036_v34 = vmax.f32 %v7104_v50, %v7108_v2  ;;  %v7118_v0 = vpop.f32.mrb[54].mxu0  ;;  %v10396_v23 = vmax.f32 %v6994_v24, %v6998_v6  ;;  %v10405_v6 = vmax.f32 %v7025_v21, %v7029_v22 }
 0x37c   : > { %10392 = vst [vmem:[#allocation66_spill] sm:$0xff] %v7112_v15  ;;  %10393 = vst [vmem:[#allocation67_spill] sm:$0xff] %v7118_v0  ;;  %v7120_v13 = vpop.f32.mrb[83].mxu1  ;;  %v7122_v44 = vpop.f32.mrb[55].mxu0  ;;  %v10414_v22 = vmax.f32 %v7052_v8, %v7056_v14  ;;  %v10423_v14 = vmax.f32 %v7079_v53, %v7083_v49  ;;  %v10432_v49 = vmax.f32 %v7106_v32, %v7110_v7 }
 0x37d   : > { %10394 = vst [vmem:[#allocation68_spill] sm:$0xff] %v7120_v13  ;;  %10395 = vst [vmem:[#allocation69_spill] sm:$0xff] %v7122_v44  ;;  %v2039_v16 = vmax.f32 %v7112_v15, %v7120_v13  ;;  %1941 = vmax.xlane.f32.xlu0 %v10396_v23  ;;  %v1967_v41 = vmax.f32 %v7118_v0, %v7122_v44 }
 0x37f   : > { %2040 = vmax.xlane.f32.xlu1 %v2039_v16 }
 0x381   : > { %2031 = vmax.xlane.f32.xlu0 %v2030_v29  ;;  %v7131_v2 = vpop.f32.mrb[84].mxu1  ;;  %v7133_v3 = vpop.f32.mrb[56].mxu0 }
 0x382   : > { %10397 = vst [vmem:[#allocation70_spill] sm:$0xff] %v7131_v2  ;;  %10398 = vst [vmem:[#allocation71_spill] sm:$0xff] %v7133_v3  ;;  %v7135_v50 = vpop.f32.mrb[85].mxu1  ;;  %v7137_v5 = vpop.f32.mrb[57].mxu0 }
 0x383   : > { %10399 = vst [vmem:[#allocation72_spill] sm:$0xff] %v7135_v50  ;;  %10400 = vst [vmem:[#allocation73_spill] sm:$0xff] %v7137_v5  ;;  %v2042_v13 = vmax.f32 %v7131_v2, %v7135_v50  ;;  %1956 = vmax.xlane.f32.xlu1 %v1955_v20  ;;  %v7141_v15 = vpop.f32.mrb[86].mxu1  ;;  %v7145_v44 = vpop.f32.mrb[58].mxu0  ;;  %v10441_v32 = vmax.f32 %v7133_v3, %v7137_v5 }
 0x384   : > { %10401 = vst [vmem:[#allocation74_spill] sm:$0xff] %v7141_v15  ;;  %10402 = vst [vmem:[#allocation75_spill] sm:$0xff] %v7145_v44  ;;  %v7147_v16 = vpop.f32.mrb[87].mxu1  ;;  %v7149_v29 = vpop.f32.mrb[59].mxu0 }
 0x385   : > { %10403 = vst [vmem:[#allocation76_spill] sm:$0xff] %v7147_v16  ;;  %10404 = vst [vmem:[#allocation77_spill] sm:$0xff] %v7149_v29  ;;  %v2045_v0 = vmax.f32 %v7141_v15, %v7147_v16  ;;  %1947 = vmax.xlane.f32.xlu0 %v10405_v6  ;;  %v1973_v20 = vmax.f32 %v7145_v44, %v7149_v29 }
 0x387   : > { %2046 = vmax.xlane.f32.xlu1 %v2045_v0 }
 0x389   : > { %2037 = vmax.xlane.f32.xlu0 %v2036_v34  ;;  %v7158_v50 = vpop.f32.mrb[88].mxu1  ;;  %v7160_v23 = vpop.f32.mrb[60].mxu0 }
 0x38a   : > { %10406 = vst [vmem:[#allocation78_spill] sm:$0xff] %v7158_v50  ;;  %10407 = vst [vmem:[#allocation79_spill] sm:$0xff] %v7160_v23  ;;  %v7162_v2 = vpop.f32.mrb[89].mxu1  ;;  %v7164_v24 = vpop.f32.mrb[61].mxu0 }
 0x38b   : > { %10408 = vst [vmem:[#allocation80_spill] sm:$0xff] %v7162_v2  ;;  %10409 = vst [vmem:[#allocation81_spill] sm:$0xff] %v7164_v24  ;;  %v2048_v16 = vmax.f32 %v7158_v50, %v7162_v2  ;;  %1962 = vmax.xlane.f32.xlu1 %v1961_v30  ;;  %v7168_v15 = vpop.f32.mrb[90].mxu1  ;;  %v7172_v29 = vpop.f32.mrb[62].mxu0 }
 0x38c   : > { %10410 = vst [vmem:[#allocation82_spill] sm:$0xff] %v7168_v15  ;;  %10411 = vst [vmem:[#allocation83_spill] sm:$0xff] %v7172_v29  ;;  %v7174_v34 = vpop.f32.mrb[91].mxu1  ;;  %v7176_v0 = vpop.f32.mrb[63].mxu0 }
 0x38d   : > { %10412 = vst [vmem:[#allocation84_spill] sm:$0xff] %v7174_v34  ;;  %10413 = vst [vmem:[#allocation85_spill] sm:$0xff] %v7176_v0  ;;  %v2051_v44 = vmax.f32 %v7168_v15, %v7174_v34  ;;  %1953 = vmax.xlane.f32.xlu0 %v10414_v22  ;;  %v1979_v30 = vmax.f32 %v7172_v29, %v7176_v0 }
 0x38f   : > { %2052 = vmax.xlane.f32.xlu1 %v2051_v44 }
 0x391   : > { %2043 = vmax.xlane.f32.xlu0 %v2042_v13  ;;  %v7185_v2 = vpop.f32.mrb[92].mxu1  ;;  %v7187_v6 = vpop.f32.mrb[64].mxu0 }
 0x392   : > { %10415 = vst [vmem:[#allocation86_spill] sm:$0xff] %v7185_v2  ;;  %10416 = vst [vmem:[#allocation87_spill] sm:$0xff] %v7187_v6  ;;  %v7189_v50 = vpop.f32.mrb[93].mxu1  ;;  %v7191_v21 = vpop.f32.mrb[65].mxu0 }
 0x393   : > { %10417 = vst [vmem:[#allocation88_spill] sm:$0xff] %v7189_v50  ;;  %10418 = vst [vmem:[#allocation89_spill] sm:$0xff] %v7191_v21  ;;  %v2054_v34 = vmax.f32 %v7185_v2, %v7189_v50  ;;  %1968 = vmax.xlane.f32.xlu1 %v1967_v41  ;;  %v7195_v15 = vpop.f32.mrb[94].mxu1  ;;  %v7199_v0 = vpop.f32.mrb[66].mxu0 }
 0x394   : > { %10419 = vst [vmem:[#allocation90_spill] sm:$0xff] %v7195_v15  ;;  %10420 = vst [vmem:[#allocation91_spill] sm:$0xff] %v7199_v0  ;;  %v7201_v13 = vpop.f32.mrb[95].mxu1  ;;  %v7203_v44 = vpop.f32.mrb[67].mxu0 }
 0x395   : > { %10421 = vst [vmem:[#allocation92_spill] sm:$0xff] %v7201_v13  ;;  %10422 = vst [vmem:[#allocation93_spill] sm:$0xff] %v7203_v44  ;;  %v2057_v29 = vmax.f32 %v7195_v15, %v7201_v13  ;;  %1959 = vmax.xlane.f32.xlu0 %v10423_v14  ;;  %v1985_v41 = vmax.f32 %v7199_v0, %v7203_v44 }
 0x397   : > { %2058 = vmax.xlane.f32.xlu1 %v2057_v29 }
 0x399   : > { %2049 = vmax.xlane.f32.xlu0 %v2048_v16  ;;  %v7212_v50 = vpop.f32.mrb[96].mxu1  ;;  %v7214_v22 = vpop.f32.mrb[68].mxu0 }
 0x39a   : > { %10424 = vst [vmem:[#allocation94_spill] sm:$0xff] %v7212_v50  ;;  %10425 = vst [vmem:[#allocation95_spill] sm:$0xff] %v7214_v22  ;;  %v7216_v2 = vpop.f32.mrb[97].mxu1  ;;  %v7218_v8 = vpop.f32.mrb[69].mxu0 }
 0x39b   : > { %10426 = vst [vmem:[#allocation96_spill] sm:$0xff] %v7216_v2  ;;  %10427 = vst [vmem:[#allocation97_spill] sm:$0xff] %v7218_v8  ;;  %v2060_v13 = vmax.f32 %v7212_v50, %v7216_v2  ;;  %1974 = vmax.xlane.f32.xlu1 %v1973_v20  ;;  %v7222_v15 = vpop.f32.mrb[98].mxu1  ;;  %v7226_v44 = vpop.f32.mrb[70].mxu0 }
 0x39c   : > { %10428 = vst [vmem:[#allocation98_spill] sm:$0xff] %v7222_v15  ;;  %10429 = vst [vmem:[#allocation99_spill] sm:$0xff] %v7226_v44  ;;  %v7228_v16 = vpop.f32.mrb[99].mxu1  ;;  %v7230_v29 = vpop.f32.mrb[71].mxu0 }
 0x39d   : > { %10430 = vst [vmem:[#allocation100_spill] sm:$0xff] %v7228_v16  ;;  %10431 = vst [vmem:[#allocation101_spill] sm:$0xff] %v7230_v29  ;;  %v2063_v0 = vmax.f32 %v7222_v15, %v7228_v16  ;;  %1965 = vmax.xlane.f32.xlu0 %v10432_v49 }
 0x39f   : > { %2064 = vmax.xlane.f32.xlu1 %v2063_v0 }
 0x3a1   : > { %2055 = vmax.xlane.f32.xlu0 %v2054_v34  ;;  %v7239_v2 = vpop.f32.mrb[100].mxu1  ;;  %v7241_v14 = vpop.f32.mrb[72].mxu0 }
 0x3a2   : > { %10433 = vst [vmem:[#allocation102_spill] sm:$0xff] %v7239_v2  ;;  %10434 = vst [vmem:[#allocation103_spill] sm:$0xff] %v7241_v14  ;;  %v7243_v50 = vpop.f32.mrb[101].mxu1  ;;  %v7245_v53 = vpop.f32.mrb[73].mxu0 }
 0x3a3   : > { %10435 = vst [vmem:[#allocation104_spill] sm:$0xff] %v7243_v50  ;;  %10436 = vst [vmem:[#allocation105_spill] sm:$0xff] %v7245_v53  ;;  %v2066_v16 = vmax.f32 %v7239_v2, %v7243_v50  ;;  %1980 = vmax.xlane.f32.xlu1 %v1979_v30  ;;  %v7249_v15 = vpop.f32.mrb[102].mxu1  ;;  %v7253_v20 = vpop.f32.mrb[74].mxu0 }
 0x3a4   : > { %10437 = vst [vmem:[#allocation106_spill] sm:$0xff] %v7249_v15  ;;  %10438 = vst [vmem:[#allocation107_spill] sm:$0xff] %v7253_v20  ;;  %v7255_v34 = vpop.f32.mrb[103].mxu1  ;;  %v7257_v0 = vpop.f32.mrb[75].mxu0 }
 0x3a5   : > { %10439 = vst [vmem:[#allocation108_spill] sm:$0xff] %v7255_v34  ;;  %10440 = vst [vmem:[#allocation109_spill] sm:$0xff] %v7257_v0  ;;  %v2069_v7 = vmax.f32 %v7249_v15, %v7255_v34  ;;  %1971 = vmax.xlane.f32.xlu0 %v10441_v32 }
 0x3a7   : > { %2070 = vmax.xlane.f32.xlu1 %v2069_v7 }
 0x3a9   : > { %2061 = vmax.xlane.f32.xlu0 %v2060_v13  ;;  %v7266_v50 = vpop.f32.mrb[104].mxu1  ;;  %v7268_v49 = vpop.f32.mrb[76].mxu0 }
 0x3aa   : > { %10442 = vst [vmem:[#allocation110_spill] sm:$0xff] %v7266_v50  ;;  %10443 = vst [vmem:[#allocation111_spill] sm:$0xff] %v7268_v49  ;;  %v1894_v2 = vpop.xlane.xlu0 %1893  ;;  %v7270_v28 = vpop.f32.mrb[105].mxu1 }
 0x3ab   : > { %10444 = vst [vmem:[#allocation112_spill] sm:$0xff] %v7270_v28  ;;  %v2276_v39 = vsub.f32 %v6814_v60, %v1894_v2  ;;  %v2277_v34 = vsub.f32 %v6816_v61, %v1894_v2  ;;  %v2072_v15 = vmax.f32 %v7266_v50, %v7270_v28  ;;  %1986 = vmax.xlane.f32.xlu1 %v1985_v41  ;;  %v7276_v32 = vpop.f32.mrb[106].mxu1  ;;  %v7278_v30 = vpop.f32.mrb[77].mxu0 }
 0x3ac   : > { %10445 = vst [vmem:[#allocation113_spill] sm:$0xff] %v7276_v32  ;;  %10446 = vst [vmem:[#allocation114_spill] sm:$0xff] %v7278_v30  ;;  %v1897_v7 = vpop.xlane.xlu1 %1896  ;;  %v7280_v13 = vpop.f32.mrb[107].mxu1  ;;  %v10448_v2 = vmax.f32 %v7160_v23, %v7164_v24 }
 0x3ad   : > { %10447 = vst [vmem:[#allocation115_spill] sm:$0xff] %v7280_v13  ;;  %v2532_v3 = vmul.f32 1.442695, %v2276_v39  ;;  %v2534_v12 = vmul.f32 1.442695, %v2277_v34  ;;  %v2278_v60 = vsub.f32 %v6818_v63, %v1897_v7  ;;  %v2279_v61 = vsub.f32 %v6822_v4, %v1897_v7  ;;  %v7289_v41 = vpop.f32.mrb[78].mxu0 }
 0x3ae   : > { %1977 = vmax.xlane.f32.xlu0 %v10448_v2  ;;  %10449 = vst [vmem:[#allocation116_spill] sm:$0xff] %v7289_v41  ;;  %v2075_v28 = vmax.f32 %v7276_v32, %v7280_v13  ;;  %v7293_v50 = vpop.f32.mrb[79].mxu0 }
 0x3af   : > { %10450 = vst [vmem:[#allocation117_spill] sm:$0xff] %v7293_v50  ;;  %5605 = vpow2.f32 %v2532_v3  ;;  %v2536_v57 = vmul.f32 1.442695, %v2278_v60  ;;  %v2538_v5 = vmul.f32 1.442695, %v2279_v61 }
 0x3b0   : > { %5607 = vpow2.f32 %v2534_v12  ;;  %2076 = vmax.xlane.f32.xlu1 %v2075_v28 }
 0x3b1   : > { %5609 = vpow2.f32 %v2536_v57  ;;  %v7297_v63 = vpop.f32.mrb[108].mxu1  ;;  %v7299_v4 = vpop.f32.mrb[80].mxu0 }
 0x3b2   : > { %2067 = vmax.xlane.f32.xlu0 %v2066_v16  ;;  %10451 = vst [vmem:[#allocation118_spill] sm:$0xff] %v7297_v63  ;;  %10452 = vst [vmem:[#allocation119_spill] sm:$0xff] %v7299_v4  ;;  %5611 = vpow2.f32 %v2538_v5  ;;  %v1900_v34 = vpop.xlane.xlu0 %1899  ;;  %v7301_v7 = vpop.f32.mrb[109].mxu1 }
 0x3b3   : > { %10453 = vst [vmem:[#allocation120_spill] sm:$0xff] %v7301_v7  ;;  %v2280_v2 = vsub.f32 %v6830_v11, %v1900_v34  ;;  %v2281_v3 = vsub.f32 %v6832_v18, %v1900_v34  ;;  %v2078_v60 = vmax.f32 %v7297_v63, %v7301_v7  ;;  %v7307_v61 = vpop.f32.mrb[110].mxu1  ;;  %v7309_v28 = vpop.f32.mrb[81].mxu0  ;;  %v10458_v18 = vmax.f32 %v7187_v6, %v7191_v21 }
 0x3b4   : > { %10454 = vst [vmem:[#allocation121_spill] sm:$0xff] %v7307_v61  ;;  %10455 = vst [vmem:[#allocation122_spill] sm:$0xff] %v7309_v28  ;;  %v7311_v57 = vpop.f32.mrb[111].mxu1  ;;  %v7315_v5 = vpop.f32.mrb[82].mxu0  ;;  %v10464_v21 = vmax.f32 %v7226_v44, %v7230_v29  ;;  %v10469_v29 = vmax.f32 %v7253_v20, %v7257_v0 }
 0x3b5   : > { %10456 = vst [vmem:[#allocation123_spill] sm:$0xff] %v7311_v57  ;;  %10457 = vst [vmem:[#allocation124_spill] sm:$0xff] %v7315_v5  ;;  %v2540_v16 = vmul.f32 1.442695, %v2280_v2  ;;  %v2542_v39 = vmul.f32 1.442695, %v2281_v3  ;;  %v2081_v11 = vmax.f32 %v7307_v61, %v7311_v57 }
 0x3b6   : > { %1983 = vmax.xlane.f32.xlu0 %v10458_v18  ;;  %v7322_v34 = vpop.f32.mrb[83].mxu0 }
 0x3b7   : > { %10459 = vst [vmem:[#allocation125_spill] sm:$0xff] %v7322_v34  ;;  %5613 = vpow2.f32 %v2540_v16  ;;  %2082 = vmax.xlane.f32.xlu1 %v2081_v11 }
 0x3b8   : > { %5615 = vpow2.f32 %v2542_v39 }
 0x3b9   : > { %v5606_v12 = vpop.eup %5605  ;;  %v7326_v63 = vpop.f32.mrb[112].mxu1 }
 0x3ba   : > { %2073 = vmax.xlane.f32.xlu0 %v2072_v15  ;;  %10460 = vst [vmem:[#allocation126_spill] sm:$0xff] %v7326_v63  ;;  %v7328_v2 = vpop.f32.mrb[84].mxu0  ;;  %v5608_v3 = vpop.eup %5607 }
 0x3bb   : > { %10461 = vst [vmem:[#allocation127_spill] sm:$0xff] %v7328_v2  ;;  %v7330_v57 = vpop.f32.mrb[113].mxu1  ;;  %v7332_v61 = vpop.f32.mrb[85].mxu0  ;;  %2088 = vmax.xlane.f32.xlu1 %v10464_v21  ;;  %v7345_v7 = vadd.f32 %v5608_v3, %v5606_v12 }
 0x3bc   : > { %10462 = vst [vmem:[#allocation128_spill] sm:$0xff] %v7330_v57  ;;  %10463 = vst [vmem:[#allocation129_spill] sm:$0xff] %v7332_v61  ;;  %v5610_v18 = vpop.eup %5609  ;;  %v2180_v16 = vmax.f32 %v7326_v63, %v7330_v57  ;;  %v7339_v39 = vpop.f32.mrb[114].mxu1 }
 0x3bd   : > { %10465 = vst [vmem:[#allocation130_spill] sm:$0xff] %v7339_v39  ;;  %v7343_v11 = vpop.f32.mrb[86].mxu0  ;;  %v5612_v6 = vpop.eup %5611  ;;  %v3564_v13 = vpack.c.bf16 %v5610_v18, %v5606_v12 }
 0x3be   : > { %10466 = vst [vmem:[#allocation131_spill] sm:$0xff] %v7343_v11  ;;  %v7347_v32 = vpop.f32.mrb[115].mxu1  ;;  %v7349_v24 = vpop.f32.mrb[87].mxu0  ;;  %2079 = vmax.xlane.f32.xlu0 %v2078_v60  ;;  %v3565_v21 = vpack.c.bf16 %v5612_v6, %v5608_v3  ;;  %v7353_v63 = vadd.f32 %v5612_v6, %v5610_v18  ;;  %v10470_v60 = vmax.f32 %v7214_v22, %v7218_v8 }
 0x3bf   : > { %10467 = vst [vmem:[#allocation132_spill] sm:$0xff] %v7347_v32  ;;  %10468 = vst [vmem:[#allocation133_spill] sm:$0xff] %v7349_v24  ;;  %v2183_v57 = vmax.f32 %v7339_v39, %v7347_v32  ;;  %2094 = vmax.xlane.f32.xlu1 %v10469_v29 }
 0x3c0   : > { %3692 = vmatprep.subr.bf16.mxu0 %v3565_v21 }
 0x3c1   : > { %3693 = vmatpush1.bf16.xpose.msra.mxu0 %v3564_v13  ;;  %v7360_v12 = vpop.eup %5613  ;;  %v7365_v3 = vpop.f32.mrb[116].mxu1 }
 0x3c2   : > { %2085 = vmax.xlane.f32.xlu0 %v10470_v60  ;;  %10471 = vst [vmem:[#allocation134_spill] sm:$0xff] %v7365_v3  ;;  %v7367_v32 = vpop.f32.mrb[88].mxu0  ;;  %v7369_v6 = vpop.eup %5615 }
 0x3c3   : > { %10472 = vst [vmem:[#allocation135_spill] sm:$0xff] %v7367_v32  ;;  %v7371_v18 = vpop.f32.mrb[117].mxu1  ;;  %v7373_v21 = vpop.f32.mrb[89].mxu0  ;;  %2184 = vmax.xlane.f32.xlu1 %v2183_v57  ;;  %v7383_v60 = vadd.f32 %v7369_v6, %v7360_v12  ;;  %v10479_v57 = vmax.f32 %v7241_v14, %v7245_v53 }
 0x3c4   : > { %10473 = vst [vmem:[#allocation136_spill] sm:$0xff] %v7371_v18  ;;  %10474 = vst [vmem:[#allocation137_spill] sm:$0xff] %v7373_v21  ;;  %v2186_v29 = vmax.f32 %v7365_v3, %v7371_v18  ;;  %v7377_v13 = vpop.f32.mrb[118].mxu1  ;;  %v7385_v39 = vpop.f32.mrb[90].mxu0  ;;  %v10480_v3 = vmax.f32 %v7289_v41, %v7293_v50  ;;  %v10488_v41 = vmax.f32 %v7268_v49, %v7278_v30 }
 0x3c5   : > { %10475 = vst [vmem:[#allocation138_spill] sm:$0xff] %v7377_v13  ;;  %10476 = vst [vmem:[#allocation139_spill] sm:$0xff] %v7385_v39  ;;  %v7387_v8 = vpop.f32.mrb[119].mxu1  ;;  %v7389_v22 = vpop.f32.mrb[91].mxu0  ;;  %v10490_v30 = vmax.f32 %v7315_v5, %v7322_v34 }
 0x3c6   : > { %10477 = vst [vmem:[#allocation140_spill] sm:$0xff] %v7387_v8  ;;  %10478 = vst [vmem:[#allocation141_spill] sm:$0xff] %v7389_v22  ;;  %2091 = vmax.xlane.f32.xlu0 %v10479_v57  ;;  %v2189_v18 = vmax.f32 %v7377_v13, %v7387_v8 }
 0x3c7   : > { %2100 = vmax.xlane.f32.xlu1 %v10480_v3 }
 0x3c9   : > { %v7401_v0 = vpop.f32.mrb[120].mxu1  ;;  %v7403_v20 = vpop.f32.mrb[92].mxu0 }
 0x3ca   : > { %2181 = vmax.xlane.f32.xlu0 %v2180_v16  ;;  %10481 = vst [vmem:[#allocation142_spill] sm:$0xff] %v7401_v0  ;;  %10482 = vst [vmem:[#allocation143_spill] sm:$0xff] %v7403_v20  ;;  %v1990_v44 = vpop.xlane.xlu0 %1989  ;;  %v7405_v23 = vpop.f32.mrb[121].mxu1 }
 0x3cb   : > { %10483 = vst [vmem:[#allocation144_spill] sm:$0xff] %v7405_v23  ;;  %v2340_v57 = vsub.f32 %v6880_v56, %v1990_v44  ;;  %2190 = vmax.xlane.f32.xlu1 %v2189_v18  ;;  %v2192_v8 = vmax.f32 %v7401_v0, %v7405_v23  ;;  %v7410_v13 = vpop.f32.mrb[122].mxu1  ;;  %v7412_v15 = vpop.f32.mrb[93].mxu0  ;;  %v2341_v23 = vsub.f32 %v6884_v58, %v1990_v44 }
 0x3cc   : > { %10484 = vst [vmem:[#allocation145_spill] sm:$0xff] %v7410_v13  ;;  %10485 = vst [vmem:[#allocation146_spill] sm:$0xff] %v7412_v15  ;;  %v7414_v50 = vpop.f32.mrb[123].mxu1  ;;  %v7418_v3 = vpop.f32.mrb[94].mxu0 }
 0x3cd   : > { %10486 = vst [vmem:[#allocation147_spill] sm:$0xff] %v7414_v50  ;;  %10487 = vst [vmem:[#allocation148_spill] sm:$0xff] %v7418_v3  ;;  %v2195_v56 = vmax.f32 %v7410_v13, %v7414_v50  ;;  %v7425_v18 = vpop.f32.mrb[95].mxu0  ;;  %v2660_v0 = vmul.f32 1.442695, %v2340_v57 }
 0x3ce   : > { %2097 = vmax.xlane.f32.xlu0 %v10488_v41  ;;  %10489 = vst [vmem:[#allocation149_spill] sm:$0xff] %v7425_v18  ;;  %v1903_v53 = vpop.xlane.xlu0 %1902  ;;  %v2662_v58 = vmul.f32 1.442695, %v2341_v23 }
 0x3cf   : > { %v2282_v16 = vsub.f32 %v6834_v26, %v1903_v53  ;;  %v2283_v15 = vsub.f32 %v6838_v35, %v1903_v53  ;;  %2106 = vmax.xlane.f32.xlu1 %v10490_v30  ;;  %5617 = vpow2.f32 %v2660_v0 }
 0x3d1   : > { %v2544_v41 = vmul.f32 1.442695, %v2282_v16  ;;  %v2546_v49 = vmul.f32 1.442695, %v2283_v15  ;;  %v7435_v50 = vpop.f32.mrb[124].mxu1  ;;  %v7437_v13 = vpop.f32.mrb[96].mxu0 }
 0x3d2   : > { %2187 = vmax.xlane.f32.xlu0 %v2186_v29  ;;  %10491 = vst [vmem:[#allocation150_spill] sm:$0xff] %v7435_v50  ;;  %10492 = vst [vmem:[#allocation151_spill] sm:$0xff] %v7437_v13  ;;  %v1993_v44 = vpop.xlane.xlu0 %1992  ;;  %v7439_v57 = vpop.f32.mrb[125].mxu1 }
 0x3d3   : > { %10493 = vst [vmem:[#allocation152_spill] sm:$0xff] %v7439_v57  ;;  %5619 = vpow2.f32 %v2544_v41  ;;  %v2342_v26 = vsub.f32 %v6888_v62, %v1993_v44  ;;  %v2343_v35 = vsub.f32 %v6896_v19, %v1993_v44  ;;  %2196 = vmax.xlane.f32.xlu1 %v2195_v56  ;;  %v7445_v30 = vpop.f32.mrb[126].mxu1  ;;  %v7447_v15 = vpop.f32.mrb[97].mxu0  ;;  %v10497_v56 = vmax.f32 %v7299_v4, %v7309_v28  ;;  %v10565_v28 = vld [vmem:[#allocation44_spill] sm:$0xff] }
 0x3d4   : > { %10494 = vst [vmem:[#allocation153_spill] sm:$0xff] %v7445_v30  ;;  %10495 = vst [vmem:[#allocation154_spill] sm:$0xff] %v7447_v15  ;;  %5621 = vpow2.f32 %v2546_v49  ;;  %v1999_v29 = vpop.xlane.xlu1 %1998  ;;  %v7449_v0 = vpop.f32.mrb[127].mxu1 }
 0x3d5   : > { %10496 = vst [vmem:[#allocation155_spill] sm:$0xff] %v7449_v0  ;;  %v2664_v16 = vmul.f32 1.442695, %v2342_v26  ;;  %v2666_v41 = vmul.f32 1.442695, %v2343_v35  ;;  %v2346_v62 = vsub.f32 %v6918_v51, %v1999_v29  ;;  %v2347_v19 = vsub.f32 %v6926_v54, %v1999_v29  ;;  %v7458_v44 = vpop.f32.mrb[98].mxu0 }
 0x3d6   : > { %2103 = vmax.xlane.f32.xlu0 %v10497_v56  ;;  %10498 = vst [vmem:[#allocation156_spill] sm:$0xff] %v7458_v44  ;;  %5623 = vpow2.f32 %v2662_v58  ;;  %v1906_v49 = vpop.xlane.xlu0 %1905  ;;  %v2201_v14 = vmax.f32 %v7445_v30, %v7449_v0  ;;  %v7462_v53 = vpop.f32.mrb[99].mxu0 }
 0x3d7   : > { %10499 = vst [vmem:[#allocation157_spill] sm:$0xff] %v7462_v53  ;;  %5625 = vpow2.f32 %v2664_v16  ;;  %v2672_v26 = vmul.f32 1.442695, %v2346_v62  ;;  %v2674_v35 = vmul.f32 1.442695, %v2347_v19  ;;  %v2284_v51 = vsub.f32 %v6846_v37, %v1906_v49  ;;  %3048 = vadd.xlane.f32.xlu1 %v7353_v63 }
 0x3d8   : > { %5627 = vpow2.f32 %v2666_v41  ;;  %v2285_v54 = vsub.f32 %v6848_v38, %v1906_v49  ;;  %v1915_v29 = vpop.xlane.xlu1 %1914 }
 0x3d9   : > { %5629 = vpow2.f32 %v2672_v26  ;;  %v2548_v56 = vmul.f32 1.442695, %v2284_v51  ;;  %v2290_v23 = vsub.f32 %v6866_v48, %v1915_v29  ;;  %v2291_v0 = vsub.f32 %v6870_v52, %v1915_v29  ;;  %v7471_v16 = vpop.f32.mrb[128].mxu1  ;;  %v7473_v62 = vpop.f32.mrb[100].mxu0 }
 0x3da   : > { %2193 = vmax.xlane.f32.xlu0 %v2192_v8  ;;  %10500 = vst [vmem:[#allocation158_spill] sm:$0xff] %v7471_v16  ;;  %10501 = vst [vmem:[#allocation159_spill] sm:$0xff] %v7473_v62  ;;  %5631 = vpow2.f32 %v2674_v35  ;;  %v2550_v37 = vmul.f32 1.442695, %v2285_v54  ;;  %v1996_v63 = vpop.xlane.xlu0 %1995  ;;  %v7475_v41 = vpop.f32.mrb[129].mxu1  ;;  %v10503_v48 = vmax.f32 %v7343_v11, %v7349_v24 }
 0x3db   : > { %10502 = vst [vmem:[#allocation160_spill] sm:$0xff] %v7475_v41  ;;  %5633 = vpow2.f32 %v2548_v56  ;;  %v2560_v38 = vmul.f32 1.442695, %v2290_v23  ;;  %v2562_v19 = vmul.f32 1.442695, %v2291_v0  ;;  %v2344_v49 = vsub.f32 %v6910_v47, %v1996_v63  ;;  %v7481_v52 = vpop.f32.mrb[130].mxu1  ;;  %v7485_v26 = vpop.eup %5617 }
 0x3dc   : > { %2112 = vmax.xlane.f32.xlu1 %v10503_v48  ;;  %10504 = vst [vmem:[#allocation161_spill] sm:$0xff] %v7481_v52  ;;  %v7483_v8 = vpop.f32.mrb[101].mxu0  ;;  %10506 = vst [vmem:[#allocation163_spill] sm:$0xff] %v7485_v26  ;;  %5635 = vpow2.f32 %v2550_v37  ;;  %v2345_v35 = vsub.f32 %v6914_v1, %v1996_v63  ;;  %v2005_v51 = vpop.xlane.xlu1 %2004 }
 0x3dd   : > { %10505 = vst [vmem:[#allocation162_spill] sm:$0xff] %v7483_v8  ;;  %v7490_v0 = vpop.f32.mrb[131].mxu1  ;;  %v5620_v54 = vpop.eup %5619  ;;  %5637 = vpow2.f32 %v2560_v38  ;;  %v2668_v29 = vmul.f32 1.442695, %v2344_v49  ;;  %v2350_v56 = vsub.f32 %v6944_v17, %v2005_v51  ;;  %v2351_v48 = vsub.f32 %v6952_v42, %v2005_v51 }
 0x3de   : > { %10507 = vst [vmem:[#allocation164_spill] sm:$0xff] %v7490_v0  ;;  %3045 = vadd.xlane.f32.xlu0 %v7345_v7  ;;  %v7497_v37 = vpop.f32.mrb[102].mxu0  ;;  %v5622_v1 = vpop.eup %5621  ;;  %5639 = vpow2.f32 %v2562_v19  ;;  %v2670_v63 = vmul.f32 1.442695, %v2345_v35  ;;  %v3566_v23 = vpack.c.bf16 %v5620_v54, %v7360_v12 }
 0x3df   : > { %10508 = vst [vmem:[#allocation165_spill] sm:$0xff] %v7497_v37  ;;  %v1909_v58 = vpop.xlane.xlu0 %1908  ;;  %v7502_v30 = vpop.f32.mrb[103].mxu0  ;;  %5641 = vpow2.f32 %v2668_v29  ;;  %v2680_v38 = vmul.f32 1.442695, %v2350_v56  ;;  %v2682_v17 = vmul.f32 1.442695, %v2351_v48  ;;  %v3567_v49 = vpack.c.bf16 %v5622_v1, %v7369_v6 }
 0x3e0   : > { %10509 = vst [vmem:[#allocation166_spill] sm:$0xff] %v7502_v30  ;;  %v2286_v42 = vsub.f32 %v6850_v40, %v1909_v58  ;;  %2202 = vmax.xlane.f32.xlu1 %v2201_v14  ;;  %v7505_v7 = vpop.eup %5623  ;;  %5643 = vpow2.f32 %v2670_v63  ;;  %v2287_v19 = vsub.f32 %v6854_v43, %v1909_v58  ;;  %v1921_v35 = vpop.xlane.xlu1 %1920  ;;  %v3053_v12 = vadd.f32 %v5622_v1, %v5620_v54 }
 0x3e1   : > { %10510 = vst [vmem:[#allocation167_spill] sm:$0xff] %v7505_v7  ;;  %v7509_v51 = vpop.eup %5625  ;;  %5645 = vpow2.f32 %v2680_v38  ;;  %v2294_v29 = vsub.f32 %v6886_v59, %v1921_v35  ;;  %v2295_v56 = vsub.f32 %v6894_v10, %v1921_v35  ;;  %v10512_v40 = vmax.f32 %v7328_v2, %v7332_v61  ;;  %v7516_v14 = vpop.f32.mrb[132].mxu1  ;;  %3694 = vmatprep.subr.bf16.mxu0 %v3567_v49 }
 0x3e2   : > { %10511 = vst [vmem:[#allocation168_spill] sm:$0xff] %v7509_v51  ;;  %v2552_v47 = vmul.f32 1.442695, %v2286_v42  ;;  %10513 = vst [vmem:[#allocation169_spill] sm:$0xff] %v7516_v14  ;;  %v7518_v48 = vpop.f32.mrb[104].mxu0  ;;  %v7520_v43 = vpop.eup %5627  ;;  %5647 = vpow2.f32 %v2682_v17  ;;  %v3596_v54 = vpack.c.bf16 %v7509_v51, %v7485_v26  ;;  %3695 = vmatpush1.bf16.xpose.msra.mxu0 %v3566_v23 }
 0x3e3   : > { %2109 = vmax.xlane.f32.xlu0 %v10512_v40  ;;  %10514 = vst [vmem:[#allocation170_spill] sm:$0xff] %v7518_v48  ;;  %10515 = vst [vmem:[#allocation171_spill] sm:$0xff] %v7520_v43  ;;  %v2554_v6 = vmul.f32 1.442695, %v2287_v19  ;;  %v1912_v58 = vpop.xlane.xlu0 %1911  ;;  %v7524_v59 = vpop.f32.mrb[133].mxu1  ;;  %v3597_v40 = vpack.c.bf16 %v7520_v43, %v7505_v7  ;;  %v10540_v43 = vld [vmem:[#allocation36_spill] sm:$0xff] }
 0x3e4   : > { %10516 = vst [vmem:[#allocation172_spill] sm:$0xff] %v7524_v59  ;;  %v7528_v1 = vpop.eup %5629  ;;  %5649 = vpow2.f32 %v2552_v47  ;;  %v2568_v63 = vmul.f32 1.442695, %v2294_v29  ;;  %v2570_v38 = vmul.f32 1.442695, %v2295_v56  ;;  %v2288_v42 = vsub.f32 %v6862_v45, %v1912_v58  ;;  %3051 = vadd.xlane.f32.xlu1 %v7383_v60  ;;  %v7532_v17 = vpop.f32.mrb[134].mxu1 }
 0x3e5   : > { %10517 = vst [vmem:[#allocation173_spill] sm:$0xff] %v7528_v1  ;;  %10518 = vst [vmem:[#allocation174_spill] sm:$0xff] %v7532_v17  ;;  %v7534_v19 = vpop.f32.mrb[105].mxu0  ;;  %v7536_v49 = vpop.eup %5631  ;;  %5651 = vpow2.f32 %v2554_v6  ;;  %v2289_v35 = vsub.f32 %v6864_v46, %v1912_v58  ;;  %v10522_v46 = vmax.f32 %v7435_v50, %v7439_v57  ;;  %3735 = vmatprep.subr.bf16.mxu1 %v3597_v40 }
 0x3e6   : > { %10519 = vst [vmem:[#allocation175_spill] sm:$0xff] %v7534_v19  ;;  %10520 = vst [vmem:[#allocation176_spill] sm:$0xff] %v7536_v49  ;;  %v2011_v47 = vpop.xlane.xlu1 %2010  ;;  %v7543_v29 = vpop.f32.mrb[135].mxu1  ;;  %5653 = vpow2.f32 %v2568_v63  ;;  %v2556_v60 = vmul.f32 1.442695, %v2288_v42  ;;  %3736 = vmatpush1.bf16.xpose.msra.mxu1 %v3596_v54 }
 0x3e7   : > { %10521 = vst [vmem:[#allocation177_spill] sm:$0xff] %v7543_v29  ;;  %v7545_v45 = vpop.eup %5633  ;;  %v2354_v56 = vsub.f32 %v6973_v33, %v2011_v47  ;;  %v2355_v10 = vsub.f32 %v6981_v36, %v2011_v47  ;;  %2199 = vmax.xlane.f32.xlu0 %v10522_v46  ;;  %v7552_v6 = vpop.f32.mrb[106].mxu0  ;;  %5655 = vpow2.f32 %v2570_v38  ;;  %v2558_v23 = vmul.f32 1.442695, %v2289_v35 }
 0x3e8   : > { %10523 = vst [vmem:[#allocation178_spill] sm:$0xff] %v7552_v6  ;;  %v7554_v58 = vpop.eup %5635  ;;  %v2002_v61 = vpop.xlane.xlu0 %2001  ;;  %5657 = vpow2.f32 %v2556_v60  ;;  %3054 = vadd.xlane.f32.xlu1 %v3053_v12 }
 0x3e9   : > { %v7560_v42 = vpop.f32.mrb[107].mxu0  ;;  %v7562_v36 = vpop.eup %5637  ;;  %v2688_v47 = vmul.f32 1.442695, %v2354_v56  ;;  %v2690_v46 = vmul.f32 1.442695, %v2355_v10  ;;  %v2348_v57 = vsub.f32 %v6936_v25, %v2002_v61  ;;  %5659 = vpow2.f32 %v2558_v23 }
 0x3ea   : > { %10524 = vst [vmem:[#allocation179_spill] sm:$0xff] %v7560_v42  ;;  %v7565_v38 = vpop.eup %5639  ;;  %v2349_v35 = vsub.f32 %v6940_v27, %v2002_v61  ;;  %v1927_v40 = vpop.xlane.xlu1 %1926  ;;  %v7570_v33 = vadd.f32 %v7554_v58, %v7545_v45  ;;  %v10526_v10 = vmax.f32 %v7367_v32, %v7373_v21 }
 0x3eb   : > { %v7574_v60 = vpop.eup %5641  ;;  %5661 = vpow2.f32 %v2688_v47  ;;  %v2676_v54 = vmul.f32 1.442695, %v2348_v57  ;;  %v2298_v25 = vsub.f32 %v6916_v31, %v1927_v40  ;;  %v2299_v12 = vsub.f32 %v6924_v9, %v1927_v40  ;;  %v7581_v27 = vpop.f32.mrb[136].mxu1 }
 0x3ec   : > { %10525 = vst [vmem:[#allocation180_spill] sm:$0xff] %v7574_v60  ;;  %2115 = vmax.xlane.f32.xlu0 %v10526_v10  ;;  %10527 = vst [vmem:[#allocation181_spill] sm:$0xff] %v7581_v27  ;;  %v7583_v61 = vpop.f32.mrb[108].mxu0  ;;  %v7585_v23 = vpop.eup %5643  ;;  %5663 = vpow2.f32 %v2690_v46  ;;  %v2678_v56 = vmul.f32 1.442695, %v2349_v35  ;;  %v3598_v57 = vpack.c.bf16 %v7528_v1, %v7574_v60  ;;  %v7593_v31 = vadd.f32 %v7565_v38, %v7562_v36  ;;  %v10537_v1 = vld [vmem:[#allocation17_spill] sm:$0xff] }
 0x3ed   : > { %10528 = vst [vmem:[#allocation182_spill] sm:$0xff] %v7583_v61  ;;  %10529 = vst [vmem:[#allocation183_spill] sm:$0xff] %v7585_v23  ;;  %v1918_v63 = vpop.xlane.xlu0 %1917  ;;  %v7589_v47 = vpop.f32.mrb[137].mxu1  ;;  %5665 = vpow2.f32 %v2676_v54  ;;  %v2576_v40 = vmul.f32 1.442695, %v2298_v25  ;;  %v10533_v46 = vmax.f32 %v7385_v39, %v7389_v22  ;;  %v3599_v54 = vpack.c.bf16 %v7536_v49, %v7585_v23  ;;  %v10539_v39 = vld [vmem:[#allocation34_spill] sm:$0xff] }
 0x3ee   : > { %10530 = vst [vmem:[#allocation184_spill] sm:$0xff] %v7589_v47  ;;  %10531 = vst [vmem:[#allocation185_spill] sm:$0xff] %v7593_v31  ;;  %v7595_v9 = vpop.eup %5645  ;;  %v2578_v10 = vmul.f32 1.442695, %v2299_v12  ;;  %v2292_v21 = vsub.f32 %v6878_v55, %v1918_v63  ;;  %v7601_v35 = vpop.f32.mrb[138].mxu1  ;;  %5667 = vpow2.f32 %v2678_v56  ;;  %v2293_v2 = vsub.f32 %v10537_v1, %v1918_v63 }
 0x3ef   : > { %10532 = vst [vmem:[#allocation186_spill] sm:$0xff] %v7595_v9  ;;  %2118 = vmax.xlane.f32.xlu1 %v10533_v46  ;;  %10534 = vst [vmem:[#allocation187_spill] sm:$0xff] %v7601_v35  ;;  %v7603_v32 = vpop.f32.mrb[109].mxu0  ;;  %v7605_v50 = vpop.eup %5647  ;;  %5669 = vpow2.f32 %v2576_v40  ;;  %v10541_v56 = vmax.f32 %v7471_v16, %v7475_v41  ;;  %3737 = vmatprep.subr.bf16.mxu1 %v3599_v54 }
 0x3f0   : > { %10535 = vst [vmem:[#allocation188_spill] sm:$0xff] %v7603_v32  ;;  %10536 = vst [vmem:[#allocation189_spill] sm:$0xff] %v7605_v50  ;;  %v2017_v25 = vpop.xlane.xlu1 %2016  ;;  %v7612_v12 = vpop.f32.mrb[139].mxu1  ;;  %v2564_v46 = vmul.f32 1.442695, %v2292_v21  ;;  %5671 = vpow2.f32 %v2578_v10  ;;  %3738 = vmatpush1.bf16.xpose.msra.mxu1 %v3598_v57 }
 0x3f1   : > { %10538 = vst [vmem:[#allocation17_spill] sm:$0xff] %v7612_v12  ;;  %v5650_v22 = vpop.eup %5649  ;;  %v2358_v60 = vsub.f32 %v10539_v39, %v2017_v25  ;;  %v2359_v51 = vsub.f32 %v10540_v43, %v2017_v25  ;;  %2205 = vmax.xlane.f32.xlu0 %v10541_v56  ;;  %v7619_v1 = vpop.f32.mrb[110].mxu0  ;;  %v2566_v49 = vmul.f32 1.442695, %v2293_v2  ;;  %v10545_v56 = vld [vmem:[#allocation25_spill] sm:$0xff]  ;;  %v10546_v2 = vmax.f32 %v7481_v52, %v7490_v0  ;;  %v10551_v0 = vld [vmem:[#allocation146_spill] sm:$0xff] }
 0x3f2   : > { %10542 = vst [vmem:[#allocation34_spill] sm:$0xff] %v7619_v1  ;;  %v5652_v63 = vpop.eup %5651  ;;  %v2008_v55 = vpop.xlane.xlu0 %2007  ;;  %v3568_v23 = vpack.c.bf16 %v5650_v22, %v7545_v45  ;;  %5673 = vpow2.f32 %v2564_v46  ;;  %v10548_v45 = vld [vmem:[#allocation27_spill] sm:$0xff] }
 0x3f3   : > { %v7624_v40 = vpop.f32.mrb[111].mxu0  ;;  %v7626_v39 = vpop.eup %5653  ;;  %v2696_v43 = vmul.f32 1.442695, %v2358_v60  ;;  %v2698_v25 = vmul.f32 1.442695, %v2359_v51  ;;  %v2352_v41 = vsub.f32 %v10545_v56, %v2008_v55  ;;  %2208 = vmax.xlane.f32.xlu1 %v10546_v2  ;;  %5675 = vpow2.f32 %v2566_v49  ;;  %v10549_v60 = vld [vmem:[#allocation22_spill] sm:$0xff] }
 0x3f4   : > { %10543 = vst [vmem:[#allocation36_spill] sm:$0xff] %v7624_v40  ;;  %10544 = vst [vmem:[#allocation190_spill] sm:$0xff] %v7626_v39  ;;  %v7632_v10 = vpop.eup %5655  ;;  %v2353_v54 = vsub.f32 %v10548_v45, %v2008_v55  ;;  %v3569_v21 = vpack.c.bf16 %v5652_v63, %v7554_v58  ;;  %v1933_v16 = vpop.xlane.xlu1 %1932  ;;  %v3059_v24 = vadd.f32 %v5652_v63, %v5650_v22  ;;  %v10550_v46 = vld [vmem:[#allocation23_spill] sm:$0xff] }
 0x3f5   : > { %10547 = vst [vmem:[#allocation25_spill] sm:$0xff] %v7632_v10  ;;  %v7636_v11 = vpop.eup %5657  ;;  %5677 = vpow2.f32 %v2696_v43  ;;  %v2684_v51 = vmul.f32 1.442695, %v2352_v41  ;;  %v2302_v57 = vsub.f32 %v10549_v60, %v1933_v16  ;;  %v2303_v56 = vsub.f32 %v10550_v46, %v1933_v16  ;;  %v7643_v52 = vpop.f32.mrb[140].mxu1  ;;  %v10557_v46 = vld [vmem:[#allocation18_spill] sm:$0xff]  ;;  %v10561_v41 = vld [vmem:[#allocation19_spill] sm:$0xff] }
 0x3f6   : > { %v10552_v2 = vmax.f32 %v7403_v20, %v10551_v0  ;;  %10553 = vst [vmem:[#allocation27_spill] sm:$0xff] %v7643_v52  ;;  %v7645_v49 = vpop.f32.mrb[112].mxu0  ;;  %v7647_v55 = vpop.eup %5659  ;;  %5679 = vpow2.f32 %v2698_v25  ;;  %v2686_v22 = vmul.f32 1.442695, %v2353_v54  ;;  %3696 = vmatprep.subr.bf16.mxu0 %v3569_v21 }
 0x3f7   : > { %10554 = vst [vmem:[#allocation22_spill] sm:$0xff] %v7645_v49  ;;  %v1924_v58 = vpop.xlane.xlu0 %1923  ;;  %v7651_v63 = vpop.f32.mrb[141].mxu1  ;;  %5681 = vpow2.f32 %v2684_v51  ;;  %v2584_v45 = vmul.f32 1.442695, %v2302_v57  ;;  %v2586_v60 = vmul.f32 1.442695, %v2303_v56  ;;  %3697 = vmatpush1.bf16.xpose.msra.mxu0 %v3568_v23  ;;  %3057 = vadd.xlane.f32.xlu1 %v7570_v33  ;;  %v3571_v16 = vpack.c.bf16 %v7565_v38, %v7647_v55 }
 0x3f8   : > { %2121 = vmax.xlane.f32.xlu0 %v10552_v2  ;;  %10555 = vst [vmem:[#allocation23_spill] sm:$0xff] %v7651_v63  ;;  %v7655_v43 = vpop.eup %5661  ;;  %v2296_v2 = vsub.f32 %v10557_v46, %v1924_v58  ;;  %v7659_v21 = vpop.f32.mrb[142].mxu1  ;;  %5683 = vpow2.f32 %v2686_v22  ;;  %v2297_v0 = vsub.f32 %v10561_v41, %v1924_v58  ;;  %v10564_v46 = vld [vmem:[#allocation42_spill] sm:$0xff]  ;;  %v10566_v22 = vmax.f32 %v7516_v14, %v7524_v59 }
 0x3f9   : > { %10556 = vst [vmem:[#allocation191_spill] sm:$0xff] %v7655_v43  ;;  %10558 = vst [vmem:[#allocation18_spill] sm:$0xff] %v7659_v21  ;;  %v7661_v25 = vpop.f32.mrb[113].mxu0  ;;  %v7663_v54 = vpop.eup %5663  ;;  %5685 = vpow2.f32 %v2584_v45  ;;  %3698 = vmatprep.subr.bf16.mxu0 %v3571_v16  ;;  %v10571_v59 = vld [vmem:[#allocation30_spill] sm:$0xff] }
 0x3fa   : > { %10559 = vst [vmem:[#allocation192_spill] sm:$0xff] %v7661_v25  ;;  %10560 = vst [vmem:[#allocation193_spill] sm:$0xff] %v7663_v54  ;;  %v2023_v51 = vpop.xlane.xlu1 %2022  ;;  %v7670_v57 = vpop.f32.mrb[143].mxu1  ;;  %v2572_v33 = vmul.f32 1.442695, %v2296_v2  ;;  %5687 = vpow2.f32 %v2586_v60 }
 0x3fb   : > { %10562 = vst [vmem:[#allocation19_spill] sm:$0xff] %v7670_v57  ;;  %v7672_v56 = vpop.eup %5665  ;;  %v2362_v20 = vsub.f32 %v10564_v46, %v2023_v51  ;;  %v2363_v4 = vsub.f32 %v10565_v28, %v2023_v51  ;;  %v7679_v58 = vpop.f32.mrb[114].mxu0  ;;  %v2574_v41 = vmul.f32 1.442695, %v2297_v0  ;;  %3060 = vadd.xlane.f32.xlu1 %v3059_v24  ;;  %v10573_v0 = vld [vmem:[#allocation32_spill] sm:$0xff] }
 0x3fc   : > { %10563 = vst [vmem:[#allocation194_spill] sm:$0xff] %v7672_v56  ;;  %2211 = vmax.xlane.f32.xlu0 %v10566_v22  ;;  %10567 = vst [vmem:[#allocation42_spill] sm:$0xff] %v7679_v58  ;;  %v7681_v38 = vpop.eup %5667  ;;  %v2014_v23 = vpop.xlane.xlu0 %2013  ;;  %v3600_v45 = vpack.c.bf16 %v7595_v9, %v7672_v56  ;;  %5689 = vpow2.f32 %v2572_v33 }
 0x3fd   : > { %10568 = vst [vmem:[#allocation44_spill] sm:$0xff] %v7681_v38  ;;  %v7687_v46 = vpop.f32.mrb[115].mxu0  ;;  %v7689_v28 = vpop.eup %5669  ;;  %v2704_v51 = vmul.f32 1.442695, %v2362_v20  ;;  %v2706_v22 = vmul.f32 1.442695, %v2363_v4  ;;  %v2356_v14 = vsub.f32 %v10571_v59, %v2014_v23  ;;  %5691 = vpow2.f32 %v2574_v41 }
 0x3fe   : > { %10569 = vst [vmem:[#allocation195_spill] sm:$0xff] %v7687_v46  ;;  %10570 = vst [vmem:[#allocation196_spill] sm:$0xff] %v7689_v28  ;;  %v7692_v60 = vpop.eup %5671  ;;  %v2357_v16 = vsub.f32 %v10573_v0, %v2014_v23  ;;  %v3601_v9 = vpack.c.bf16 %v7605_v50, %v7681_v38  ;;  %v1939_v56 = vpop.xlane.xlu1 %1938  ;;  %v10575_v4 = vld [vmem:[#allocation28_spill] sm:$0xff]  ;;  %v10576_v59 = vld [vmem:[#allocation29_spill] sm:$0xff]  ;;  %v10577_v41 = vmax.f32 %v7437_v13, %v7447_v15 }
 0x3ff   : > { %10572 = vst [vmem:[#allocation30_spill] sm:$0xff] %v7692_v60  ;;  %v7699_v7 = vpop.eup %5673  ;;  %5693 = vpow2.f32 %v2704_v51  ;;  %v2692_v20 = vmul.f32 1.442695, %v2356_v14  ;;  %v2306_v33 = vsub.f32 %v10575_v4, %v1939_v56  ;;  %v2307_v24 = vsub.f32 %v10576_v59, %v1939_v56  ;;  %v7706_v23 = vpop.f32.mrb[144].mxu1  ;;  %v10588_v56 = vld [vmem:[#allocation21_spill] sm:$0xff] }
 0x400   : > { %10574 = vst [vmem:[#allocation32_spill] sm:$0xff] %v7699_v7  ;;  %2127 = vmax.xlane.f32.xlu0 %v10577_v41  ;;  %10578 = vst [vmem:[#allocation28_spill] sm:$0xff] %v7706_v23  ;;  %v7708_v0 = vpop.f32.mrb[116].mxu0  ;;  %v7710_v50 = vpop.eup %5675  ;;  %5695 = vpow2.f32 %v2706_v22  ;;  %v2694_v2 = vmul.f32 1.442695, %v2357_v16  ;;  %3739 = vmatprep.subr.bf16.mxu1 %v3601_v9  ;;  %v10583_v15 = vpack.c.bf16 %v7562_v36, %v7636_v11  ;;  %v10584_v9 = vld [vmem:[#allocation20_spill] sm:$0xff] }
 0x401   : > { %10579 = vst [vmem:[#allocation29_spill] sm:$0xff] %v7708_v0  ;;  %10580 = vst [vmem:[#allocation197_spill] sm:$0xff] %v7710_v50  ;;  %v1930_v38 = vpop.xlane.xlu0 %1929  ;;  %v7714_v51 = vpop.f32.mrb[145].mxu1  ;;  %5697 = vpow2.f32 %v2692_v20  ;;  %v2592_v59 = vmul.f32 1.442695, %v2306_v33  ;;  %3740 = vmatpush1.bf16.xpose.msra.mxu1 %v3600_v45  ;;  %v10589_v20 = vmax.f32 %v7418_v3, %v7425_v18  ;;  %v3573_v36 = vpack.c.bf16 %v7632_v10, %v7710_v50 }
 0x402   : > { %10581 = vst [vmem:[#allocation198_spill] sm:$0xff] %v7714_v51  ;;  %v7718_v4 = vpop.eup %5677  ;;  %v2594_v41 = vmul.f32 1.442695, %v2307_v24  ;;  %3699 = vmatpush1.bf16.xpose.msra.mxu0 %v10583_v15  ;;  %v2300_v22 = vsub.f32 %v10584_v9, %v1930_v38  ;;  %v7724_v16 = vpop.f32.mrb[146].mxu1  ;;  %5699 = vpow2.f32 %v2694_v2  ;;  %v2301_v26 = vsub.f32 %v10588_v56, %v1930_v38  ;;  %v10592_v2 = vld [vmem:[#allocation50_spill] sm:$0xff]  ;;  %v10593_v38 = vld [vmem:[#allocation52_spill] sm:$0xff] }
 0x403   : > { %10582 = vst [vmem:[#allocation199_spill] sm:$0xff] %v7718_v4  ;;  %10585 = vst [vmem:[#allocation20_spill] sm:$0xff] %v7724_v16  ;;  %v7726_v14 = vpop.f32.mrb[117].mxu0  ;;  %v7728_v13 = vpop.eup %5679  ;;  %2124 = vmax.xlane.f32.xlu1 %v10589_v20  ;;  %5701 = vpow2.f32 %v2592_v59  ;;  %v10594_v20 = vmax.f32 %v7581_v27, %v7589_v47  ;;  %3700 = vmatprep.subr.bf16.mxu0 %v3573_v36  ;;  %v10599_v47 = vld [vmem:[#allocation38_spill] sm:$0xff]  ;;  %v10602_v36 = vmax.f32 %v7532_v17, %v7543_v29 }
 0x404   : > { %10586 = vst [vmem:[#allocation200_spill] sm:$0xff] %v7726_v14  ;;  %10587 = vst [vmem:[#allocation201_spill] sm:$0xff] %v7728_v13  ;;  %v2029_v15 = vpop.xlane.xlu1 %2028  ;;  %v7738_v33 = vpop.f32.mrb[147].mxu1  ;;  %v2580_v9 = vmul.f32 1.442695, %v2300_v22  ;;  %5703 = vpow2.f32 %v2594_v41 }
 0x405   : > { %10590 = vst [vmem:[#allocation21_spill] sm:$0xff] %v7738_v33  ;;  %v7740_v24 = vpop.eup %5681  ;;  %v2366_v34 = vsub.f32 %v10592_v2, %v2029_v15  ;;  %v2367_v56 = vsub.f32 %v10593_v38, %v2029_v15  ;;  %2217 = vmax.xlane.f32.xlu0 %v10594_v20  ;;  %v7747_v18 = vpop.f32.mrb[118].mxu0  ;;  %v2582_v45 = vmul.f32 1.442695, %v2301_v26  ;;  %v10601_v26 = vld [vmem:[#allocation40_spill] sm:$0xff] }
 0x406   : > { %10591 = vst [vmem:[#allocation202_spill] sm:$0xff] %v7740_v24  ;;  %10595 = vst [vmem:[#allocation50_spill] sm:$0xff] %v7747_v18  ;;  %v7749_v3 = vpop.eup %5683  ;;  %v2020_v10 = vpop.xlane.xlu0 %2019  ;;  %v3602_v59 = vpack.c.bf16 %v7655_v43, %v7740_v24  ;;  %5705 = vpow2.f32 %v2580_v9 }
 0x407   : > { %10596 = vst [vmem:[#allocation52_spill] sm:$0xff] %v7749_v3  ;;  %v7755_v2 = vpop.f32.mrb[119].mxu0  ;;  %v7757_v15 = vpop.eup %5685  ;;  %v2712_v38 = vmul.f32 1.442695, %v2366_v34  ;;  %v2714_v20 = vmul.f32 1.442695, %v2367_v56  ;;  %v2360_v27 = vsub.f32 %v10599_v47, %v2020_v10  ;;  %5707 = vpow2.f32 %v2582_v45  ;;  %2214 = vmax.xlane.f32.xlu1 %v10602_v36 }
 0x408   : > { %10597 = vst [vmem:[#allocation203_spill] sm:$0xff] %v7755_v2  ;;  %10598 = vst [vmem:[#allocation204_spill] sm:$0xff] %v7757_v15  ;;  %v7760_v5 = vpop.eup %5687  ;;  %v2361_v41 = vsub.f32 %v10601_v26, %v2020_v10  ;;  %v3603_v22 = vpack.c.bf16 %v7663_v54, %v7749_v3  ;;  %v1945_v24 = vpop.xlane.xlu1 %1944  ;;  %v10604_v56 = vld [vmem:[#allocation35_spill] sm:$0xff]  ;;  %v10605_v45 = vld [vmem:[#allocation37_spill] sm:$0xff]  ;;  %v10606_v10 = vmax.f32 %v7473_v62, %v7483_v8 }
 0x409   : > { %10600 = vst [vmem:[#allocation38_spill] sm:$0xff] %v7760_v5  ;;  %v7770_v34 = vpop.eup %5689  ;;  %5709 = vpow2.f32 %v2712_v38  ;;  %v2700_v47 = vmul.f32 1.442695, %v2360_v27  ;;  %v2310_v43 = vsub.f32 %v10604_v56, %v1945_v24  ;;  %v2311_v50 = vsub.f32 %v10605_v45, %v1945_v24  ;;  %v7777_v26 = vpop.f32.mrb[148].mxu1  ;;  %v10617_v24 = vld [vmem:[#allocation26_spill] sm:$0xff] }
 0x40a   : > { %10603 = vst [vmem:[#allocation40_spill] sm:$0xff] %v7770_v34  ;;  %2133 = vmax.xlane.f32.xlu0 %v10606_v10  ;;  %10607 = vst [vmem:[#allocation35_spill] sm:$0xff] %v7777_v26  ;;  %v7779_v36 = vpop.f32.mrb[120].mxu0  ;;  %v7781_v29 = vpop.eup %5691  ;;  %5711 = vpow2.f32 %v2714_v20  ;;  %v2702_v9 = vmul.f32 1.442695, %v2361_v41  ;;  %3741 = vmatprep.subr.bf16.mxu1 %v3603_v22  ;;  %v10612_v8 = vpack.c.bf16 %v7626_v39, %v7699_v7  ;;  %v10613_v22 = vld [vmem:[#allocation24_spill] sm:$0xff] }
 0x40b   : > { %10608 = vst [vmem:[#allocation37_spill] sm:$0xff] %v7779_v36  ;;  %10609 = vst [vmem:[#allocation205_spill] sm:$0xff] %v7781_v29  ;;  %v1936_v17 = vpop.xlane.xlu0 %1935  ;;  %v7785_v38 = vpop.f32.mrb[149].mxu1  ;;  %5713 = vpow2.f32 %v2700_v47  ;;  %v2600_v45 = vmul.f32 1.442695, %v2310_v43  ;;  %3742 = vmatpush1.bf16.xpose.msra.mxu1 %v3602_v59  ;;  %v10618_v43 = vmax.f32 %v7458_v44, %v7462_v53 }
 0x40c   : > { %10610 = vst [vmem:[#allocation206_spill] sm:$0xff] %v7785_v38  ;;  %v7789_v56 = vpop.eup %5693  ;;  %v2602_v10 = vmul.f32 1.442695, %v2311_v50  ;;  %3701 = vmatpush1.bf16.xpose.msra.mxu0 %v10612_v8  ;;  %v2304_v20 = vsub.f32 %v10613_v22, %v1936_v17  ;;  %v7795_v41 = vpop.f32.mrb[150].mxu1  ;;  %5715 = vpow2.f32 %v2702_v9  ;;  %v2305_v3 = vsub.f32 %v10617_v24, %v1936_v17  ;;  %v10621_v9 = vld [vmem:[#allocation58_spill] sm:$0xff]  ;;  %v10622_v17 = vld [vmem:[#allocation60_spill] sm:$0xff] }
 0x40d   : > { %10611 = vst [vmem:[#allocation207_spill] sm:$0xff] %v7789_v56  ;;  %10614 = vst [vmem:[#allocation24_spill] sm:$0xff] %v7795_v41  ;;  %v7797_v27 = vpop.f32.mrb[121].mxu0  ;;  %v7799_v62 = vpop.eup %5695  ;;  %2130 = vmax.xlane.f32.xlu1 %v10618_v43  ;;  %v3575_v50 = vpack.c.bf16 %v7692_v60, %v7781_v29  ;;  %5717 = vpow2.f32 %v2600_v45  ;;  %v10623_v43 = vmax.f32 %v7643_v52, %v7651_v63  ;;  %v10628_v63 = vld [vmem:[#allocation46_spill] sm:$0xff] }
 0x40e   : > { %10615 = vst [vmem:[#allocation208_spill] sm:$0xff] %v7797_v27  ;;  %10616 = vst [vmem:[#allocation209_spill] sm:$0xff] %v7799_v62  ;;  %v2035_v8 = vpop.xlane.xlu1 %2034  ;;  %v7809_v47 = vpop.f32.mrb[151].mxu1  ;;  %v2588_v54 = vmul.f32 1.442695, %v2304_v20  ;;  %5719 = vpow2.f32 %v2602_v10 }
 0x40f   : > { %10619 = vst [vmem:[#allocation26_spill] sm:$0xff] %v7809_v47  ;;  %v7811_v22 = vpop.eup %5697  ;;  %v2370_v39 = vsub.f32 %v10621_v9, %v2035_v8  ;;  %v2371_v24 = vsub.f32 %v10622_v17, %v2035_v8  ;;  %2223 = vmax.xlane.f32.xlu0 %v10623_v43  ;;  %v7818_v53 = vpop.f32.mrb[122].mxu0  ;;  %v2590_v59 = vmul.f32 1.442695, %v2305_v3  ;;  %3702 = vmatprep.subr.bf16.mxu0 %v3575_v50  ;;  %v10630_v3 = vld [vmem:[#allocation48_spill] sm:$0xff] }
 0x410   : > { %10620 = vst [vmem:[#allocation210_spill] sm:$0xff] %v7811_v22  ;;  %10624 = vst [vmem:[#allocation58_spill] sm:$0xff] %v7818_v53  ;;  %v7820_v44 = vpop.eup %5699  ;;  %v2026_v60 = vpop.xlane.xlu0 %2025  ;;  %v3604_v45 = vpack.c.bf16 %v7718_v4, %v7811_v22  ;;  %5721 = vpow2.f32 %v2588_v54  ;;  %v10631_v50 = vmax.f32 %v7601_v35, %v7612_v12 }
 0x411   : > { %10625 = vst [vmem:[#allocation60_spill] sm:$0xff] %v7820_v44  ;;  %v7826_v9 = vpop.f32.mrb[123].mxu0  ;;  %v7828_v8 = vpop.eup %5701  ;;  %v2720_v17 = vmul.f32 1.442695, %v2370_v39  ;;  %v2722_v43 = vmul.f32 1.442695, %v2371_v24  ;;  %v2364_v52 = vsub.f32 %v10628_v63, %v2026_v60  ;;  %5723 = vpow2.f32 %v2590_v59 }
 0x412   : > { %10626 = vst [vmem:[#allocation211_spill] sm:$0xff] %v7826_v9  ;;  %10627 = vst [vmem:[#allocation212_spill] sm:$0xff] %v7828_v8  ;;  %v7831_v29 = vpop.eup %5703  ;;  %v2365_v10 = vsub.f32 %v10630_v3, %v2026_v60  ;;  %2220 = vmax.xlane.f32.xlu1 %v10631_v50  ;;  %v3605_v20 = vpack.c.bf16 %v7728_v13, %v7820_v44  ;;  %v1951_v4 = vpop.xlane.xlu1 %1950  ;;  %v10633_v24 = vld [vmem:[#allocation43_spill] sm:$0xff]  ;;  %v10634_v59 = vld [vmem:[#allocation45_spill] sm:$0xff]  ;;  %v10635_v60 = vmax.f32 %v7518_v48, %v7534_v19 }
 0x413   : > { %10629 = vst [vmem:[#allocation46_spill] sm:$0xff] %v7831_v29  ;;  %v7841_v39 = vpop.eup %5705  ;;  %5725 = vpow2.f32 %v2720_v17  ;;  %v2708_v63 = vmul.f32 1.442695, %v2364_v52  ;;  %v2314_v22 = vsub.f32 %v10633_v24, %v1951_v4  ;;  %v2315_v7 = vsub.f32 %v10634_v59, %v1951_v4  ;;  %v7848_v3 = vpop.f32.mrb[152].mxu1  ;;  %v10646_v4 = vld [vmem:[#allocation33_spill] sm:$0xff] }
 0x414   : > { %10632 = vst [vmem:[#allocation48_spill] sm:$0xff] %v7841_v39  ;;  %2139 = vmax.xlane.f32.xlu0 %v10635_v60  ;;  %10636 = vst [vmem:[#allocation43_spill] sm:$0xff] %v7848_v3  ;;  %v7850_v50 = vpop.f32.mrb[124].mxu0  ;;  %v7852_v12 = vpop.eup %5707  ;;  %5727 = vpow2.f32 %v2722_v43  ;;  %v2710_v54 = vmul.f32 1.442695, %v2365_v10  ;;  %3743 = vmatprep.subr.bf16.mxu1 %v3605_v20  ;;  %v10641_v19 = vpack.c.bf16 %v7689_v28, %v7770_v34  ;;  %v10642_v20 = vld [vmem:[#allocation31_spill] sm:$0xff] }
 0x415   : > { %10637 = vst [vmem:[#allocation45_spill] sm:$0xff] %v7850_v50  ;;  %10638 = vst [vmem:[#allocation213_spill] sm:$0xff] %v7852_v12  ;;  %v1942_v35 = vpop.xlane.xlu0 %1941  ;;  %v7856_v17 = vpop.f32.mrb[153].mxu1  ;;  %5729 = vpow2.f32 %v2708_v63  ;;  %v2608_v59 = vmul.f32 1.442695, %v2314_v22  ;;  %3744 = vmatpush1.bf16.xpose.msra.mxu1 %v3604_v45  ;;  %v10647_v22 = vmax.f32 %v7497_v37, %v7502_v30 }
 0x416   : > { %10639 = vst [vmem:[#allocation214_spill] sm:$0xff] %v7856_v17  ;;  %v7860_v24 = vpop.eup %5709  ;;  %v2610_v60 = vmul.f32 1.442695, %v2315_v7  ;;  %3703 = vmatpush1.bf16.xpose.msra.mxu0 %v10641_v19  ;;  %v2308_v43 = vsub.f32 %v10642_v20, %v1942_v35  ;;  %v7866_v10 = vpop.f32.mrb[154].mxu1  ;;  %5731 = vpow2.f32 %v2710_v54  ;;  %v2309_v13 = vsub.f32 %v10646_v4, %v1942_v35  ;;  %v10650_v54 = vld [vmem:[#allocation66_spill] sm:$0xff]  ;;  %v10651_v35 = vld [vmem:[#allocation68_spill] sm:$0xff] }
 0x417   : > { %10640 = vst [vmem:[#allocation215_spill] sm:$0xff] %v7860_v24  ;;  %10643 = vst [vmem:[#allocation31_spill] sm:$0xff] %v7866_v10  ;;  %v7868_v52 = vpop.f32.mrb[125].mxu0  ;;  %v7870_v48 = vpop.eup %5711  ;;  %2136 = vmax.xlane.f32.xlu1 %v10647_v22  ;;  %v3577_v7 = vpack.c.bf16 %v7760_v5, %v7852_v12  ;;  %5733 = vpow2.f32 %v2608_v59  ;;  %v10652_v22 = vmax.f32 %v7706_v23, %v7714_v51  ;;  %v10656_v51 = vld [vmem:[#allocation54_spill] sm:$0xff] }
 0x418   : > { %10644 = vst [vmem:[#allocation216_spill] sm:$0xff] %v7868_v52  ;;  %10645 = vst [vmem:[#allocation217_spill] sm:$0xff] %v7870_v48  ;;  %v2041_v19 = vpop.xlane.xlu1 %2040  ;;  %v7880_v63 = vpop.f32.mrb[155].mxu1  ;;  %v2596_v44 = vmul.f32 1.442695, %v2308_v43  ;;  %5735 = vpow2.f32 %v2610_v60 }
 0x419   : > { %10648 = vst [vmem:[#allocation33_spill] sm:$0xff] %v7880_v63  ;;  %v7882_v20 = vpop.eup %5713  ;;  %v2374_v28 = vsub.f32 %v10650_v54, %v2041_v19  ;;  %v2375_v4 = vsub.f32 %v10651_v35, %v2041_v19  ;;  %2229 = vmax.xlane.f32.xlu0 %v10652_v22  ;;  %v7889_v30 = vpop.f32.mrb[126].mxu0  ;;  %v2598_v45 = vmul.f32 1.442695, %v2309_v13  ;;  %3704 = vmatprep.subr.bf16.mxu0 %v3577_v7  ;;  %v10657_v13 = vld [vmem:[#allocation56_spill] sm:$0xff] }
 0x41a   : > { %10649 = vst [vmem:[#allocation218_spill] sm:$0xff] %v7882_v20  ;;  %10653 = vst [vmem:[#allocation66_spill] sm:$0xff] %v7889_v30  ;;  %v7891_v37 = vpop.eup %5715  ;;  %v2032_v5 = vpop.xlane.xlu0 %2031  ;;  %v3606_v59 = vpack.c.bf16 %v7789_v56, %v7882_v20  ;;  %5737 = vpow2.f32 %v2596_v44  ;;  %v10658_v7 = vmax.f32 %v7659_v21, %v7670_v57 }
 0x41b   : > { %10654 = vst [vmem:[#allocation68_spill] sm:$0xff] %v7891_v37  ;;  %v7897_v54 = vpop.f32.mrb[127].mxu0  ;;  %v7899_v19 = vpop.eup %5717  ;;  %v2728_v35 = vmul.f32 1.442695, %v2374_v28  ;;  %v2730_v22 = vmul.f32 1.442695, %v2375_v4  ;;  %v2368_v23 = vsub.f32 %v10656_v51, %v2032_v5  ;;  %5739 = vpow2.f32 %v2598_v45 }
 0x41c   : > { %10655 = vst [vmem:[#allocation219_spill] sm:$0xff] %v7897_v54  ;;  %v7902_v12 = vpop.eup %5719  ;;  %v2369_v60 = vsub.f32 %v10657_v13, %v2032_v5  ;;  %2226 = vmax.xlane.f32.xlu1 %v10658_v7  ;;  %v3607_v43 = vpack.c.bf16 %v7799_v62, %v7891_v37  ;;  %v1957_v56 = vpop.xlane.xlu1 %1956  ;;  %v10660_v4 = vld [vmem:[#allocation51_spill] sm:$0xff]  ;;  %v10661_v45 = vld [vmem:[#allocation53_spill] sm:$0xff]  ;;  %v10662_v5 = vmax.f32 %v7583_v61, %v7603_v32 }
 0x41d   : > { %v7912_v28 = vpop.eup %5721  ;;  %5741 = vpow2.f32 %v2728_v35  ;;  %v2716_v51 = vmul.f32 1.442695, %v2368_v23  ;;  %v2318_v20 = vsub.f32 %v10660_v4, %v1957_v56  ;;  %v2319_v34 = vsub.f32 %v10661_v45, %v1957_v56  ;;  %v7919_v13 = vpop.f32.mrb[156].mxu1  ;;  %v10673_v62 = vld [vmem:[#allocation41_spill] sm:$0xff] }
 0x41e   : > { %10659 = vst [vmem:[#allocation54_spill] sm:$0xff] %v7912_v28  ;;  %2145 = vmax.xlane.f32.xlu0 %v10662_v5  ;;  %10663 = vst [vmem:[#allocation56_spill] sm:$0xff] %v7919_v13  ;;  %v7921_v7 = vpop.f32.mrb[128].mxu0  ;;  %v7923_v57 = vpop.eup %5723  ;;  %5743 = vpow2.f32 %v2730_v22  ;;  %v2718_v44 = vmul.f32 1.442695, %v2369_v60  ;;  %3745 = vmatprep.subr.bf16.mxu1 %v3607_v43  ;;  %v7931_v56 = vadd.f32 %v7902_v12, %v7899_v19  ;;  %v10669_v43 = vld [vmem:[#allocation39_spill] sm:$0xff] }
 0x41f   : > { %10664 = vst [vmem:[#allocation51_spill] sm:$0xff] %v7921_v7  ;;  %10665 = vst [vmem:[#allocation53_spill] sm:$0xff] %v7923_v57  ;;  %v1948_v21 = vpop.xlane.xlu0 %1947  ;;  %v7927_v35 = vpop.f32.mrb[157].mxu1  ;;  %5745 = vpow2.f32 %v2716_v51  ;;  %v2616_v45 = vmul.f32 1.442695, %v2318_v20  ;;  %v10668_v22 = vpack.c.bf16 %v7757_v15, %v7841_v39  ;;  %3746 = vmatpush1.bf16.xpose.msra.mxu1 %v3606_v59  ;;  %v10674_v20 = vmax.f32 %v7552_v6, %v7560_v42 }
 0x420   : > { %10666 = vst [vmem:[#allocation220_spill] sm:$0xff] %v7927_v35  ;;  %v7933_v4 = vpop.eup %5725  ;;  %v2618_v5 = vmul.f32 1.442695, %v2319_v34  ;;  %v2312_v60 = vsub.f32 %v10669_v43, %v1948_v21  ;;  %v7939_v32 = vpop.f32.mrb[158].mxu1  ;;  %5747 = vpow2.f32 %v2718_v44  ;;  %v2313_v37 = vsub.f32 %v10673_v62, %v1948_v21  ;;  %v10677_v44 = vld [vmem:[#allocation74_spill] sm:$0xff]  ;;  %v10678_v62 = vld [vmem:[#allocation76_spill] sm:$0xff] }
 0x421   : > { %10667 = vst [vmem:[#allocation221_spill] sm:$0xff] %v7933_v4  ;;  %3705 = vmatpush1.bf16.xpose.msra.mxu0 %v10668_v22  ;;  %10670 = vst [vmem:[#allocation39_spill] sm:$0xff] %v7939_v32  ;;  %v7941_v23 = vpop.f32.mrb[129].mxu0  ;;  %v7943_v61 = vpop.eup %5727  ;;  %2142 = vmax.xlane.f32.xlu1 %v10674_v20  ;;  %v3579_v34 = vpack.c.bf16 %v7831_v29, %v7923_v57  ;;  %5749 = vpow2.f32 %v2616_v45  ;;  %v10679_v20 = vmax.f32 %v7777_v26, %v7785_v38  ;;  %v10683_v38 = vld [vmem:[#allocation62_spill] sm:$0xff] }
 0x422   : > { %10671 = vst [vmem:[#allocation222_spill] sm:$0xff] %v7941_v23  ;;  %10672 = vst [vmem:[#allocation223_spill] sm:$0xff] %v7943_v61  ;;  %v2047_v51 = vpop.xlane.xlu1 %2046  ;;  %v7953_v22 = vpop.f32.mrb[159].mxu1  ;;  %v2604_v15 = vmul.f32 1.442695, %v2312_v60  ;;  %5751 = vpow2.f32 %v2618_v5 }
 0x423   : > { %10675 = vst [vmem:[#allocation41_spill] sm:$0xff] %v7953_v22  ;;  %v7955_v43 = vpop.eup %5729  ;;  %v2378_v39 = vsub.f32 %v10677_v44, %v2047_v51  ;;  %v2379_v21 = vsub.f32 %v10678_v62, %v2047_v51  ;;  %2235 = vmax.xlane.f32.xlu0 %v10679_v20  ;;  %v7962_v42 = vpop.f32.mrb[130].mxu0  ;;  %v2606_v59 = vmul.f32 1.442695, %v2313_v37  ;;  %3706 = vmatprep.subr.bf16.mxu0 %v3579_v34  ;;  %v10684_v37 = vld [vmem:[#allocation64_spill] sm:$0xff] }
 0x424   : > { %10676 = vst [vmem:[#allocation224_spill] sm:$0xff] %v7955_v43  ;;  %10680 = vst [vmem:[#allocation74_spill] sm:$0xff] %v7962_v42  ;;  %v7964_v6 = vpop.eup %5731  ;;  %v2038_v29 = vpop.xlane.xlu0 %2037  ;;  %v3608_v45 = vpack.c.bf16 %v7860_v24, %v7955_v43  ;;  %5753 = vpow2.f32 %v2604_v15  ;;  %v10685_v34 = vmax.f32 %v7724_v16, %v7738_v33  ;;  %v10695_v16 = vmax.f32 %v7619_v1, %v7624_v40  ;;  %v10734_v40 = vld [vmem:[#allocation100_spill] sm:$0xff] }
 0x425   : > { %10681 = vst [vmem:[#allocation76_spill] sm:$0xff] %v7964_v6  ;;  %v7970_v44 = vpop.f32.mrb[131].mxu0  ;;  %v7972_v51 = vpop.eup %5733  ;;  %v2736_v62 = vmul.f32 1.442695, %v2378_v39  ;;  %v2738_v20 = vmul.f32 1.442695, %v2379_v21  ;;  %v2372_v26 = vsub.f32 %v10683_v38, %v2038_v29  ;;  %5755 = vpow2.f32 %v2606_v59 }
 0x426   : > { %10682 = vst [vmem:[#allocation225_spill] sm:$0xff] %v7970_v44  ;;  %v7975_v57 = vpop.eup %5735  ;;  %v2373_v5 = vsub.f32 %v10684_v37, %v2038_v29  ;;  %2232 = vmax.xlane.f32.xlu1 %v10685_v34  ;;  %v3609_v60 = vpack.c.bf16 %v7870_v48, %v7964_v6  ;;  %v1963_v24 = vpop.xlane.xlu1 %1962  ;;  %v10686_v21 = vld [vmem:[#allocation59_spill] sm:$0xff]  ;;  %v10687_v59 = vld [vmem:[#allocation61_spill] sm:$0xff]  ;;  %v10688_v29 = vmax.f32 %v7645_v49, %v7661_v25  ;;  %v10698_v6 = vld [vmem:[#allocation82_spill] sm:$0xff] }
 0x427   : > { %v7985_v39 = vpop.eup %5737  ;;  %5757 = vpow2.f32 %v2736_v62  ;;  %v2724_v38 = vmul.f32 1.442695, %v2372_v26  ;;  %v2322_v43 = vsub.f32 %v10686_v21, %v1963_v24  ;;  %v2323_v31 = vsub.f32 %v10687_v59, %v1963_v24  ;;  %v7992_v37 = vpop.f32.mrb[160].mxu1  ;;  %v10694_v25 = vld [vmem:[#allocation49_spill] sm:$0xff] }
 0x428   : > { %2151 = vmax.xlane.f32.xlu0 %v10688_v29  ;;  %10689 = vst [vmem:[#allocation62_spill] sm:$0xff] %v7992_v37  ;;  %v5740_v34 = vpop.eup %5739  ;;  %5759 = vpow2.f32 %v2738_v20  ;;  %v2726_v48 = vmul.f32 1.442695, %v2373_v5  ;;  %3747 = vmatprep.subr.bf16.mxu1 %v3609_v60  ;;  %v1954_v33 = vpop.xlane.xlu0 %1953  ;;  %v3580_v15 = vpack.c.bf16 %v7899_v19, %v7985_v39  ;;  %v8000_v26 = vadd.f32 %v7975_v57, %v7972_v51  ;;  %v10692_v60 = vld [vmem:[#allocation47_spill] sm:$0xff] }
 0x429   : > { %v7996_v62 = vpop.f32.mrb[161].mxu1  ;;  %v8002_v24 = vpop.eup %5741  ;;  %5761 = vpow2.f32 %v2724_v38  ;;  %v2624_v21 = vmul.f32 1.442695, %v2322_v43  ;;  %v2626_v59 = vmul.f32 1.442695, %v2323_v31  ;;  %v10691_v20 = vpack.c.bf16 %v7828_v8, %v7912_v28  ;;  %3748 = vmatpush1.bf16.xpose.msra.mxu1 %v3608_v45 }
 0x42a   : > { %10690 = vst [vmem:[#allocation64_spill] sm:$0xff] %v7996_v62  ;;  %v2316_v5 = vsub.f32 %v10692_v60, %v1954_v33  ;;  %v8008_v29 = vpop.f32.mrb[162].mxu1  ;;  %v8010_v19 = vpop.eup %5743  ;;  %5763 = vpow2.f32 %v2726_v48  ;;  %v2317_v49 = vsub.f32 %v10694_v25, %v1954_v33  ;;  %2148 = vmax.xlane.f32.xlu1 %v10695_v16  ;;  %v3581_v31 = vpack.c.bf16 %v7902_v12, %v5740_v34  ;;  %v10699_v48 = vld [vmem:[#allocation84_spill] sm:$0xff] }
 0x42b   : > { %3707 = vmatpush1.bf16.xpose.msra.mxu0 %v10691_v20  ;;  %10693 = vst [vmem:[#allocation59_spill] sm:$0xff] %v8008_v29  ;;  %v2053_v43 = vpop.xlane.xlu1 %2052  ;;  %v3092_v38 = vadd.f32 %v5740_v34, %v7985_v39  ;;  %v8018_v20 = vpop.f32.mrb[163].mxu1  ;;  %5765 = vpow2.f32 %v2624_v21  ;;  %v10700_v25 = vmax.f32 %v7848_v3, %v7856_v17 }
 0x42c   : > { %10696 = vst [vmem:[#allocation61_spill] sm:$0xff] %v8018_v20  ;;  %v8020_v45 = vpop.eup %5745  ;;  %v2612_v60 = vmul.f32 1.442695, %v2316_v5  ;;  %v2382_v8 = vsub.f32 %v10698_v6, %v2053_v43  ;;  %v2383_v28 = vsub.f32 %v10699_v48, %v2053_v43  ;;  %5767 = vpow2.f32 %v2626_v59  ;;  %3708 = vmatprep.subr.bf16.mxu0 %v3581_v31  ;;  %v2044_v33 = vpop.xlane.xlu0 %2043  ;;  %v10702_v43 = vld [vmem:[#allocation70_spill] sm:$0xff]  ;;  %v10703_v59 = vld [vmem:[#allocation72_spill] sm:$0xff] }
 0x42d   : > { %10697 = vst [vmem:[#allocation47_spill] sm:$0xff] %v8020_v45  ;;  %2241 = vmax.xlane.f32.xlu0 %v10700_v25  ;;  %v8027_v16 = vpop.eup %5747  ;;  %v2614_v12 = vmul.f32 1.442695, %v2317_v49  ;;  %v3610_v39 = vpack.c.bf16 %v7933_v4, %v8020_v45  ;;  %v2376_v48 = vsub.f32 %v10702_v43, %v2044_v33  ;;  %v2377_v49 = vsub.f32 %v10703_v59, %v2044_v33  ;;  %v10705_v43 = vld [vmem:[#allocation67_spill] sm:$0xff]  ;;  %v8050_v33 = vpop.f32.mrb[164].mxu1 }
 0x42e   : > { %10701 = vst [vmem:[#allocation49_spill] sm:$0xff] %v8027_v16  ;;  %v8033_v21 = vpop.eup %5749  ;;  %5769 = vpow2.f32 %v2612_v60  ;;  %v2744_v6 = vmul.f32 1.442695, %v2382_v8  ;;  %v2746_v5 = vmul.f32 1.442695, %v2383_v28  ;;  %v10704_v31 = vmax.f32 %v7795_v41, %v7809_v47  ;;  %10707 = vst [vmem:[#allocation82_spill] sm:$0xff] %v8050_v33 }
 0x42f   : > { %v8036_v25 = vpop.eup %5751  ;;  %5771 = vpow2.f32 %v2614_v12  ;;  %v3611_v4 = vpack.c.bf16 %v7943_v61, %v8027_v16  ;;  %v1969_v34 = vpop.xlane.xlu1 %1968  ;;  %v2732_v28 = vmul.f32 1.442695, %v2376_v48  ;;  %v10706_v12 = vld [vmem:[#allocation69_spill] sm:$0xff]  ;;  %v10714_v60 = vmax.f32 %v7679_v58, %v7687_v46  ;;  %v10717_v16 = vld [vmem:[#allocation92_spill] sm:$0xff] }
 0x430   : > { %2238 = vmax.xlane.f32.xlu1 %v10704_v31  ;;  %v8046_v8 = vpop.eup %5753  ;;  %5773 = vpow2.f32 %v2744_v6  ;;  %v2326_v17 = vsub.f32 %v10705_v43, %v1969_v34  ;;  %v2327_v45 = vsub.f32 %v10706_v12, %v1969_v34  ;;  %v2734_v31 = vmul.f32 1.442695, %v2377_v49  ;;  %v1960_v61 = vpop.xlane.xlu0 %1959  ;;  %v10710_v43 = vld [vmem:[#allocation55_spill] sm:$0xff] }
 0x431   : > { %3093 = vadd.xlane.f32.xlu0 %v3092_v38  ;;  %v5756_v59 = vpop.eup %5755  ;;  %5775 = vpow2.f32 %v2746_v5  ;;  %3749 = vmatprep.subr.bf16.mxu1 %v3611_v4  ;;  %v3582_v47 = vpack.c.bf16 %v7972_v51, %v8046_v8  ;;  %v8056_v6 = vpop.f32.mrb[165].mxu1  ;;  %v2320_v5 = vsub.f32 %v10710_v43, %v1960_v61  ;;  %v10713_v51 = vld [vmem:[#allocation57_spill] sm:$0xff]  ;;  %v10716_v43 = vld [vmem:[#allocation90_spill] sm:$0xff] }
 0x432   : > { %10708 = vst [vmem:[#allocation84_spill] sm:$0xff] %v8056_v6  ;;  %v8058_v48 = vpop.eup %5757  ;;  %5777 = vpow2.f32 %v2732_v28  ;;  %v2632_v34 = vmul.f32 1.442695, %v2326_v17  ;;  %v2634_v38 = vmul.f32 1.442695, %v2327_v45  ;;  %3750 = vmatpush1.bf16.xpose.msra.mxu1 %v3610_v39  ;;  %v8061_v49 = vpop.f32.mrb[166].mxu1  ;;  %v2321_v12 = vsub.f32 %v10713_v51, %v1960_v61 }
 0x433   : > { %10709 = vst [vmem:[#allocation70_spill] sm:$0xff] %v8058_v48  ;;  %3709 = vmatpush1.bf16.xpose.msra.mxu0 %v3580_v15  ;;  %10711 = vst [vmem:[#allocation72_spill] sm:$0xff] %v8061_v49  ;;  %v8063_v4 = vpop.eup %5759  ;;  %5779 = vpow2.f32 %v2734_v31  ;;  %v3583_v41 = vpack.c.bf16 %v7975_v57, %v5756_v59  ;;  %v2059_v28 = vpop.xlane.xlu1 %2058  ;;  %v8071_v17 = vadd.f32 %v5756_v59, %v8046_v8  ;;  %v2620_v39 = vmul.f32 1.442695, %v2320_v5 }
 0x434   : > { %10712 = vst [vmem:[#allocation67_spill] sm:$0xff] %v8063_v4  ;;  %2154 = vmax.xlane.f32.xlu1 %v10714_v60  ;;  %v8073_v15 = vpop.f32.mrb[167].mxu1  ;;  %v8075_v45 = vpop.eup %5761  ;;  %5781 = vpow2.f32 %v2632_v34  ;;  %v2386_v31 = vsub.f32 %v10716_v43, %v2059_v28  ;;  %v2387_v61 = vsub.f32 %v10717_v16, %v2059_v28  ;;  %v10718_v51 = vmax.f32 %v7708_v0, %v7726_v14  ;;  %v10719_v43 = vld [vmem:[#allocation78_spill] sm:$0xff] }
 0x435   : > { %10715 = vst [vmem:[#allocation69_spill] sm:$0xff] %v8073_v15  ;;  %v8082_v60 = vpop.eup %5763  ;;  %5783 = vpow2.f32 %v2634_v38  ;;  %v2622_v57 = vmul.f32 1.442695, %v2321_v12  ;;  %3710 = vmatprep.subr.bf16.mxu0 %v3583_v41  ;;  %v2050_v8 = vpop.xlane.xlu0 %2049  ;;  %v3612_v59 = vpack.c.bf16 %v8002_v24, %v8075_v45  ;;  %v10720_v38 = vld [vmem:[#allocation80_spill] sm:$0xff]  ;;  %v10721_v41 = vmax.f32 %v7866_v10, %v7880_v63 }
 0x436   : > { %2157 = vmax.xlane.f32.xlu0 %v10718_v51  ;;  %v8088_v5 = vpop.eup %5765  ;;  %5785 = vpow2.f32 %v2620_v39  ;;  %v2752_v16 = vmul.f32 1.442695, %v2386_v31  ;;  %v2754_v28 = vmul.f32 1.442695, %v2387_v61  ;;  %v2380_v14 = vsub.f32 %v10719_v43, %v2050_v8  ;;  %v10722_v43 = vld [vmem:[#allocation75_spill] sm:$0xff] }
 0x437   : > { %v8091_v51 = vpop.eup %5767  ;;  %5787 = vpow2.f32 %v2622_v57  ;;  %v2381_v12 = vsub.f32 %v10720_v38, %v2050_v8  ;;  %v3613_v0 = vpack.c.bf16 %v8010_v19, %v8082_v60  ;;  %v1975_v34 = vpop.xlane.xlu1 %1974  ;;  %v10723_v57 = vld [vmem:[#allocation77_spill] sm:$0xff]  ;;  %v10724_v8 = vmax.f32 %v7919_v13, %v7927_v35 }
 0x438   : > { %2244 = vmax.xlane.f32.xlu1 %v10721_v41  ;;  %v8101_v31 = vpop.eup %5769  ;;  %5789 = vpow2.f32 %v2752_v16  ;;  %v2740_v61 = vmul.f32 1.442695, %v2380_v14  ;;  %v2330_v46 = vsub.f32 %v10722_v43, %v1975_v34  ;;  %v2331_v58 = vsub.f32 %v10723_v57, %v1975_v34  ;;  %v8108_v38 = vpop.f32.mrb[168].mxu1  ;;  %v10730_v35 = vld [vmem:[#allocation65_spill] sm:$0xff] }
 0x439   : > { %10725 = vst [vmem:[#allocation55_spill] sm:$0xff] %v8108_v38  ;;  %v5772_v41 = vpop.eup %5771  ;;  %5791 = vpow2.f32 %v2754_v28  ;;  %v2742_v63 = vmul.f32 1.442695, %v2381_v12  ;;  %3751 = vmatprep.subr.bf16.mxu1 %v3613_v0  ;;  %v1966_v10 = vpop.xlane.xlu0 %1965  ;;  %v3584_v39 = vpack.c.bf16 %v8033_v21, %v8101_v31 }
 0x43a   : > { %2247 = vmax.xlane.f32.xlu0 %v10724_v8  ;;  %v8114_v16 = vpop.f32.mrb[169].mxu1  ;;  %v8116_v34 = vpop.eup %5773  ;;  %5793 = vpow2.f32 %v2740_v61  ;;  %v2640_v43 = vmul.f32 1.442695, %v2330_v46  ;;  %v2642_v57 = vmul.f32 1.442695, %v2331_v58  ;;  %3752 = vmatpush1.bf16.xpose.msra.mxu1 %v3612_v59  ;;  %v10728_v8 = vld [vmem:[#allocation63_spill] sm:$0xff]  ;;  %v2325_v13 = vsub.f32 %v10730_v35, %v1966_v10 }
 0x43b   : > { %10726 = vst [vmem:[#allocation57_spill] sm:$0xff] %v8114_v16  ;;  %10727 = vst [vmem:[#allocation90_spill] sm:$0xff] %v8116_v34  ;;  %3711 = vmatpush1.bf16.xpose.msra.mxu0 %v3582_v47  ;;  %v2324_v28 = vsub.f32 %v10728_v8, %v1966_v10  ;;  %v8119_v12 = vpop.f32.mrb[170].mxu1  ;;  %v8121_v0 = vpop.eup %5775  ;;  %5795 = vpow2.f32 %v2742_v63  ;;  %v3585_v14 = vpack.c.bf16 %v8036_v25, %v5772_v41  ;;  %v10733_v59 = vld [vmem:[#allocation98_spill] sm:$0xff] }
 0x43c   : > { %10729 = vst [vmem:[#allocation92_spill] sm:$0xff] %v8119_v12  ;;  %3096 = vadd.xlane.f32.xlu1 %v7931_v56  ;;  %v2065_v3 = vpop.xlane.xlu1 %2064  ;;  %v8127_v61 = vadd.f32 %v5772_v41, %v8101_v31  ;;  %v8129_v58 = vpop.f32.mrb[171].mxu1  ;;  %5797 = vpow2.f32 %v2640_v43  ;;  %v2630_v35 = vmul.f32 1.442695, %v2325_v13 }
 0x43d   : > { %10731 = vst [vmem:[#allocation78_spill] sm:$0xff] %v8129_v58  ;;  %v8131_v46 = vpop.eup %5777  ;;  %v2628_v47 = vmul.f32 1.442695, %v2324_v28  ;;  %v2390_v8 = vsub.f32 %v10733_v59, %v2065_v3  ;;  %v2391_v63 = vsub.f32 %v10734_v40, %v2065_v3  ;;  %5799 = vpow2.f32 %v2642_v57  ;;  %3712 = vmatprep.subr.bf16.mxu0 %v3585_v14  ;;  %v2056_v56 = vpop.xlane.xlu0 %2055  ;;  %v10735_v40 = vld [vmem:[#allocation86_spill] sm:$0xff]  ;;  %v10736_v57 = vld [vmem:[#allocation88_spill] sm:$0xff] }
 0x43e   : > { %10732 = vst [vmem:[#allocation80_spill] sm:$0xff] %v8131_v46  ;;  %3099 = vadd.xlane.f32.xlu0 %v8071_v17  ;;  %v8136_v10 = vpop.eup %5779  ;;  %v3614_v31 = vpack.c.bf16 %v8058_v48, %v8131_v46  ;;  %v2384_v3 = vsub.f32 %v10735_v40, %v2056_v56  ;;  %v2385_v13 = vsub.f32 %v10736_v57, %v2056_v56  ;;  %v10738_v40 = vld [vmem:[#allocation83_spill] sm:$0xff]  ;;  %v8162_v57 = vpop.f32.mrb[172].mxu1 }
 0x43f   : > { %v8142_v43 = vpop.eup %5781  ;;  %5801 = vpow2.f32 %v2628_v47  ;;  %v2760_v28 = vmul.f32 1.442695, %v2390_v8  ;;  %v2762_v59 = vmul.f32 1.442695, %v2391_v63  ;;  %v10737_v14 = vmax.f32 %v7747_v18, %v7755_v2  ;;  %10741 = vst [vmem:[#allocation75_spill] sm:$0xff] %v8162_v57 }
 0x440   : > { %v8145_v17 = vpop.eup %5783  ;;  %5803 = vpow2.f32 %v2630_v35  ;;  %v3615_v1 = vpack.c.bf16 %v8063_v4, %v8136_v10  ;;  %v1981_v41 = vpop.xlane.xlu1 %1980  ;;  %v2748_v63 = vmul.f32 1.442695, %v2384_v3  ;;  %v10739_v35 = vld [vmem:[#allocation85_spill] sm:$0xff]  ;;  %v10740_v56 = vmax.f32 %v7779_v36, %v7797_v27  ;;  %v10743_v27 = vld [vmem:[#allocation71_spill] sm:$0xff] }
 0x441   : > { %2160 = vmax.xlane.f32.xlu1 %v10737_v14  ;;  %v8155_v8 = vpop.eup %5785  ;;  %5805 = vpow2.f32 %v2760_v28  ;;  %v2334_v48 = vsub.f32 %v10738_v40, %v1981_v41  ;;  %v2335_v46 = vsub.f32 %v10739_v35, %v1981_v41  ;;  %v2750_v2 = vmul.f32 1.442695, %v2385_v13  ;;  %v1972_v47 = vpop.xlane.xlu0 %1971  ;;  %v10745_v36 = vld [vmem:[#allocation73_spill] sm:$0xff] }
 0x442   : > { %2163 = vmax.xlane.f32.xlu0 %v10740_v56  ;;  %v8164_v14 = vpop.eup %5787  ;;  %5807 = vpow2.f32 %v2762_v59  ;;  %3753 = vmatprep.subr.bf16.mxu1 %v3615_v1  ;;  %v3586_v28 = vpack.c.bf16 %v8088_v5, %v8155_v8  ;;  %v8170_v40 = vpop.f32.mrb[173].mxu1  ;;  %v2328_v59 = vsub.f32 %v10743_v27, %v1972_v47  ;;  %v2329_v18 = vsub.f32 %v10745_v36, %v1972_v47  ;;  %v10750_v47 = vld [vmem:[#allocation108_spill] sm:$0xff] }
 0x443   : > { %10742 = vst [vmem:[#allocation77_spill] sm:$0xff] %v8170_v40  ;;  %v8172_v41 = vpop.eup %5789  ;;  %5809 = vpow2.f32 %v2748_v63  ;;  %v2648_v35 = vmul.f32 1.442695, %v2334_v48  ;;  %v2650_v56 = vmul.f32 1.442695, %v2335_v46  ;;  %3713 = vmatpush1.bf16.xpose.msra.mxu0 %v3584_v39  ;;  %3754 = vmatpush1.bf16.xpose.msra.mxu1 %v3614_v31  ;;  %v8175_v13 = vpop.f32.mrb[174].mxu1  ;;  %v10746_v3 = vmax.f32 %v7939_v32, %v7953_v22 }
 0x444   : > { %10744 = vst [vmem:[#allocation63_spill] sm:$0xff] %v8175_v13  ;;  %v8177_v1 = vpop.eup %5791  ;;  %5811 = vpow2.f32 %v2750_v2  ;;  %v3587_v63 = vpack.c.bf16 %v8091_v51, %v8164_v14  ;;  %v2071_v48 = vpop.xlane.xlu1 %2070  ;;  %v8187_v39 = vadd.f32 %v8036_v25, %v8033_v21  ;;  %v2636_v2 = vmul.f32 1.442695, %v2328_v59  ;;  %v10749_v31 = vld [vmem:[#allocation106_spill] sm:$0xff]  ;;  %v10756_v40 = vld [vmem:[#allocation93_spill] sm:$0xff] }
 0x445   : > { %2250 = vmax.xlane.f32.xlu1 %v10746_v3  ;;  %v8189_v27 = vpop.f32.mrb[175].mxu1  ;;  %v8191_v46 = vpop.eup %5793  ;;  %5813 = vpow2.f32 %v2648_v35  ;;  %v2394_v36 = vsub.f32 %v10749_v31, %v2071_v48  ;;  %v2395_v4 = vsub.f32 %v10750_v47, %v2071_v48  ;;  %v10751_v3 = vmax.f32 %v7992_v37, %v7996_v62  ;;  %v10752_v31 = vld [vmem:[#allocation94_spill] sm:$0xff] }
 0x446   : > { %10747 = vst [vmem:[#allocation65_spill] sm:$0xff] %v8189_v27  ;;  %10748 = vst [vmem:[#allocation98_spill] sm:$0xff] %v8191_v46  ;;  %v8198_v22 = vpop.eup %5795  ;;  %5815 = vpow2.f32 %v2650_v56  ;;  %v2638_v32 = vmul.f32 1.442695, %v2329_v18  ;;  %3714 = vmatprep.subr.bf16.mxu0 %v3587_v63  ;;  %v2062_v21 = vpop.xlane.xlu0 %2061  ;;  %v3616_v25 = vpack.c.bf16 %v8116_v34, %v8191_v46  ;;  %v10754_v18 = vmax.f32 %v7818_v53, %v7826_v9 }
 0x447   : > { %2253 = vmax.xlane.f32.xlu0 %v10751_v3  ;;  %v8204_v59 = vpop.eup %5797  ;;  %5817 = vpow2.f32 %v2636_v2  ;;  %v2768_v48 = vmul.f32 1.442695, %v2394_v36  ;;  %v2388_v47 = vsub.f32 %v10752_v31, %v2062_v21  ;;  %v10753_v3 = vld [vmem:[#allocation96_spill] sm:$0xff]  ;;  %v3617_v63 = vpack.c.bf16 %v8121_v0, %v8198_v22  ;;  %v10755_v2 = vld [vmem:[#allocation91_spill] sm:$0xff] }
 0x448   : > { %v8207_v62 = vpop.eup %5799  ;;  %5819 = vpow2.f32 %v2638_v32  ;;  %v2389_v56 = vsub.f32 %v10753_v3, %v2062_v21  ;;  %v1987_v37 = vpop.xlane.xlu1 %1986  ;;  %v2770_v34 = vmul.f32 1.442695, %v2395_v4 }
 0x449   : > { %2166 = vmax.xlane.f32.xlu1 %v10754_v18  ;;  %v5802_v35 = vpop.eup %5801  ;;  %v2756_v46 = vmul.f32 1.442695, %v2388_v47  ;;  %v2338_v36 = vsub.f32 %v10755_v2, %v1987_v37  ;;  %v2339_v31 = vsub.f32 %v10756_v40, %v1987_v37  ;;  %5821 = vpow2.f32 %v2768_v48  ;;  %3755 = vmatprep.subr.bf16.mxu1 %v3617_v63  ;;  %v10758_v47 = vld [vmem:[#allocation79_spill] sm:$0xff] }
 0x44a   : > { %v5804_v32 = vpop.eup %5803  ;;  %v2758_v21 = vmul.f32 1.442695, %v2389_v56  ;;  %v1978_v3 = vpop.xlane.xlu0 %1977  ;;  %v3588_v18 = vpack.c.bf16 %v8142_v43, %v5802_v35  ;;  %v10761_v56 = vmax.f32 %v8008_v29, %v8018_v20  ;;  %v8233_v2 = vadd.f32 %v8164_v14, %v8155_v8  ;;  %v10763_v14 = vld [vmem:[#allocation115_spill] sm:$0xff] }
 0x44b   : > { %3102 = vadd.xlane.f32.xlu0 %v8000_v26  ;;  %v8221_v53 = vpop.eup %5805  ;;  %5823 = vpow2.f32 %v2756_v46  ;;  %v2656_v4 = vmul.f32 1.442695, %v2338_v36  ;;  %3715 = vmatpush1.bf16.xpose.msra.mxu0 %v3586_v28  ;;  %v2332_v37 = vsub.f32 %v10758_v47, %v1978_v3  ;;  %v10760_v26 = vld [vmem:[#allocation81_spill] sm:$0xff]  ;;  %v3589_v63 = vpack.c.bf16 %v8145_v17, %v5804_v32 }
 0x44c   : > { %10757 = vst [vmem:[#allocation100_spill] sm:$0xff] %v8221_v53  ;;  %3756 = vmatpush1.bf16.xpose.msra.mxu1 %v3616_v25  ;;  %v8224_v40 = vpop.eup %5807  ;;  %5825 = vpow2.f32 %v2758_v21  ;;  %v2333_v48 = vsub.f32 %v10760_v26, %v1978_v3  ;;  %v2658_v28 = vmul.f32 1.442695, %v2339_v31  ;;  %v2077_v36 = vpop.xlane.xlu1 %2076  ;;  %v8240_v21 = vadd.f32 %v8091_v51, %v8088_v5  ;;  %v10762_v26 = vld [vmem:[#allocation113_spill] sm:$0xff]  ;;  %v10764_v31 = vld [vmem:[#allocation102_spill] sm:$0xff] }
 0x44d   : > { %10759 = vst [vmem:[#allocation86_spill] sm:$0xff] %v8224_v40  ;;  %2256 = vmax.xlane.f32.xlu1 %v10761_v56  ;;  %v8235_v46 = vpop.eup %5809  ;;  %5827 = vpow2.f32 %v2770_v34  ;;  %v2644_v25 = vmul.f32 1.442695, %v2332_v37  ;;  %3716 = vmatprep.subr.bf16.mxu0 %v3589_v63  ;;  %v2398_v8 = vsub.f32 %v10762_v26, %v2077_v36  ;;  %v2399_v56 = vsub.f32 %v10763_v14, %v2077_v36 }
 0x44e   : > { %v8242_v3 = vpop.eup %5811  ;;  %5829 = vpow2.f32 %v2656_v4  ;;  %v2646_v47 = vmul.f32 1.442695, %v2333_v48  ;;  %v2068_v9 = vpop.xlane.xlu0 %2067  ;;  %v10766_v48 = vmax.f32 %v7889_v30, %v7897_v54  ;;  %v3618_v63 = vpack.c.bf16 %v8172_v41, %v8235_v46 }
 0x44f   : > { %3105 = vadd.xlane.f32.xlu0 %v8127_v61  ;;  %v8246_v34 = vpop.eup %5813  ;;  %5831 = vpow2.f32 %v2644_v25  ;;  %v2392_v37 = vsub.f32 %v10764_v31, %v2068_v9  ;;  %v10765_v61 = vld [vmem:[#allocation104_spill] sm:$0xff]  ;;  %v3619_v5 = vpack.c.bf16 %v8177_v1, %v8242_v3  ;;  %v2776_v4 = vmul.f32 1.442695, %v2398_v8 }
 0x450   : > { %v2393_v20 = vsub.f32 %v10765_v61, %v2068_v9  ;;  %v8252_v51 = vpop.eup %5815  ;;  %5833 = vpow2.f32 %v2646_v47  ;;  %v10768_v9 = vmax.f32 %v7850_v50, %v7868_v52  ;;  %v8266_v47 = vadd.f32 %v8082_v60, %v8075_v45  ;;  %v2083_v60 = vpop.xlane.xlu1 %2082  ;;  %v10812_v50 = vld [vmem:[#allocation197_spill] sm:$0xff] }
 0x451   : > { %2172 = vmax.xlane.f32.xlu1 %v10766_v48  ;;  %v8259_v36 = vpop.eup %5817  ;;  %v2764_v25 = vmul.f32 1.442695, %v2392_v37  ;;  %3757 = vmatprep.subr.bf16.mxu1 %v3619_v5  ;;  %v8268_v8 = vadd.f32 %v5804_v32, %v5802_v35  ;;  %5835 = vpow2.f32 %v2658_v28  ;;  %v2778_v31 = vmul.f32 1.442695, %v2399_v56  ;;  %v10771_v5 = vld [vmem:[#allocation89_spill] sm:$0xff] }
 0x452   : > { %10767 = vst [vmem:[#allocation88_spill] sm:$0xff] %v8259_v36  ;;  %v2766_v26 = vmul.f32 1.442695, %v2393_v20  ;;  %v8270_v14 = vpop.eup %5819  ;;  %v1984_v61 = vpop.xlane.xlu0 %1983  ;;  %5837 = vpow2.f32 %v2776_v4  ;;  %v10770_v20 = vld [vmem:[#allocation87_spill] sm:$0xff]  ;;  %v10772_v45 = vmax.f32 %v8061_v49, %v8073_v15  ;;  %v8283_v35 = vadd.f32 %v8145_v17, %v8142_v43  ;;  %v10774_v56 = vld [vmem:[#allocation121_spill] sm:$0xff]  ;;  %v10811_v49 = vld [vmem:[#allocation32_spill] sm:$0xff] }
 0x453   : > { %2169 = vmax.xlane.f32.xlu0 %v10768_v9  ;;  %10769 = vst [vmem:[#allocation83_spill] sm:$0xff] %v8270_v14  ;;  %3717 = vmatpush1.bf16.xpose.msra.mxu0 %v3588_v18  ;;  %v2336_v37 = vsub.f32 %v10770_v20, %v1984_v61  ;;  %v2337_v48 = vsub.f32 %v10771_v5, %v1984_v61  ;;  %v8276_v52 = vpop.eup %5821  ;;  %5839 = vpow2.f32 %v2764_v25  ;;  %v10777_v61 = vld [vmem:[#allocation123_spill] sm:$0xff] }
 0x454   : > { %3758 = vmatpush1.bf16.xpose.msra.mxu1 %v3618_v63  ;;  %v3591_v9 = vpack.c.bf16 %v8207_v62, %v8270_v14  ;;  %5841 = vpow2.f32 %v2766_v26  ;;  %v2402_v4 = vsub.f32 %v10774_v56, %v2083_v60  ;;  %v10775_v63 = vmax.f32 %v8050_v33, %v8056_v6  ;;  %v10831_v14 = vld [vmem:[#allocation163_spill] sm:$0xff] }
 0x455   : > { %2262 = vmax.xlane.f32.xlu1 %v10772_v45  ;;  %v8285_v32 = vpop.eup %5823  ;;  %v2652_v18 = vmul.f32 1.442695, %v2336_v37  ;;  %v2654_v28 = vmul.f32 1.442695, %v2337_v48  ;;  %5843 = vpow2.f32 %v2778_v31  ;;  %v2403_v20 = vsub.f32 %v10777_v61, %v2083_v60  ;;  %v10778_v37 = vld [vmem:[#allocation110_spill] sm:$0xff]  ;;  %v2089_v61 = vpop.xlane.xlu1 %2088 }
 0x456   : > { %10773 = vst [vmem:[#allocation85_spill] sm:$0xff] %v8285_v32  ;;  %3718 = vmatprep.subr.bf16.mxu0 %v3591_v9  ;;  %v8291_v25 = vpop.eup %5825  ;;  %v2074_v5 = vpop.xlane.xlu0 %2073  ;;  %v3620_v43 = vpack.c.bf16 %v8221_v53, %v8285_v32  ;;  %v2784_v26 = vmul.f32 1.442695, %v2402_v4  ;;  %v10779_v9 = vld [vmem:[#allocation112_spill] sm:$0xff]  ;;  %v10780_v31 = vmax.f32 %v7962_v42, %v7970_v44  ;;  %v8320_v33 = vadd.f32 %v8010_v19, %v8002_v24 }
 0x457   : > { %2259 = vmax.xlane.f32.xlu0 %v10775_v63  ;;  %10776 = vst [vmem:[#allocation71_spill] sm:$0xff] %v8291_v25  ;;  %v8296_v17 = vpop.eup %5827  ;;  %5845 = vpow2.f32 %v2652_v18  ;;  %v2396_v48 = vsub.f32 %v10778_v37, %v2074_v5  ;;  %v2397_v45 = vsub.f32 %v10779_v9, %v2074_v5  ;;  %v2786_v63 = vmul.f32 1.442695, %v2403_v20  ;;  %v10781_v9 = vld [vmem:[#allocation99_spill] sm:$0xff]  ;;  %v10782_v20 = vld [vmem:[#allocation101_spill] sm:$0xff] }
 0x458   : > { %v8300_v56 = vpop.eup %5829  ;;  %5847 = vpow2.f32 %v2654_v28  ;;  %v3621_v60 = vpack.c.bf16 %v8224_v40, %v8291_v25  ;;  %v3590_v18 = vpack.c.bf16 %v8204_v59, %v8259_v36  ;;  %v2406_v6 = vsub.f32 %v10781_v9, %v2089_v61 }
 0x459   : > { %2178 = vmax.xlane.f32.xlu1 %v10780_v31  ;;  %v8309_v4 = vpop.eup %5831  ;;  %5849 = vpow2.f32 %v2784_v26  ;;  %v2772_v37 = vmul.f32 1.442695, %v2396_v48  ;;  %v2774_v5 = vmul.f32 1.442695, %v2397_v45  ;;  %v2407_v31 = vsub.f32 %v10782_v20, %v2089_v61  ;;  %v10783_v48 = vld [vmem:[#allocation118_spill] sm:$0xff]  ;;  %v10784_v45 = vld [vmem:[#allocation120_spill] sm:$0xff]  ;;  %v2095_v19 = vpop.xlane.xlu1 %2094 }
 0x45a   : > { %v8313_v28 = vpop.eup %5833  ;;  %5851 = vpow2.f32 %v2786_v63  ;;  %3759 = vmatprep.subr.bf16.mxu1 %v3621_v60  ;;  %v2080_v44 = vpop.xlane.xlu0 %2079  ;;  %v3592_v42 = vpack.c.bf16 %v8246_v34, %v8309_v4  ;;  %v2792_v26 = vmul.f32 1.442695, %v2406_v6  ;;  %v10785_v61 = vmax.f32 %v8119_v12, %v8129_v58  ;;  %v10790_v58 = vld [vmem:[#allocation80_spill] sm:$0xff] }
 0x45b   : > { %3108 = vadd.xlane.f32.xlu0 %v8187_v39  ;;  %5853 = vpow2.f32 %v2772_v37  ;;  %3719 = vmatpush1.bf16.xpose.msra.mxu0 %v3590_v18  ;;  %v2400_v39 = vsub.f32 %v10783_v48, %v2080_v44  ;;  %v2401_v9 = vsub.f32 %v10784_v45, %v2080_v44  ;;  %v8324_v63 = vpop.eup %5835  ;;  %v2794_v60 = vmul.f32 1.442695, %v2407_v31  ;;  %v10786_v18 = vld [vmem:[#allocation107_spill] sm:$0xff]  ;;  %v10789_v31 = vld [vmem:[#allocation109_spill] sm:$0xff] }
 0x45c   : > { %3760 = vmatpush1.bf16.xpose.msra.mxu1 %v3620_v43  ;;  %5855 = vpow2.f32 %v2774_v5  ;;  %v3593_v24 = vpack.c.bf16 %v8252_v51, %v8313_v28  ;;  %v8331_v37 = vpop.eup %5837  ;;  %v2410_v20 = vsub.f32 %v10786_v18, %v2095_v19  ;;  %v10787_v44 = vmax.f32 %v7921_v7, %v7941_v23  ;;  %v10792_v18 = vld [vmem:[#allocation95_spill] sm:$0xff]  ;;  %v10793_v23 = vld [vmem:[#allocation97_spill] sm:$0xff] }
 0x45d   : > { %2268 = vmax.xlane.f32.xlu1 %v10785_v61  ;;  %5857 = vpow2.f32 %v2792_v26  ;;  %v2780_v6 = vmul.f32 1.442695, %v2400_v39  ;;  %v2782_v43 = vmul.f32 1.442695, %v2401_v9  ;;  %v8337_v5 = vpop.eup %5839  ;;  %v2411_v48 = vsub.f32 %v10789_v31, %v2095_v19 }
 0x45e   : > { %10788 = vst [vmem:[#allocation73_spill] sm:$0xff] %v8337_v5  ;;  %5859 = vpow2.f32 %v2794_v60  ;;  %3720 = vmatprep.subr.bf16.mxu0 %v3593_v24  ;;  %v2086_v45 = vpop.xlane.xlu0 %2085  ;;  %v3062_v61 = vadd.f32 %v7647_v55, %v7636_v11  ;;  %v8344_v26 = vadd.f32 %v8136_v10, %v10790_v58  ;;  %v8346_v39 = vpop.eup %5841  ;;  %v2800_v9 = vmul.f32 1.442695, %v2410_v20  ;;  %v10794_v20 = vld [vmem:[#allocation130_spill] sm:$0xff] }
 0x45f   : > { %2175 = vmax.xlane.f32.xlu0 %v10787_v44  ;;  %10791 = vst [vmem:[#allocation106_spill] sm:$0xff] %v8346_v39  ;;  %5861 = vpow2.f32 %v2780_v6  ;;  %v2404_v44 = vsub.f32 %v10792_v18, %v2086_v45  ;;  %v2405_v7 = vsub.f32 %v10793_v23, %v2086_v45  ;;  %v8350_v60 = vpop.eup %5843  ;;  %v2802_v24 = vmul.f32 1.442695, %v2411_v48  ;;  %v2185_v55 = vpop.xlane.xlu1 %2184  ;;  %v10796_v48 = vld [vmem:[#allocation132_spill] sm:$0xff] }
 0x460   : > { %5863 = vpow2.f32 %v2782_v43  ;;  %v3623_v11 = vpack.c.bf16 %v8296_v17, %v8346_v39  ;;  %v3622_v58 = vpack.c.bf16 %v8276_v52, %v8337_v5  ;;  %v2470_v31 = vsub.f32 %v10794_v20, %v2185_v55  ;;  %v10799_v20 = vld [vmem:[#allocation105_spill] sm:$0xff] }
 0x461   : > { %3063 = vadd.xlane.f32.xlu1 %v3062_v61  ;;  %v8356_v10 = vpop.eup %5845  ;;  %5865 = vpow2.f32 %v2800_v9  ;;  %v2788_v19 = vmul.f32 1.442695, %v2404_v44  ;;  %v2790_v6 = vmul.f32 1.442695, %v2405_v7  ;;  %v10795_v23 = vmax.f32 %v8108_v38, %v8114_v16  ;;  %v10798_v9 = vld [vmem:[#allocation103_spill] sm:$0xff]  ;;  %v10833_v39 = vld [vmem:[#allocation145_spill] sm:$0xff] }
 0x462   : > { %v8362_v43 = vpop.eup %5847  ;;  %5867 = vpow2.f32 %v2802_v24  ;;  %3761 = vmatprep.subr.bf16.mxu1 %v3623_v11  ;;  %v2471_v45 = vsub.f32 %v10796_v48, %v2185_v55  ;;  %v2092_v61 = vpop.xlane.xlu0 %2091  ;;  %v3594_v18 = vpack.c.bf16 %v8300_v56, %v8356_v10  ;;  %v2920_v7 = vmul.f32 1.442695, %v2470_v31  ;;  %v10803_v31 = vld [vmem:[#allocation67_spill] sm:$0xff] }
 0x463   : > { %2265 = vmax.xlane.f32.xlu0 %v10795_v23  ;;  %v8367_v12 = vpop.eup %5849  ;;  %5869 = vpow2.f32 %v2788_v19  ;;  %3721 = vmatpush1.bf16.xpose.msra.mxu0 %v3592_v42  ;;  %v2408_v44 = vsub.f32 %v10798_v9, %v2092_v61  ;;  %v2409_v23 = vsub.f32 %v10799_v20, %v2092_v61  ;;  %v10801_v11 = vmax.f32 %v8175_v13, %v8189_v27  ;;  %v2101_v48 = vpop.xlane.xlu1 %2100  ;;  %v10802_v19 = vld [vmem:[#allocation70_spill] sm:$0xff]  ;;  %v10804_v20 = vld [vmem:[#allocation116_spill] sm:$0xff] }
 0x464   : > { %10797 = vst [vmem:[#allocation108_spill] sm:$0xff] %v8367_v12  ;;  %3762 = vmatpush1.bf16.xpose.msra.mxu1 %v3622_v58  ;;  %v8371_v16 = vpop.eup %5851  ;;  %5871 = vpow2.f32 %v2790_v6  ;;  %v2922_v24 = vmul.f32 1.442695, %v2471_v45  ;;  %v3595_v55 = vpack.c.bf16 %v8324_v63, %v8362_v43  ;;  %v8380_v42 = vadd.f32 %v10803_v31, %v10802_v19 }
 0x465   : > { %10800 = vst [vmem:[#allocation94_spill] sm:$0xff] %v8371_v16  ;;  %2274 = vmax.xlane.f32.xlu1 %v10801_v11  ;;  %v8382_v58 = vpop.eup %5853  ;;  %5873 = vpow2.f32 %v2920_v7  ;;  %v2796_v61 = vmul.f32 1.442695, %v2408_v44  ;;  %v2798_v9 = vmul.f32 1.442695, %v2409_v23  ;;  %v2414_v6 = vsub.f32 %v10804_v20, %v2101_v48  ;;  %v10805_v11 = vld [vmem:[#allocation117_spill] sm:$0xff] }
 0x466   : > { %v8386_v45 = vpop.eup %5855  ;;  %5875 = vpow2.f32 %v2922_v24  ;;  %3722 = vmatprep.subr.bf16.mxu0 %v3595_v55  ;;  %v2415_v27 = vsub.f32 %v10805_v11, %v2101_v48  ;;  %v2182_v13 = vpop.xlane.xlu0 %2181  ;;  %v3624_v19 = vpack.c.bf16 %v8331_v37, %v8382_v58  ;;  %v3992_v31 = vlaneseq  ;;  %v10807_v44 = vld [vmem:[#allocation126_spill] sm:$0xff]  ;;  %v10808_v20 = vld [vmem:[#allocation128_spill] sm:$0xff]  ;;  %v10810_v55 = vld [vmem:[#allocation185_spill] sm:$0xff] }
 0x467   : > { %3111 = vadd.xlane.f32.xlu0 %v8233_v2  ;;  %v8391_v38 = vpop.eup %5857  ;;  %5877 = vpow2.f32 %v2796_v61  ;;  %v2808_v7 = vmul.f32 1.442695, %v2414_v6  ;;  %v2468_v23 = vsub.f32 %v10807_v44, %v2182_v13  ;;  %v2469_v15 = vsub.f32 %v10808_v20, %v2182_v13  ;;  %v2191_v11 = vpop.xlane.xlu1 %2190  ;;  %v10813_v44 = vld [vmem:[#allocation138_spill] sm:$0xff]  ;;  %v10814_v20 = vld [vmem:[#allocation77_spill] sm:$0xff] }
 0x468   : > { %10806 = vst [vmem:[#allocation96_spill] sm:$0xff] %v8391_v38  ;;  %v8395_v2 = vpop.eup %5859  ;;  %5879 = vpow2.f32 %v2798_v9  ;;  %v2810_v24 = vmul.f32 1.442695, %v2415_v27  ;;  %v3625_v48 = vpack.c.bf16 %v8350_v60, %v8386_v45  ;;  %v3068_v54 = vadd.f32 %v10812_v50, %v10811_v49 }
 0x469   : > { %10809 = vst [vmem:[#allocation91_spill] sm:$0xff] %v8395_v2  ;;  %3066 = vadd.xlane.f32.xlu1 %v10810_v55  ;;  %v8402_v30 = vpop.eup %5861  ;;  %5881 = vpow2.f32 %v2808_v7  ;;  %v2916_v61 = vmul.f32 1.442695, %v2468_v23  ;;  %v2918_v6 = vmul.f32 1.442695, %v2469_v15  ;;  %v2474_v13 = vsub.f32 %v10813_v44, %v2191_v11  ;;  %v10816_v55 = vld [vmem:[#allocation140_spill] sm:$0xff] }
 0x46a   : > { %v10815_v9 = vmax.f32 %v8162_v57, %v10814_v20  ;;  %v8408_v27 = vpop.eup %5863  ;;  %5883 = vpow2.f32 %v2810_v24  ;;  %3763 = vmatprep.subr.bf16.mxu1 %v3625_v48  ;;  %v2475_v29 = vsub.f32 %v10816_v55, %v2191_v11  ;;  %v2098_v40 = vpop.xlane.xlu0 %2097  ;;  %v3626_v50 = vpack.c.bf16 %v8367_v12, %v8402_v30  ;;  %v10818_v23 = vld [vmem:[#allocation111_spill] sm:$0xff] }
 0x46b   : > { %v8413_v49 = vand.u32 127, %v3992_v31  ;;  %v8415_v7 = vpop.eup %5865  ;;  %5885 = vpow2.f32 %v2916_v61  ;;  %v2928_v15 = vmul.f32 1.442695, %v2474_v13  ;;  %3723 = vmatpush1.bf16.xpose.msra.mxu0 %v3594_v18  ;;  %v2412_v44 = vsub.f32 %v10818_v23, %v2098_v40  ;;  %v2107_v11 = vpop.xlane.xlu1 %2106 }
 0x46c   : > { %2271 = vmax.xlane.f32.xlu0 %v10815_v9  ;;  %3764 = vmatpush1.bf16.xpose.msra.mxu1 %v3624_v19  ;;  %v10819_v9 = vld [vmem:[#allocation114_spill] sm:$0xff]  ;;  %v8419_v24 = vpop.eup %5867  ;;  %5887 = vpow2.f32 %v2918_v6  ;;  %v3627_v48 = vpack.c.bf16 %v8371_v16, %v8408_v27  ;;  %v8423_v55 = vshrl.u32 %v3992_v31, 7  ;;  %v2930_v61 = vmul.f32 1.442695, %v2475_v29  ;;  %v10822_v19 = vld [vmem:[#allocation124_spill] sm:$0xff]  ;;  %v10835_v16 = vld [vmem:[#allocation5_spill] sm:$0xff] }
 0x46d   : > { %10817 = vst [vmem:[#allocation93_spill] sm:$0xff] %v8413_v49  ;;  %v2413_v20 = vsub.f32 %v10819_v9, %v2098_v40  ;;  %10820 = vst [vmem:[#allocation79_spill] sm:$0xff] %v8419_v24  ;;  %3069 = vadd.xlane.f32.xlu1 %v3068_v54  ;;  %v8425_v57 = vpop.eup %5869  ;;  %v2804_v13 = vmul.f32 1.442695, %v2412_v44  ;;  %v2418_v53 = vsub.f32 %v10822_v19, %v2107_v11  ;;  %5889 = vpow2.f32 %v2928_v15  ;;  %v10823_v54 = vld [vmem:[#allocation125_spill] sm:$0xff]  ;;  %v10824_v9 = vld [vmem:[#allocation98_spill] sm:$0xff] }
 0x46e   : > { %10821 = vst [vmem:[#allocation81_spill] sm:$0xff] %v8423_v55  ;;  %v8429_v40 = vpop.eup %5871  ;;  %3765 = vmatprep.subr.bf16.mxu1 %v3627_v48  ;;  %v2419_v6 = vsub.f32 %v10823_v54, %v2107_v11  ;;  %v2188_v23 = vpop.xlane.xlu0 %2187  ;;  %v3628_v31 = vpack.c.bf16 %v8391_v38, %v8425_v57  ;;  %v8436_v25 = vadd.f32 %v8198_v22, %v10824_v9  ;;  %v3998_v15 = vadd.s32 4294967288, %v8413_v49  ;;  %v10829_v22 = vld [vmem:[#allocation190_spill] sm:$0xff]  ;;  %v10830_v9 = vld [vmem:[#allocation25_spill] sm:$0xff] }
 0x46f   : > { %v2806_v18 = vmul.f32 1.442695, %v2413_v20  ;;  %v8438_v29 = vpop.eup %5873  ;;  %5891 = vpow2.f32 %v2804_v13  ;;  %v10826_v20 = vld [vmem:[#allocation134_spill] sm:$0xff]  ;;  %v3629_v11 = vpack.c.bf16 %v8395_v2, %v8429_v40  ;;  %v2197_v54 = vpop.xlane.xlu1 %2196  ;;  %v3071_v32 = vadd.f32 %v10830_v9, %v10829_v22  ;;  %v10832_v13 = vld [vmem:[#allocation167_spill] sm:$0xff] }
 0x470   : > { %3114 = vadd.xlane.f32.xlu0 %v8240_v21  ;;  %10825 = vst [vmem:[#allocation113_spill] sm:$0xff] %v8438_v29  ;;  %v2472_v44 = vsub.f32 %v10826_v20, %v2188_v23  ;;  %v10827_v21 = vld [vmem:[#allocation136_spill] sm:$0xff]  ;;  %v8443_v48 = vpop.eup %5875  ;;  %v3140_v36 = vadd.f32 %v10832_v13, %v10831_v14  ;;  %v2478_v5 = vsub.f32 %v10833_v39, %v2197_v54  ;;  %v10834_v2 = vld [vmem:[#allocation6_spill] sm:$0xff]  ;;  %v10837_v22 = vld [vmem:[#allocation147_spill] sm:$0xff]  ;;  %v4005_v13 = vadd.s32 4294967280, %v8413_v49 }
 0x471   : > { %v2473_v19 = vsub.f32 %v10827_v21, %v2188_v23  ;;  %10828 = vst [vmem:[#allocation115_spill] sm:$0xff] %v8443_v48  ;;  %5893 = vpow2.f32 %v2806_v18  ;;  %3189 = vadd.xlane.f32.xlu1 %v8266_v47  ;;  %v8452_v20 = vpop.eup %5877  ;;  %v2816_v23 = vmul.f32 1.442695, %v2418_v53  ;;  %v2818_v18 = vmul.f32 1.442695, %v2419_v6  ;;  %3778 = vmatprep.subr.bf16.mxu0 %v3629_v11 }
 0x472   : > { %v2924_v21 = vmul.f32 1.442695, %v2472_v44  ;;  %v8456_v47 = vpop.eup %5879  ;;  %5895 = vpow2.f32 %v2930_v61  ;;  %v10836_v12 = vpack.c.bf16 %v10834_v2, %v10835_v16  ;;  %v2479_v14 = vsub.f32 %v10837_v22, %v2197_v54  ;;  %v2104_v9 = vpop.xlane.xlu0 %2103  ;;  %v10840_v61 = vld [vmem:[#allocation122_spill] sm:$0xff] }
 0x473   : > { %v2926_v38 = vmul.f32 1.442695, %v2473_v19  ;;  %v3630_v53 = vpack.c.bf16 %v8415_v7, %v8452_v20  ;;  %v8464_v44 = vpop.eup %5881  ;;  %v2417_v6 = vsub.f32 %v10840_v61, %v2104_v9  ;;  %v8469_v19 = vsub.s32 %v3998_v15, %v8423_v55  ;;  %v10844_v2 = vld [vmem:[#allocation10_spill] sm:$0xff] }
 0x474   : > { %3117 = vadd.xlane.f32.xlu0 %v8268_v8  ;;  %3725 = vmatmul.mubr.bf16.vlgmr.msra.gmra.mrb[132].mxu0 %v10836_v12  ;;  %10838 = vst [vmem:[#allocation102_spill] sm:$0xff] %v8464_v44  ;;  %5897 = vpow2.f32 %v2924_v21  ;;  %v10839_v8 = vld [vmem:[#allocation119_spill] sm:$0xff]  ;;  %v8471_v16 = vpop.eup %5883  ;;  %v10843_v12 = vld [vmem:[#allocation12_spill] sm:$0xff]  ;;  %v3631_v54 = vpack.c.bf16 %v8419_v24, %v8456_v47  ;;  %v2936_v21 = vmul.f32 1.442695, %v2478_v5 }
 0x475   : > { %3766 = vmatpush1.bf16.xpose.msra.mxu1 %v3626_v50  ;;  %3779 = vmatpush1.bf16.xpose.msra.mxu0 %v3628_v31  ;;  %v2416_v39 = vsub.f32 %v10839_v8, %v2104_v9  ;;  %10841 = vst [vmem:[#allocation104_spill] sm:$0xff] %v8469_v19  ;;  %10842 = vst [vmem:[#allocation87_spill] sm:$0xff] %v8471_v16  ;;  %5899 = vpow2.f32 %v2926_v38  ;;  %v10845_v11 = vpack.c.bf16 %v10843_v12, %v10844_v2  ;;  %v3049_v50 = vpop.xlane.xlu1 %3048  ;;  %v8483_v15 = vpop.eup %5885  ;;  %v10847_v12 = vld [vmem:[#allocation90_spill] sm:$0xff]  ;;  %v10858_v24 = vld [vmem:[#allocation171_spill] sm:$0xff] }
 0x476   : > { %3072 = vadd.xlane.f32.xlu1 %v3071_v32  ;;  %v8480_v31 = vsub.s32 %v8413_v49, %v8423_v55  ;;  %5901 = vpow2.f32 %v2816_v23  ;;  %v2814_v22 = vmul.f32 1.442695, %v2417_v6  ;;  %v8486_v9 = vpop.eup %5887  ;;  %v2938_v32 = vmul.f32 1.442695, %v2479_v14  ;;  %3780 = vmatprep.subr.bf16.mxu0 %v3631_v54  ;;  %v2194_v8 = vpop.xlane.xlu0 %2193  ;;  %v10848_v23 = vld [vmem:[#allocation142_spill] sm:$0xff] }
 0x477   : > { %3810 = vmatprep.mubr.bf16.mxu0 %v10845_v11  ;;  %v2812_v38 = vmul.f32 1.442695, %v2416_v39  ;;  %5903 = vpow2.f32 %v2818_v18  ;;  %v3660_v61 = vpack.c.bf16 %v8438_v29, %v8483_v15  ;;  %v8492_v2 = vadd.f32 %v8121_v0, %v10847_v12  ;;  %v10849_v39 = vld [vmem:[#allocation144_spill] sm:$0xff]  ;;  %v8498_v11 = vpop.eup %5889 }
 0x478   : > { %10846 = vst [vmem:[#allocation89_spill] sm:$0xff] %v8480_v31  ;;  %3120 = vadd.xlane.f32.xlu0 %v8283_v35  ;;  %v2476_v5 = vsub.f32 %v10848_v23, %v2194_v8  ;;  %v2477_v6 = vsub.f32 %v10849_v39, %v2194_v8  ;;  %v3661_v35 = vpack.c.bf16 %v8443_v48, %v8486_v9  ;;  %10850 = vst [vmem:[#allocation121_spill] sm:$0xff] %v8498_v11  ;;  %v10851_v23 = vld [vmem:[#allocation131_spill] sm:$0xff]  ;;  %v10853_v39 = vld [vmem:[#allocation8_spill] sm:$0xff] }
 0x479   : > { %5905 = vpow2.f32 %v2812_v38  ;;  %v2113_v18 = vpop.xlane.xlu1 %2112  ;;  %v4012_v14 = vadd.s32 4294967272, %v8413_v49  ;;  %v8503_v54 = vadd.f32 %v8242_v3, %v8235_v46  ;;  %v8507_v0 = vadd.f32 %v8177_v1, %v8172_v41  ;;  %v8509_v38 = vpop.eup %5891  ;;  %v10854_v46 = vld [vmem:[#allocation7_spill] sm:$0xff]  ;;  %v10856_v48 = vld [vmem:[#allocation133_spill] sm:$0xff]  ;;  %v10857_v29 = vld [vmem:[#allocation168_spill] sm:$0xff] }
 0x47a   : > { %5907 = vpow2.f32 %v2814_v22  ;;  %3141 = vadd.xlane.f32.xlu1 %v3140_v36  ;;  %v2932_v8 = vmul.f32 1.442695, %v2476_v5  ;;  %v2934_v12 = vmul.f32 1.442695, %v2477_v6  ;;  %3821 = vmatprep.subr.bf16.mxu1 %v3661_v35  ;;  %v2422_v22 = vsub.f32 %v10851_v23, %v2113_v18  ;;  %v3046_v1 = vpop.xlane.xlu0 %3045  ;;  %v10862_v23 = vld [vmem:[#allocation14_spill] sm:$0xff] }
 0x47b   : > { %5909 = vpow2.f32 %v2936_v21  ;;  %v8513_v36 = vpop.eup %5893  ;;  %v10855_v3 = vpack.c.bf16 %v10853_v39, %v10854_v46  ;;  %v2423_v41 = vsub.f32 %v10856_v48, %v2113_v18  ;;  %v3143_v21 = vadd.f32 %v10858_v24, %v10857_v29  ;;  %v10861_v18 = vld [vmem:[#allocation16_spill] sm:$0xff]  ;;  %v10868_v46 = vld [vmem:[#allocation155_spill] sm:$0xff] }
 0x47c   : > { %3192 = vadd.xlane.f32.xlu0 %v8320_v33  ;;  %10852 = vst [vmem:[#allocation123_spill] sm:$0xff] %v8513_v36  ;;  %5911 = vpow2.f32 %v2938_v32  ;;  %v3632_v5 = vpack.c.bf16 %v8464_v44, %v8509_v38  ;;  %v2824_v6 = vmul.f32 1.442695, %v2422_v22  ;;  %v3633_v33 = vpack.c.bf16 %v8471_v16, %v8513_v36  ;;  %v8528_v35 = vpop.eup %5895 }
 0x47d   : > { %3768 = vmatmul.mubr.bf16.vlgmr.msra.gmra.mrb[176].mxu1 %v10855_v3  ;;  %5913 = vpow2.f32 %v2932_v8  ;;  %3781 = vmatpush1.bf16.xpose.msra.mxu0 %v3630_v53  ;;  %v8526_v32 = vsub.s32 %v4005_v13, %v8423_v55  ;;  %10860 = vst [vmem:[#allocation112_spill] sm:$0xff] %v8528_v35  ;;  %v2826_v48 = vmul.f32 1.442695, %v2423_v41  ;;  %v10863_v24 = vpack.c.bf16 %v10861_v18, %v10862_v23  ;;  %v2203_v29 = vpop.xlane.xlu1 %2202  ;;  %v10864_v8 = vld [vmem:[#allocation40_spill] sm:$0xff]  ;;  %v10865_v53 = vld [vmem:[#allocation205_spill] sm:$0xff] }
 0x47e   : > { %3822 = vmatpush1.bf16.xpose.msra.mxu1 %v3660_v61  ;;  %5915 = vpow2.f32 %v2934_v12  ;;  %3195 = vadd.xlane.f32.xlu1 %v8344_v26  ;;  %v3074_v61 = vadd.f32 %v10865_v53, %v10864_v8  ;;  %v8537_v22 = vsub.s32 %v4012_v14, %v8423_v55  ;;  %v8539_v39 = vpop.eup %5897  ;;  %v10867_v13 = vld [vmem:[#allocation153_spill] sm:$0xff]  ;;  %v2483_v3 = vsub.f32 %v10868_v46, %v2203_v29  ;;  %v2110_v26 = vpop.xlane.xlu0 %2109  ;;  %v10869_v14 = vld [vmem:[#allocation180_spill] sm:$0xff]  ;;  %v10873_v46 = vld [vmem:[#allocation127_spill] sm:$0xff] }
 0x47f   : > { %10859 = vst [vmem:[#allocation110_spill] sm:$0xff] %v8526_v32  ;;  %3853 = vmatprep.mubr.bf16.mxu1 %v10863_v24  ;;  %5917 = vrcp.f32 %v3049_v50  ;;  %3782 = vmatprep.subr.bf16.mxu0 %v3633_v33  ;;  %v2482_v12 = vsub.f32 %v10867_v13, %v2203_v29  ;;  %v4019_v41 = vadd.s32 4294967264, %v8413_v49  ;;  %v8544_v18 = vpop.eup %5899  ;;  %v3662_v23 = vpack.c.bf16 %v8498_v11, %v8539_v39  ;;  %v10870_v24 = vld [vmem:[#allocation183_spill] sm:$0xff]  ;;  %v10871_v53 = vld [vmem:[#allocation196_spill] sm:$0xff]  ;;  %v10872_v50 = vld [vmem:[#allocation30_spill] sm:$0xff] }
 0x480   : > { %10866 = vst [vmem:[#allocation99_spill] sm:$0xff] %v8537_v22  ;;  %3144 = vadd.xlane.f32.xlu0 %v3143_v21  ;;  %5919 = vpow2.f32 %v2824_v6  ;;  %v3146_v8 = vadd.f32 %v10870_v24, %v10869_v14  ;;  %v8552_v33 = vadd.f32 %v10872_v50, %v10871_v53  ;;  %v8554_v13 = vpop.eup %5901  ;;  %v2946_v29 = vmul.f32 1.442695, %v2483_v3  ;;  %v10874_v6 = vld [vmem:[#allocation129_spill] sm:$0xff]  ;;  %v10876_v50 = vld [vmem:[#allocation176_spill] sm:$0xff] }
 0x481   : > { %5921 = vrcp.f32 %v3046_v1  ;;  %v2944_v21 = vmul.f32 1.442695, %v2482_v12  ;;  %v2420_v16 = vsub.f32 %v10873_v46, %v2110_v26  ;;  %v8557_v44 = vpop.eup %5903  ;;  %v2421_v36 = vsub.f32 %v10874_v6, %v2110_v26  ;;  %v3052_v24 = vpop.xlane.xlu1 %3051  ;;  %v10875_v53 = vld [vmem:[#allocation173_spill] sm:$0xff]  ;;  %v10879_v3 = vld [vmem:[#allocation48_spill] sm:$0xff] }
 0x482   : > { %5923 = vpow2.f32 %v2826_v48  ;;  %3198 = vadd.xlane.f32.xlu1 %v8380_v42  ;;  %v3663_v14 = vpack.c.bf16 %v8528_v35, %v8544_v18  ;;  %v8565_v11 = vadd.f32 %v10876_v50, %v10875_v53  ;;  %v8570_v48 = vsub.s32 %v4019_v41, %v8423_v55  ;;  %v10880_v26 = vld [vmem:[#allocation213_spill] sm:$0xff]  ;;  %v2200_v53 = vpop.xlane.xlu0 %2199 }
 0x483   : > { %v8567_v1 = vpop.eup %5905  ;;  %5925 = vpow2.f32 %v2944_v21  ;;  %v2820_v12 = vmul.f32 1.442695, %v2420_v16  ;;  %v8574_v42 = vadd.f32 %v10880_v26, %v10879_v3  ;;  %v2822_v6 = vmul.f32 1.442695, %v2421_v36  ;;  %v10883_v3 = vld [vmem:[#allocation152_spill] sm:$0xff] }
 0x484   : > { %10877 = vst [vmem:[#allocation101_spill] sm:$0xff] %v8567_v1  ;;  %3075 = vadd.xlane.f32.xlu0 %v3074_v61  ;;  %10878 = vst [vmem:[#allocation118_spill] sm:$0xff] %v8570_v48  ;;  %v8576_v46 = vpop.eup %5907  ;;  %5927 = vpow2.f32 %v2946_v29  ;;  %3823 = vmatprep.subr.bf16.mxu1 %v3663_v14  ;;  %v3634_v50 = vpack.c.bf16 %v8554_v13, %v8567_v1  ;;  %v4026_v21 = vadd.s32 4294967256, %v8413_v49  ;;  %v10882_v61 = vld [vmem:[#allocation150_spill] sm:$0xff]  ;;  %v10885_v1 = vld [vmem:[#allocation191_spill] sm:$0xff] }
 0x485   : > { %v8581_v16 = vpop.eup %5909  ;;  %5929 = vpow2.f32 %v2820_v12  ;;  %3783 = vmatpush1.bf16.xpose.msra.mxu0 %v3632_v5  ;;  %v2480_v41 = vsub.f32 %v10882_v61, %v2200_v53  ;;  %v2481_v26 = vsub.f32 %v10883_v3, %v2200_v53  ;;  %v3635_v29 = vpack.c.bf16 %v8557_v44, %v8576_v46  ;;  %v3055_v14 = vpop.xlane.xlu1 %3054  ;;  %v10886_v49 = vld [vmem:[#allocation193_spill] sm:$0xff]  ;;  %v10887_v12 = vld [vmem:[#allocation194_spill] sm:$0xff]  ;;  %v10888_v5 = vld [vmem:[#allocation44_spill] sm:$0xff] }
 0x486   : > { %10881 = vst [vmem:[#allocation120_spill] sm:$0xff] %v8581_v16  ;;  %3824 = vmatpush1.bf16.xpose.msra.mxu1 %v3662_v23  ;;  %v8587_v36 = vpop.eup %5911  ;;  %5931 = vpow2.f32 %v2822_v6  ;;  %3201 = vadd.xlane.f32.xlu1 %v8436_v25  ;;  %v8592_v35 = vadd.f32 %v10886_v49, %v10885_v1  ;;  %v8596_v23 = vadd.f32 %v10888_v5, %v10887_v12  ;;  %v2116_v1 = vpop.xlane.xlu0 %2115  ;;  %v10895_v5 = vld [vmem:[#allocation204_spill] sm:$0xff] }
 0x487   : > { %10884 = vst [vmem:[#allocation107_spill] sm:$0xff] %v8587_v36  ;;  %v8600_v53 = vadd.f32 %v8207_v62, %v8204_v59  ;;  %v8602_v61 = vpop.eup %5913  ;;  %5933 = vrcp.f32 %v3052_v24  ;;  %v2940_v3 = vmul.f32 1.442695, %v2480_v41  ;;  %v2942_v6 = vmul.f32 1.442695, %v2481_v26  ;;  %3784 = vmatprep.subr.bf16.mxu0 %v3635_v29 }
 0x488   : > { %3147 = vadd.xlane.f32.xlu0 %v3146_v8  ;;  %v8606_v25 = vadd.f32 %v8313_v28, %v8309_v4  ;;  %v8608_v49 = vpop.eup %5915  ;;  %5935 = vrcp.f32 %v3055_v14  ;;  %v3664_v12 = vpack.c.bf16 %v8581_v16, %v8602_v61  ;;  %v8613_v62 = vsub.s32 %v4026_v21, %v8423_v55  ;;  %v10891_v8 = vld [vmem:[#allocation135_spill] sm:$0xff]  ;;  %v10892_v28 = vld [vmem:[#allocation137_spill] sm:$0xff]  ;;  %v10893_v14 = vld [vmem:[#allocation210_spill] sm:$0xff] }
 0x489   : > { %10889 = vst [vmem:[#allocation109_spill] sm:$0xff] %v8608_v49  ;;  %v8617_v59 = vadd.f32 %v8252_v51, %v8246_v34  ;;  %v5918_v24 = vpop.eup %5917  ;;  %5937 = vpow2.f32 %v2940_v3  ;;  %v2424_v4 = vsub.f32 %v10891_v8, %v2116_v1  ;;  %v2425_v41 = vsub.f32 %v10892_v28, %v2116_v1  ;;  %v2119_v21 = vpop.xlane.xlu1 %2118  ;;  %v10894_v34 = vld [vmem:[#allocation60_spill] sm:$0xff]  ;;  %v10896_v3 = vld [vmem:[#allocation38_spill] sm:$0xff] }
 0x48a   : > { %10890 = vst [vmem:[#allocation80_spill] sm:$0xff] %v8613_v62  ;;  %v3665_v26 = vpack.c.bf16 %v8587_v36, %v8608_v49  ;;  %v8623_v29 = vpop.eup %5919  ;;  %5939 = vpow2.f32 %v2942_v6  ;;  %3204 = vadd.xlane.f32.xlu1 %v8492_v2  ;;  %v8628_v51 = vadd.f32 %v10894_v34, %v10893_v14  ;;  %v8632_v16 = vadd.f32 %v10896_v3, %v10895_v5  ;;  %v10897_v6 = vld [vmem:[#allocation139_spill] sm:$0xff]  ;;  %v10898_v2 = vld [vmem:[#allocation141_spill] sm:$0xff]  ;;  %v2206_v3 = vpop.xlane.xlu0 %2205 }
 0x48b   : > { %v8636_v1 = vadd.f32 %v8296_v17, %v8276_v52  ;;  %v5922_v8 = vpop.eup %5921  ;;  %v2828_v28 = vmul.f32 1.442695, %v2424_v4  ;;  %v2830_v36 = vmul.f32 1.442695, %v2425_v41  ;;  %v2426_v55 = vsub.f32 %v10897_v6, %v2119_v21  ;;  %v10902_v6 = vld [vmem:[#allocation201_spill] sm:$0xff] }
 0x48c   : > { %3825 = vmatprep.subr.bf16.mxu1 %v3665_v26  ;;  %v2427_v49 = vsub.f32 %v10898_v2, %v2119_v21  ;;  %3078 = vadd.xlane.f32.xlu0 %v8552_v33  ;;  %v8641_v14 = vpop.eup %5923  ;;  %v4002_v34 = vrot.slane %v5918_v24, %v8469_v19  ;;  %v3997_v5 = vrot.slane %v5922_v8, %v8480_v31  ;;  %v10899_v26 = vld [vmem:[#allocation158_spill] sm:$0xff]  ;;  %v10931_v31 = vld [vmem:[#allocation184_spill] sm:$0xff] }
 0x48d   : > { %v8647_v52 = vadd.f32 %v8362_v43, %v8356_v10  ;;  %v8651_v17 = vadd.f32 %v8386_v45, %v8382_v58  ;;  %v8653_v4 = vpop.eup %5925  ;;  %5941 = vpow2.f32 %v2828_v28  ;;  %v2832_v41 = vmul.f32 1.442695, %v2426_v55  ;;  %3785 = vmatpush1.bf16.xpose.msra.mxu0 %v3634_v50  ;;  %v10900_v10 = vld [vmem:[#allocation160_spill] sm:$0xff]  ;;  %v2209_v58 = vpop.xlane.xlu1 %2208  ;;  %v10901_v45 = vld [vmem:[#allocation199_spill] sm:$0xff] }
 0x48e   : > { %v2834_v33 = vmul.f32 1.442695, %v2427_v49  ;;  %3826 = vmatpush1.bf16.xpose.msra.mxu1 %v3664_v12  ;;  %v2484_v24 = vsub.f32 %v10899_v26, %v2206_v3  ;;  %v8656_v21 = vpop.eup %5927  ;;  %v4004_v8 = vsel %vm4003_vm2, %v4002_v34, %v3997_v5  ;;  %5943 = vpow2.f32 %v2830_v36  ;;  %3207 = vadd.xlane.f32.xlu1 %v8503_v54  ;;  %v10903_v49 = vld [vmem:[#allocation161_spill] sm:$0xff]  ;;  %v10904_v28 = vld [vmem:[#allocation164_spill] sm:$0xff]  ;;  %v2122_v54 = vpop.xlane.xlu0 %2121 }
 0x48f   : > { %v2485_v43 = vsub.f32 %v10900_v10, %v2206_v3  ;;  %v8663_v2 = vadd.f32 %v10902_v6, %v10901_v45  ;;  %v8665_v55 = vpop.eup %5929  ;;  %5945 = vpow2.f32 %v2832_v41  ;;  %v2486_v12 = vsub.f32 %v10903_v49, %v2209_v58  ;;  %v10905_v45 = vld [vmem:[#allocation143_spill] sm:$0xff] }
 0x490   : > { %v2948_v50 = vmul.f32 1.442695, %v2484_v24  ;;  %v2487_v26 = vsub.f32 %v10904_v28, %v2209_v58  ;;  %3150 = vadd.xlane.f32.xlu0 %v8565_v11  ;;  %v8670_v36 = vpop.eup %5931  ;;  %5947 = vpow2.f32 %v2834_v33  ;;  %v3636_v5 = vpack.c.bf16 %v8623_v29, %v8665_v55  ;;  %v10906_v33 = vld [vmem:[#allocation146_spill] sm:$0xff] }
 0x491   : > { %v2950_v34 = vmul.f32 1.442695, %v2485_v43  ;;  %v8676_v3 = vadd.f32 %v8324_v63, %v8300_v56  ;;  %v5934_v41 = vpop.eup %5933  ;;  %v2952_v24 = vmul.f32 1.442695, %v2486_v12  ;;  %v2428_v58 = vsub.f32 %v10905_v45, %v2122_v54  ;;  %v3058_v28 = vpop.xlane.xlu1 %3057  ;;  %v10907_v12 = vld [vmem:[#allocation186_spill] sm:$0xff] }
 0x492   : > { %5949 = vpow2.f32 %v2948_v50  ;;  %v2954_v10 = vmul.f32 1.442695, %v2487_v26  ;;  %v5936_v6 = vpop.eup %5935  ;;  %v4009_v11 = vrot.slane %v5934_v41, %v8526_v32  ;;  %v2429_v43 = vsub.f32 %v10906_v33, %v2122_v54  ;;  %3210 = vadd.xlane.f32.xlu1 %v8507_v0  ;;  %v10908_v26 = vld [vmem:[#allocation189_spill] sm:$0xff]  ;;  %v2212_v54 = vpop.xlane.xlu0 %2211  ;;  %v10909_v33 = vld [vmem:[#allocation54_spill] sm:$0xff] }
 0x493   : > { %5951 = vpow2.f32 %v2950_v34  ;;  %v3637_v49 = vpack.c.bf16 %v8641_v14, %v8670_v36  ;;  %v8684_v56 = vpop.eup %5937  ;;  %v4016_v63 = vrot.slane %v5936_v6, %v8537_v22  ;;  %v2836_v50 = vmul.f32 1.442695, %v2428_v58  ;;  %v10910_v6 = vld [vmem:[#allocation53_spill] sm:$0xff]  ;;  %v10912_v22 = vld [vmem:[#allocation172_spill] sm:$0xff] }
 0x494   : > { %5953 = vpow2.f32 %v2952_v24  ;;  %3081 = vadd.xlane.f32.xlu0 %v8574_v42  ;;  %v8690_v41 = vadd.f32 %v10908_v26, %v10907_v12  ;;  %v8692_v34 = vpop.eup %5939  ;;  %v4011_v0 = vsel %vm4010_vm3, %v4009_v11, %v4004_v8  ;;  %v3666_v45 = vpack.c.bf16 %v8653_v4, %v8684_v56  ;;  %v10911_v12 = vld [vmem:[#allocation169_spill] sm:$0xff]  ;;  %v10913_v11 = vld [vmem:[#allocation202_spill] sm:$0xff] }
 0x495   : > { %5955 = vpow2.f32 %v2954_v10  ;;  %3786 = vmatprep.subr.bf16.mxu0 %v3637_v49  ;;  %v8699_v24 = vadd.f32 %v10910_v6, %v10909_v33  ;;  %v8702_v42 = vsel %vm4017_vm4, %v4016_v63, %v4011_v0  ;;  %v2838_v58 = vmul.f32 1.442695, %v2429_v43  ;;  %v3061_v10 = vpop.xlane.xlu1 %3060  ;;  %v10914_v49 = vld [vmem:[#allocation52_spill] sm:$0xff]  ;;  %v10916_v6 = vld [vmem:[#allocation46_spill] sm:$0xff] }
 0x496   : > { %3787 = vmatpush1.bf16.xpose.msra.mxu0 %v3636_v5  ;;  %v2488_v26 = vsub.f32 %v10911_v12, %v2212_v54  ;;  %v2489_v32 = vsub.f32 %v10912_v22, %v2212_v54  ;;  %5957 = vpow2.f32 %v2836_v50  ;;  %3162 = vadd.xlane.f32.xlu1 %v8592_v35  ;;  %v3667_v8 = vpack.c.bf16 %v8656_v21, %v8692_v34  ;;  %v2128_v0 = vpop.xlane.xlu0 %2127  ;;  %v10915_v54 = vld [vmem:[#allocation212_spill] sm:$0xff] }
 0x497   : > { %v8711_v33 = vadd.f32 %v10914_v49, %v10913_v11  ;;  %v8715_v63 = vadd.f32 %v8350_v60, %v8331_v37  ;;  %v8717_v5 = vpop.eup %5941  ;;  %5959 = vrcp.f32 %v3058_v28  ;;  %v8722_v35 = vadd.f32 %v8429_v40, %v8425_v57  ;;  %v10917_v60 = vld [vmem:[#allocation218_spill] sm:$0xff]  ;;  %v10918_v12 = vld [vmem:[#allocation68_spill] sm:$0xff]  ;;  %v10919_v57 = vld [vmem:[#allocation151_spill] sm:$0xff] }
 0x498   : > { %v2956_v43 = vmul.f32 1.442695, %v2488_v26  ;;  %v2958_v22 = vmul.f32 1.442695, %v2489_v32  ;;  %3153 = vadd.xlane.f32.xlu0 %v8596_v23  ;;  %v8724_v50 = vpop.eup %5943  ;;  %3827 = vmatprep.subr.bf16.mxu1 %v3667_v8  ;;  %5961 = vrcp.f32 %v3061_v10  ;;  %v8728_v37 = vadd.f32 %v10916_v6, %v10915_v54  ;;  %v10920_v26 = vld [vmem:[#allocation154_spill] sm:$0xff]  ;;  %v10921_v10 = vld [vmem:[#allocation108_spill] sm:$0xff] }
 0x499   : > { %v8732_v28 = vadd.f32 %v10918_v12, %v10917_v60  ;;  %v8736_v32 = vadd.f32 %v8408_v27, %v8402_v30  ;;  %v8738_v23 = vpop.eup %5945  ;;  %5963 = vpow2.f32 %v2838_v58  ;;  %3828 = vmatpush1.bf16.xpose.msra.mxu1 %v3666_v45  ;;  %v2432_v40 = vsub.f32 %v10919_v57, %v2128_v0  ;;  %v10922_v11 = vld [vmem:[#allocation94_spill] sm:$0xff]  ;;  %v10924_v27 = vld [vmem:[#allocation207_spill] sm:$0xff]  ;;  %v10925_v58 = vld [vmem:[#allocation209_spill] sm:$0xff] }
 0x49a   : > { %v2433_v8 = vsub.f32 %v10920_v26, %v2128_v0  ;;  %v8744_v49 = vadd.f32 %v10922_v11, %v10921_v10  ;;  %v8746_v54 = vpop.eup %5947  ;;  %5965 = vpow2.f32 %v2956_v43  ;;  %3165 = vadd.xlane.f32.xlu1 %v8628_v51  ;;  %v3638_v30 = vpack.c.bf16 %v8738_v23, %v8717_v5  ;;  %v2125_v43 = vpop.xlane.xlu1 %2124  ;;  %v10926_v26 = vld [vmem:[#allocation148_spill] sm:$0xff]  ;;  %v10927_v11 = vld [vmem:[#allocation149_spill] sm:$0xff] }
 0x49b   : > { %10923 = vst [vmem:[#allocation95_spill] sm:$0xff] %v8746_v54  ;;  %v8753_v45 = vadd.f32 %v10925_v58, %v10924_v27  ;;  %v8757_v0 = vadd.f32 %v8486_v9, %v8483_v15  ;;  %5967 = vpow2.f32 %v2958_v22  ;;  %v2844_v60 = vmul.f32 1.442695, %v2432_v40  ;;  %v2218_v58 = vpop.xlane.xlu0 %2217  ;;  %v10928_v9 = vld [vmem:[#allocation73_spill] sm:$0xff]  ;;  %v10929_v22 = vld [vmem:[#allocation106_spill] sm:$0xff] }
 0x49c   : > { %v8759_v6 = vpop.eup %5949  ;;  %v2846_v12 = vmul.f32 1.442695, %v2433_v8  ;;  %3084 = vadd.xlane.f32.xlu0 %v8632_v16  ;;  %v3639_v51 = vpack.c.bf16 %v8746_v54, %v8724_v50  ;;  %v2430_v10 = vsub.f32 %v10926_v26, %v2125_v43  ;;  %v2431_v27 = vsub.f32 %v10927_v11, %v2125_v43  ;;  %v10930_v16 = vld [vmem:[#allocation181_spill] sm:$0xff] }
 0x49d   : > { %v8764_v57 = vpop.eup %5951  ;;  %v8770_v15 = vadd.f32 %v8557_v44, %v8554_v13  ;;  %v8774_v40 = vadd.f32 %v10929_v22, %v10928_v9  ;;  %5969 = vpow2.f32 %v2844_v60  ;;  %v2492_v19 = vsub.f32 %v10930_v16, %v2218_v58 }
 0x49e   : > { %v8776_v8 = vpop.eup %5953  ;;  %3788 = vmatprep.subr.bf16.mxu0 %v3639_v51  ;;  %v2493_v54 = vsub.f32 %v10931_v31, %v2218_v58  ;;  %v8782_v43 = vadd.f32 %v8670_v36, %v8665_v55  ;;  %5971 = vpow2.f32 %v2846_v12  ;;  %v2840_v44 = vmul.f32 1.442695, %v2430_v10  ;;  %3168 = vadd.xlane.f32.xlu1 %v8663_v2  ;;  %v2215_v9 = vpop.xlane.xlu1 %2214  ;;  %v10933_v55 = vld [vmem:[#allocation96_spill] sm:$0xff]  ;;  %v10934_v36 = vld [vmem:[#allocation91_spill] sm:$0xff]  ;;  %v10936_v10 = vld [vmem:[#allocation177_spill] sm:$0xff] }
 0x49f   : > { %v8784_v26 = vpop.eup %5955  ;;  %v2842_v13 = vmul.f32 1.442695, %v2431_v27  ;;  %3789 = vmatpush1.bf16.xpose.msra.mxu0 %v3638_v30  ;;  %v3668_v60 = vpack.c.bf16 %v8776_v8, %v8759_v6  ;;  %v2964_v51 = vmul.f32 1.442695, %v2492_v19  ;;  %v8794_v58 = vadd.f32 %v10934_v36, %v10933_v55  ;;  %v10935_v30 = vld [vmem:[#allocation174_spill] sm:$0xff]  ;;  %v2134_v22 = vpop.xlane.xlu0 %2133 }
 0x4a0   : > { %10932 = vst [vmem:[#allocation97_spill] sm:$0xff] %v8782_v43  ;;  %v2966_v11 = vmul.f32 1.442695, %v2493_v54  ;;  %3156 = vadd.xlane.f32.xlu0 %v8690_v41  ;;  %v3669_v31 = vpack.c.bf16 %v8784_v26, %v8764_v57  ;;  %v8796_v12 = vpop.eup %5957  ;;  %5973 = vpow2.f32 %v2840_v44  ;;  %v2490_v2 = vsub.f32 %v10935_v30, %v2215_v9  ;;  %v10937_v54 = vld [vmem:[#allocation159_spill] sm:$0xff]  ;;  %v10938_v43 = vld [vmem:[#allocation162_spill] sm:$0xff] }
 0x4a1   : > { %v2491_v27 = vsub.f32 %v10936_v10, %v2215_v9  ;;  %v8802_v19 = vadd.f32 %v8641_v14, %v8623_v29  ;;  %v5960_v41 = vpop.eup %5959  ;;  %5975 = vpow2.f32 %v2842_v13  ;;  %v2436_v16 = vsub.f32 %v10937_v54, %v2134_v22 }
 0x4a2   : > { %3829 = vmatprep.subr.bf16.mxu1 %v3669_v31  ;;  %v2437_v55 = vsub.f32 %v10938_v43, %v2134_v22  ;;  %v8808_v36 = vadd.f32 %v8456_v47, %v8452_v20  ;;  %v5962_v44 = vpop.eup %5961  ;;  %v4023_v30 = vrot.slane %v5960_v41, %v8570_v48  ;;  %5977 = vpow2.f32 %v2964_v51  ;;  %3126 = vadd.xlane.f32.xlu1 %v8600_v53  ;;  %v2131_v31 = vpop.xlane.xlu1 %2130  ;;  %v10939_v51 = vld [vmem:[#allocation156_spill] sm:$0xff]  ;;  %v10942_v41 = vld [vmem:[#allocation27_spill] sm:$0xff] }
 0x4a3   : > { %v2960_v9 = vmul.f32 1.442695, %v2490_v2  ;;  %v2962_v10 = vmul.f32 1.442695, %v2491_v27  ;;  %3830 = vmatpush1.bf16.xpose.msra.mxu1 %v3668_v60  ;;  %v8812_v29 = vpop.eup %5963  ;;  %v4030_v14 = vrot.slane %v5962_v44, %v8613_v62  ;;  %5979 = vpow2.f32 %v2966_v11  ;;  %v10940_v2 = vld [vmem:[#allocation157_spill] sm:$0xff]  ;;  %v2224_v27 = vpop.xlane.xlu0 %2223 }
 0x4a4   : > { %v2852_v13 = vmul.f32 1.442695, %v2436_v16  ;;  %v2854_v43 = vmul.f32 1.442695, %v2437_v55  ;;  %3087 = vadd.xlane.f32.xlu0 %v8699_v24  ;;  %v8816_v20 = vpop.eup %5965  ;;  %v4025_v47 = vsel %vm4024_vm5, %v4023_v30, %v8702_v42  ;;  %v2434_v60 = vsub.f32 %v10939_v51, %v2131_v31  ;;  %v10943_v24 = vld [vmem:[#allocation23_spill] sm:$0xff]  ;;  %v10978_v62 = vld [vmem:[#allocation217_spill] sm:$0xff] }
 0x4a5   : > { %5981 = vpow2.f32 %v2960_v9  ;;  %v2435_v53 = vsub.f32 %v10940_v2, %v2131_v31  ;;  %v8822_v22 = vpop.eup %5967  ;;  %v8825_v11 = vsel %vm4031_vm6, %v4030_v14, %v4025_v47  ;;  %v2496_v54 = vsub.f32 %v10942_v41, %v2224_v27  ;;  %v10947_v2 = vld [vmem:[#allocation170_spill] sm:$0xff]  ;;  %v10949_v41 = vld [vmem:[#allocation113_spill] sm:$0xff] }
 0x4a6   : > { %10941 = vst [vmem:[#allocation130_spill] sm:$0xff] %v8825_v11  ;;  %5983 = vpow2.f32 %v2962_v10  ;;  %v2497_v16 = vsub.f32 %v10943_v24, %v2224_v27  ;;  %v2848_v55 = vmul.f32 1.442695, %v2434_v60  ;;  %3129 = vadd.xlane.f32.xlu1 %v8606_v25  ;;  %v8832_v42 = vadd.f32 %v8656_v21, %v8653_v4  ;;  %v2221_v31 = vpop.xlane.xlu1 %2220  ;;  %v10944_v10 = vld [vmem:[#allocation79_spill] sm:$0xff]  ;;  %v10946_v60 = vld [vmem:[#allocation17_spill] sm:$0xff] }
 0x4a7   : > { %5985 = vpow2.f32 %v2852_v13  ;;  %v2850_v44 = vmul.f32 1.442695, %v2435_v53  ;;  %v8834_v30 = vpop.eup %5969  ;;  %v2972_v9 = vmul.f32 1.442695, %v2496_v54  ;;  %v8839_v47 = vadd.f32 %v10944_v10, %v8415_v7  ;;  %v10945_v25 = vld [vmem:[#allocation187_spill] sm:$0xff]  ;;  %v2140_v21 = vpop.xlane.xlu0 %2139 }
 0x4a8   : > { %5987 = vpow2.f32 %v2854_v43  ;;  %v2974_v14 = vmul.f32 1.442695, %v2497_v16  ;;  %3159 = vadd.xlane.f32.xlu0 %v8711_v33  ;;  %v8841_v13 = vpop.eup %5971  ;;  %v2494_v51 = vsub.f32 %v10945_v25, %v2221_v31  ;;  %v2495_v4 = vsub.f32 %v10946_v60, %v2221_v31  ;;  %v10948_v33 = vld [vmem:[#allocation175_spill] sm:$0xff]  ;;  %v10952_v60 = vld [vmem:[#allocation166_spill] sm:$0xff] }
 0x4a9   : > { %5989 = vpow2.f32 %v2848_v55  ;;  %v8847_v43 = vadd.f32 %v8764_v57, %v8759_v6  ;;  %v2440_v53 = vsub.f32 %v10947_v2, %v2140_v21  ;;  %v2441_v27 = vsub.f32 %v10948_v33, %v2140_v21  ;;  %v10950_v7 = vld [vmem:[#allocation115_spill] sm:$0xff]  ;;  %v10953_v21 = vld [vmem:[#allocation28_spill] sm:$0xff] }
 0x4aa   : > { %5991 = vpow2.f32 %v2850_v44  ;;  %v8853_v54 = vadd.f32 %v10950_v7, %v10949_v41  ;;  %v8855_v24 = vpop.eup %5973  ;;  %v2968_v16 = vmul.f32 1.442695, %v2494_v51  ;;  %v2970_v55 = vmul.f32 1.442695, %v2495_v4  ;;  %3132 = vadd.xlane.f32.xlu1 %v8617_v59  ;;  %v2137_v10 = vpop.xlane.xlu1 %2136  ;;  %v10951_v51 = vld [vmem:[#allocation165_spill] sm:$0xff]  ;;  %v10955_v33 = vld [vmem:[#allocation123_spill] sm:$0xff] }
 0x4ab   : > { %5993 = vpow2.f32 %v2972_v9  ;;  %v8860_v6 = vadd.f32 %v8784_v26, %v8776_v8  ;;  %v8862_v57 = vpop.eup %5975  ;;  %v2860_v44 = vmul.f32 1.442695, %v2440_v53  ;;  %v2862_v31 = vmul.f32 1.442695, %v2441_v27  ;;  %v2230_v26 = vpop.xlane.xlu0 %2229 }
 0x4ac   : > { %5995 = vpow2.f32 %v2974_v14  ;;  %3090 = vadd.xlane.f32.xlu0 %v8728_v37  ;;  %v3640_v25 = vpack.c.bf16 %v8855_v24, %v8796_v12  ;;  %v8867_v9 = vpop.eup %5977  ;;  %v2438_v59 = vsub.f32 %v10951_v51, %v2137_v10  ;;  %v2439_v4 = vsub.f32 %v10952_v60, %v2137_v10  ;;  %v10954_v37 = vld [vmem:[#allocation198_spill] sm:$0xff] }
 0x4ad   : > { %5997 = vpow2.f32 %v2968_v16  ;;  %v3641_v8 = vpack.c.bf16 %v8862_v57, %v8812_v29  ;;  %v8873_v14 = vpop.eup %5979  ;;  %v2500_v2 = vsub.f32 %v10953_v21, %v2230_v26  ;;  %v2501_v53 = vsub.f32 %v10954_v37, %v2230_v26 }
 0x4ae   : > { %5999 = vpow2.f32 %v2970_v55  ;;  %v8879_v27 = vadd.f32 %v10955_v33, %v8509_v38  ;;  %v2856_v7 = vmul.f32 1.442695, %v2438_v59  ;;  %v2858_v16 = vmul.f32 1.442695, %v2439_v4  ;;  %3222 = vadd.xlane.f32.xlu1 %v8636_v1  ;;  %v2227_v26 = vpop.xlane.xlu1 %2226  ;;  %v10957_v59 = vld [vmem:[#allocation18_spill] sm:$0xff]  ;;  %v10958_v1 = vld [vmem:[#allocation19_spill] sm:$0xff] }
 0x4af   : > { %v5982_v41 = vpop.eup %5981  ;;  %6001 = vpow2.f32 %v2860_v44  ;;  %3790 = vmatprep.subr.bf16.mxu0 %v3641_v8  ;;  %v8884_v10 = vadd.f32 %v8822_v22, %v8816_v20  ;;  %v2980_v51 = vmul.f32 1.442695, %v2500_v2  ;;  %v2982_v60 = vmul.f32 1.442695, %v2501_v53  ;;  %v2146_v37 = vpop.xlane.xlu0 %2145  ;;  %v10960_v2 = vld [vmem:[#allocation188_spill] sm:$0xff] }
 0x4b0   : > { %v5984_v55 = vpop.eup %5983  ;;  %6003 = vpow2.f32 %v2862_v31  ;;  %3791 = vmatpush1.bf16.xpose.msra.mxu0 %v3640_v25  ;;  %3171 = vadd.xlane.f32.xlu0 %v8732_v28  ;;  %v3670_v38 = vpack.c.bf16 %v5982_v41, %v8816_v20  ;;  %v2498_v4 = vsub.f32 %v10957_v59, %v2227_v26  ;;  %v2499_v8 = vsub.f32 %v10958_v1, %v2227_v26  ;;  %v10959_v31 = vld [vmem:[#allocation182_spill] sm:$0xff] }
 0x4b1   : > { %10956 = vst [vmem:[#allocation132_spill] sm:$0xff] %v8884_v10  ;;  %v8888_v44 = vpop.eup %5985  ;;  %6005 = vpow2.f32 %v2856_v7  ;;  %v3671_v21 = vpack.c.bf16 %v5984_v55, %v8822_v22  ;;  %v2444_v25 = vsub.f32 %v10959_v31, %v2146_v37  ;;  %v2445_v53 = vsub.f32 %v10960_v2, %v2146_v37  ;;  %v10970_v2 = vld [vmem:[#allocation76_spill] sm:$0xff] }
 0x4b2   : > { %v8893_v33 = vpop.eup %5987  ;;  %6007 = vpow2.f32 %v2858_v16  ;;  %v8899_v28 = vadd.f32 %v8544_v18, %v8539_v39  ;;  %v2976_v7 = vmul.f32 1.442695, %v2498_v4  ;;  %v2978_v59 = vmul.f32 1.442695, %v2499_v8  ;;  %3135 = vadd.xlane.f32.xlu1 %v8647_v52  ;;  %v2143_v37 = vpop.xlane.xlu1 %2142  ;;  %v10965_v52 = vld [vmem:[#allocation179_spill] sm:$0xff]  ;;  %v10989_v10 = vld [vmem:[#allocation112_spill] sm:$0xff] }
 0x4b3   : > { %v8901_v20 = vpop.eup %5989  ;;  %6009 = vpow2.f32 %v2980_v51  ;;  %3831 = vmatprep.subr.bf16.mxu1 %v3671_v21  ;;  %v8904_v22 = vadd.f32 %v5984_v55, %v5982_v41  ;;  %v2868_v16 = vmul.f32 1.442695, %v2444_v25  ;;  %v2870_v1 = vmul.f32 1.442695, %v2445_v53  ;;  %v10964_v51 = vld [vmem:[#allocation178_spill] sm:$0xff]  ;;  %v10969_v25 = vld [vmem:[#allocation224_spill] sm:$0xff] }
 0x4b4   : > { %10961 = vst [vmem:[#allocation103_spill] sm:$0xff] %v8899_v28  ;;  %v8906_v26 = vpop.eup %5991  ;;  %6011 = vpow2.f32 %v2982_v60  ;;  %3832 = vmatpush1.bf16.xpose.msra.mxu1 %v3670_v38  ;;  %3174 = vadd.xlane.f32.xlu0 %v8753_v45  ;;  %v3642_v39 = vpack.c.bf16 %v8901_v20, %v8834_v30  ;;  %v2442_v4 = vsub.f32 %v10964_v51, %v2143_v37  ;;  %v2236_v60 = vpop.xlane.xlu0 %2235  ;;  %v10967_v38 = vld [vmem:[#allocation35_spill] sm:$0xff]  ;;  %v10968_v45 = vld [vmem:[#allocation206_spill] sm:$0xff]  ;;  %v10988_v28 = vld [vmem:[#allocation121_spill] sm:$0xff] }
 0x4b5   : > { %10962 = vst [vmem:[#allocation105_spill] sm:$0xff] %v8904_v22  ;;  %v8911_v18 = vpop.eup %5993  ;;  %6013 = vpow2.f32 %v2976_v7  ;;  %v2443_v41 = vsub.f32 %v10965_v52, %v2143_v37  ;;  %v3643_v55 = vpack.c.bf16 %v8906_v26, %v8841_v13  ;;  %v2504_v21 = vsub.f32 %v10967_v38, %v2236_v60 }
 0x4b6   : > { %10963 = vst [vmem:[#allocation70_spill] sm:$0xff] %v8911_v18  ;;  %v8917_v8 = vpop.eup %5995  ;;  %6015 = vpow2.f32 %v2978_v59  ;;  %v2505_v31 = vsub.f32 %v10968_v45, %v2236_v60  ;;  %v3176_v53 = vadd.f32 %v10970_v2, %v10969_v25  ;;  %v2864_v7 = vmul.f32 1.442695, %v2442_v4  ;;  %3225 = vadd.xlane.f32.xlu1 %v8651_v17  ;;  %v2233_v38 = vpop.xlane.xlu1 %2232 }
 0x4b7   : > { %10966 = vst [vmem:[#allocation67_spill] sm:$0xff] %v8917_v8  ;;  %v8923_v11 = vpop.eup %5997  ;;  %6017 = vpow2.f32 %v2868_v16  ;;  %v2866_v51 = vmul.f32 1.442695, %v2443_v41  ;;  %3792 = vmatprep.subr.bf16.mxu0 %v3643_v55  ;;  %v2988_v52 = vmul.f32 1.442695, %v2504_v21  ;;  %v10973_v16 = vld [vmem:[#allocation20_spill] sm:$0xff] }
 0x4b8   : > { %10971 = vst [vmem:[#allocation116_spill] sm:$0xff] %v8923_v11  ;;  %v8926_v37 = vpop.eup %5999  ;;  %6019 = vpow2.f32 %v2870_v1  ;;  %v2990_v59 = vmul.f32 1.442695, %v2505_v31  ;;  %3793 = vmatpush1.bf16.xpose.msra.mxu0 %v3642_v39  ;;  %3177 = vadd.xlane.f32.xlu0 %v3176_v53  ;;  %v3672_v60 = vpack.c.bf16 %v8923_v11, %v8867_v9  ;;  %v2502_v4 = vsub.f32 %v10973_v16, %v2233_v38  ;;  %v10974_v41 = vld [vmem:[#allocation21_spill] sm:$0xff]  ;;  %v2152_v25 = vpop.xlane.xlu0 %2151  ;;  %v10975_v39 = vld [vmem:[#allocation22_spill] sm:$0xff]  ;;  %v10976_v31 = vld [vmem:[#allocation192_spill] sm:$0xff] }
 0x4b9   : > { %10972 = vst [vmem:[#allocation117_spill] sm:$0xff] %v8926_v37  ;;  %v8930_v45 = vpop.eup %6001  ;;  %6021 = vpow2.f32 %v2864_v7  ;;  %v2503_v55 = vsub.f32 %v10974_v41, %v2233_v38  ;;  %v3673_v17 = vpack.c.bf16 %v8926_v37, %v8873_v14  ;;  %v2448_v21 = vsub.f32 %v10975_v39, %v2152_v25  ;;  %v10977_v53 = vld [vmem:[#allocation215_spill] sm:$0xff]  ;;  %v10979_v38 = vld [vmem:[#allocation102_spill] sm:$0xff] }
 0x4ba   : > { %v8936_v1 = vpop.eup %6003  ;;  %6023 = vpow2.f32 %v2866_v51  ;;  %v2449_v2 = vsub.f32 %v10976_v31, %v2152_v25  ;;  %v3179_v11 = vadd.f32 %v10978_v62, %v10977_v53  ;;  %v2984_v7 = vmul.f32 1.442695, %v2502_v4  ;;  %3138 = vadd.xlane.f32.xlu1 %v8676_v3  ;;  %v10980_v41 = vld [vmem:[#allocation87_spill] sm:$0xff]  ;;  %v2149_v25 = vpop.xlane.xlu1 %2148  ;;  %v10982_v4 = vld [vmem:[#allocation34_spill] sm:$0xff]  ;;  %v10983_v3 = vld [vmem:[#allocation36_spill] sm:$0xff] }
 0x4bb   : > { %v8942_v22 = vpop.eup %6005  ;;  %6025 = vpow2.f32 %v2988_v52  ;;  %v2986_v16 = vmul.f32 1.442695, %v2503_v55  ;;  %3833 = vmatprep.subr.bf16.mxu1 %v3673_v17  ;;  %v8947_v37 = vadd.f32 %v10980_v41, %v10979_v38  ;;  %v2876_v39 = vmul.f32 1.442695, %v2448_v21  ;;  %v10986_v21 = vld [vmem:[#allocation49_spill] sm:$0xff] }
 0x4bc   : > { %v8949_v51 = vpop.eup %6007  ;;  %6027 = vpow2.f32 %v2990_v59  ;;  %3834 = vmatpush1.bf16.xpose.msra.mxu1 %v3672_v60  ;;  %3180 = vadd.xlane.f32.xlu0 %v3179_v11  ;;  %v3644_v62 = vpack.c.bf16 %v8942_v22, %v8888_v44  ;;  %v2446_v55 = vsub.f32 %v10982_v4, %v2149_v25  ;;  %v2447_v17 = vsub.f32 %v10983_v3, %v2149_v25  ;;  %v2242_v53 = vpop.xlane.xlu0 %2241  ;;  %v10984_v59 = vld [vmem:[#allocation43_spill] sm:$0xff] }
 0x4bd   : > { %10981 = vst [vmem:[#allocation126_spill] sm:$0xff] %v8947_v37  ;;  %v8953_v52 = vpop.eup %6009  ;;  %6029 = vpow2.f32 %v2984_v7  ;;  %v3645_v31 = vpack.c.bf16 %v8949_v51, %v8893_v33  ;;  %v2508_v60 = vsub.f32 %v10984_v59, %v2242_v53  ;;  %v10985_v11 = vld [vmem:[#allocation47_spill] sm:$0xff]  ;;  %v8966_v37 = vadd.f32 %v8873_v14, %v8867_v9 }
 0x4be   : > { %v8959_v38 = vpop.eup %6011  ;;  %6031 = vpow2.f32 %v2986_v16  ;;  %v3182_v41 = vadd.f32 %v10986_v21, %v10985_v11  ;;  %v2878_v4 = vmul.f32 1.442695, %v2449_v2  ;;  %v2872_v25 = vmul.f32 1.442695, %v2446_v55  ;;  %3228 = vadd.xlane.f32.xlu1 %v8715_v63  ;;  %v10991_v11 = vld [vmem:[#allocation214_spill] sm:$0xff]  ;;  %v2239_v9 = vpop.xlane.xlu1 %2238  ;;  %v10992_v63 = vld [vmem:[#allocation24_spill] sm:$0xff] }
 0x4bf   : > { %v8968_v7 = vpop.eup %6013  ;;  %v2874_v3 = vmul.f32 1.442695, %v2447_v17  ;;  %3794 = vmatprep.subr.bf16.mxu0 %v3645_v31  ;;  %v8973_v16 = vadd.f32 %v10989_v10, %v10988_v28  ;;  %6033 = vpow2.f32 %v2876_v39  ;;  %v2509_v21 = vsub.f32 %v10991_v11, %v2242_v53  ;;  %v10993_v17 = vld [vmem:[#allocation26_spill] sm:$0xff]  ;;  %v10995_v53 = vld [vmem:[#allocation223_spill] sm:$0xff] }
 0x4c0   : > { %10987 = vst [vmem:[#allocation128_spill] sm:$0xff] %v8968_v7  ;;  %v8975_v59 = vpop.eup %6015  ;;  %v2996_v48 = vmul.f32 1.442695, %v2508_v60  ;;  %3795 = vmatpush1.bf16.xpose.msra.mxu0 %v3644_v62  ;;  %3183 = vadd.xlane.f32.xlu0 %v3182_v41  ;;  %v3674_v14 = vpack.c.bf16 %v8968_v7, %v8911_v18  ;;  %6035 = vpow2.f32 %v2872_v25  ;;  %v2506_v55 = vsub.f32 %v10992_v63, %v2239_v9  ;;  %v3094_v39 = vpop.xlane.xlu0 %3093  ;;  %v10994_v62 = vld [vmem:[#allocation221_spill] sm:$0xff] }
 0x4c1   : > { %10990 = vst [vmem:[#allocation185_spill] sm:$0xff] %v8975_v59  ;;  %v8980_v2 = vpop.eup %6017  ;;  %v2507_v10 = vsub.f32 %v10993_v17, %v2239_v9  ;;  %v3675_v28 = vpack.c.bf16 %v8975_v59, %v8917_v8  ;;  %6037 = vpow2.f32 %v2874_v3  ;;  %v3185_v60 = vadd.f32 %v10995_v53, %v10994_v62  ;;  %v10996_v9 = vld [vmem:[#allocation101_spill] sm:$0xff] }
 0x4c2   : > { %v8986_v31 = vpop.eup %6019  ;;  %v8992_v41 = vadd.f32 %v8893_v33, %v8888_v44  ;;  %6039 = vpow2.f32 %v2878_v4  ;;  %v2992_v25 = vmul.f32 1.442695, %v2506_v55  ;;  %3237 = vadd.xlane.f32.xlu1 %v8722_v35  ;;  %v8999_v17 = vadd.f32 %v8576_v46, %v10996_v9  ;;  %v2155_v62 = vpop.xlane.xlu1 %2154  ;;  %v10999_v35 = vld [vmem:[#allocation42_spill] sm:$0xff]  ;;  %v11000_v46 = vld [vmem:[#allocation195_spill] sm:$0xff] }
 0x4c3   : > { %v8994_v11 = vpop.eup %6021  ;;  %v2994_v63 = vmul.f32 1.442695, %v2507_v10  ;;  %3835 = vmatprep.subr.bf16.mxu1 %v3675_v28  ;;  %6041 = vpow2.f32 %v2996_v48  ;;  %v2998_v59 = vmul.f32 1.442695, %v2509_v21  ;;  %v9005_v33 = vadd.f32 %v8936_v1, %v8930_v45  ;;  %v11001_v28 = vld [vmem:[#allocation29_spill] sm:$0xff]  ;;  %v11003_v9 = vld [vmem:[#allocation83_spill] sm:$0xff] }
 0x4c4   : > { %10997 = vst [vmem:[#allocation32_spill] sm:$0xff] %v8999_v17  ;;  %v6024_v3 = vpop.eup %6023  ;;  %3836 = vmatpush1.bf16.xpose.msra.mxu1 %v3674_v14  ;;  %3186 = vadd.xlane.f32.xlu0 %v3185_v60  ;;  %v3646_v44 = vpack.c.bf16 %v8994_v11, %v8930_v45  ;;  %6043 = vpow2.f32 %v2992_v25  ;;  %v2450_v55 = vsub.f32 %v10999_v35, %v2155_v62  ;;  %v2158_v21 = vpop.xlane.xlu0 %2157  ;;  %v11002_v60 = vld [vmem:[#allocation88_spill] sm:$0xff] }
 0x4c5   : > { %10998 = vst [vmem:[#allocation197_spill] sm:$0xff] %v9005_v33  ;;  %v9007_v4 = vpop.eup %6025  ;;  %v2451_v10 = vsub.f32 %v11000_v46, %v2155_v62  ;;  %v3647_v48 = vpack.c.bf16 %v6024_v3, %v8936_v1  ;;  %6045 = vpow2.f32 %v2994_v63  ;;  %v2452_v53 = vsub.f32 %v11001_v28, %v2158_v21  ;;  %v11004_v25 = vld [vmem:[#allocation200_spill] sm:$0xff]  ;;  %v11005_v1 = vld [vmem:[#allocation109_spill] sm:$0xff] }
 0x4c6   : > { %v9012_v14 = vpop.eup %6027  ;;  %v3122_v7 = vadd.f32 %v11003_v9, %v11002_v60  ;;  %v2880_v8 = vmul.f32 1.442695, %v2450_v55  ;;  %v2453_v35 = vsub.f32 %v11004_v25, %v2158_v21  ;;  %3231 = vadd.xlane.f32.xlu1 %v8736_v32  ;;  %v9023_v62 = vadd.f32 %v11005_v1, %v8602_v61  ;;  %v2245_v28 = vpop.xlane.xlu1 %2244  ;;  %v11008_v21 = vld [vmem:[#allocation33_spill] sm:$0xff]  ;;  %v11011_v25 = vld [vmem:[#allocation71_spill] sm:$0xff] }
 0x4c7   : > { %v9017_v45 = vpop.eup %6029  ;;  %v2882_v18 = vmul.f32 1.442695, %v2451_v10  ;;  %3796 = vmatprep.subr.bf16.mxu0 %v3647_v48  ;;  %6047 = vpow2.f32 %v2998_v59  ;;  %v2884_v63 = vmul.f32 1.442695, %v2452_v53  ;;  %v11007_v10 = vld [vmem:[#allocation31_spill] sm:$0xff]  ;;  %v2511_v60 = vsub.f32 %v11008_v21, %v2245_v28  ;;  %v11009_v59 = vld [vmem:[#allocation56_spill] sm:$0xff] }
 0x4c8   : > { %11006 = vst [vmem:[#allocation138_spill] sm:$0xff] %v9023_v62  ;;  %v9025_v46 = vpop.eup %6031  ;;  %3797 = vmatpush1.bf16.xpose.msra.mxu0 %v3646_v44  ;;  %3123 = vadd.xlane.f32.xlu0 %v3122_v7  ;;  %v3676_v55 = vpack.c.bf16 %v9017_v45, %v8953_v52  ;;  %6049 = vpow2.f32 %v2880_v8  ;;  %v2510_v48 = vsub.f32 %v11007_v10, %v2245_v28  ;;  %v2248_v61 = vpop.xlane.xlu0 %2247  ;;  %v11010_v44 = vld [vmem:[#allocation85_spill] sm:$0xff]  ;;  %v2886_v10 = vmul.f32 1.442695, %v2453_v35 }
 0x4c9   : > { %v3677_v32 = vpack.c.bf16 %v9025_v46, %v8959_v38  ;;  %v9033_v9 = vpop.eup %6033  ;;  %6051 = vpow2.f32 %v2882_v18  ;;  %v2512_v53 = vsub.f32 %v11009_v59, %v2248_v61  ;;  %v3212_v7 = vadd.f32 %v11011_v25, %v11010_v44  ;;  %v11012_v18 = vld [vmem:[#allocation220_spill] sm:$0xff]  ;;  %v11015_v25 = vld [vmem:[#allocation95_spill] sm:$0xff] }
 0x4ca   : > { %v9040_v1 = vadd.f32 %v8959_v38, %v8953_v52  ;;  %v6036_v8 = vpop.eup %6035  ;;  %6053 = vrcp.f32 %v3094_v39  ;;  %v3000_v28 = vmul.f32 1.442695, %v2510_v48  ;;  %v3002_v21 = vmul.f32 1.442695, %v2511_v60  ;;  %3234 = vadd.xlane.f32.xlu1 %v8744_v49  ;;  %v3097_v17 = vpop.xlane.xlu1 %3096  ;;  %v11014_v48 = vld [vmem:[#allocation86_spill] sm:$0xff] }
 0x4cb   : > { %3837 = vmatprep.subr.bf16.mxu1 %v3677_v32  ;;  %v6038_v62 = vpop.eup %6037  ;;  %6055 = vpow2.f32 %v2884_v63  ;;  %v2513_v33 = vsub.f32 %v11012_v18, %v2248_v61  ;;  %v3004_v59 = vmul.f32 1.442695, %v2512_v53  ;;  %v3648_v44 = vpack.c.bf16 %v6036_v8, %v8980_v2  ;;  %v11013_v63 = vld [vmem:[#allocation100_spill] sm:$0xff] }
 0x4cc   : > { %3838 = vmatpush1.bf16.xpose.msra.mxu1 %v3676_v55  ;;  %3213 = vadd.xlane.f32.xlu0 %v3212_v7  ;;  %v9045_v52 = vpop.eup %6039  ;;  %6057 = vpow2.f32 %v3000_v28  ;;  %v3649_v38 = vpack.c.bf16 %v6038_v62, %v8986_v31  ;;  %v3100_v39 = vpop.xlane.xlu0 %3099  ;;  %v9049_v35 = vadd.f32 %v6024_v3, %v8994_v11  ;;  %v3215_v60 = vadd.f32 %v11014_v48, %v11013_v63 }
 0x4cd   : > { %v9051_v49 = vpop.eup %6041  ;;  %6059 = vpow2.f32 %v3002_v21  ;;  %v9057_v55 = vadd.f32 %v8692_v34, %v8684_v56  ;;  %v9062_v61 = vadd.f32 %v8986_v31, %v8980_v2  ;;  %v9066_v11 = vadd.f32 %v8724_v50, %v8717_v5  ;;  %v11016_v31 = vld [vmem:[#allocation50_spill] sm:$0xff]  ;;  %v11017_v50 = vld [vmem:[#allocation203_spill] sm:$0xff] }
 0x4ce   : > { %v6044_v32 = vpop.eup %6043  ;;  %6061 = vpow2.f32 %v2886_v10  ;;  %3798 = vmatprep.subr.bf16.mxu0 %v3649_v38  ;;  %3333 = vadd.xlane.f32.xlu1 %v8757_v0  ;;  %v9070_v3 = vadd.f32 %v9012_v14, %v9007_v4  ;;  %v3006_v56 = vmul.f32 1.442695, %v2513_v33  ;;  %v2161_v34 = vpop.xlane.xlu1 %2160  ;;  %v9075_v2 = vadd.f32 %v11015_v25, %v8738_v23  ;;  %v11018_v33 = vld [vmem:[#allocation37_spill] sm:$0xff] }
 0x4cf   : > { %v6046_v53 = vpop.eup %6045  ;;  %6063 = vpow2.f32 %v3004_v59  ;;  %v3678_v0 = vpack.c.bf16 %v6044_v32, %v9007_v4  ;;  %v2454_v5 = vsub.f32 %v11016_v31, %v2161_v34  ;;  %v2455_v7 = vsub.f32 %v11017_v50, %v2161_v34  ;;  %v11019_v59 = vld [vmem:[#allocation208_spill] sm:$0xff] }
 0x4d0   : > { %3799 = vmatpush1.bf16.xpose.msra.mxu0 %v3648_v44  ;;  %3216 = vadd.xlane.f32.xlu0 %v3215_v60  ;;  %6065 = vrcp.f32 %v3097_v17  ;;  %v3679_v10 = vpack.c.bf16 %v6046_v53, %v9012_v14  ;;  %v2164_v28 = vpop.xlane.xlu0 %2163  ;;  %v9087_v17 = vadd.f32 %v6038_v62, %v6036_v8  ;;  %v9091_v14 = vadd.f32 %v8812_v29, %v8796_v12  ;;  %v11021_v8 = vld [vmem:[#allocation41_spill] sm:$0xff]  ;;  %v11023_v50 = vld [vmem:[#allocation64_spill] sm:$0xff] }
 0x4d1   : > { %v9080_v21 = vpop.eup %6047  ;;  %6067 = vrcp.f32 %v3100_v39  ;;  %v2456_v18 = vsub.f32 %v11018_v33, %v2164_v28  ;;  %v2457_v44 = vsub.f32 %v11019_v59, %v2164_v28  ;;  %v2888_v38 = vmul.f32 1.442695, %v2454_v5  ;;  %v11024_v33 = vld [vmem:[#allocation97_spill] sm:$0xff] }
 0x4d2   : > { %v9084_v4 = vpop.eup %6049  ;;  %v2890_v23 = vmul.f32 1.442695, %v2455_v7  ;;  %3839 = vmatprep.subr.bf16.mxu1 %v3679_v10  ;;  %3258 = vadd.xlane.f32.xlu1 %v8770_v15  ;;  %6069 = vpow2.f32 %v3006_v56  ;;  %v2251_v60 = vpop.xlane.xlu1 %2250  ;;  %v11020_v15 = vld [vmem:[#allocation39_spill] sm:$0xff] }
 0x4d3   : > { %v9093_v63 = vpop.eup %6051  ;;  %v2892_v39 = vmul.f32 1.442695, %v2456_v18  ;;  %v2894_v48 = vmul.f32 1.442695, %v2457_v44  ;;  %v3650_v34 = vpack.c.bf16 %v9084_v4, %v9033_v9  ;;  %6071 = vpow2.f32 %v2888_v38 }
 0x4d4   : > { %3840 = vmatpush1.bf16.xpose.msra.mxu1 %v3678_v0  ;;  %3219 = vadd.xlane.f32.xlu0 %v8774_v40  ;;  %v6054_v25 = vpop.eup %6053  ;;  %v2514_v62 = vsub.f32 %v11020_v15, %v2251_v60  ;;  %v2515_v31 = vsub.f32 %v11021_v8, %v2251_v60  ;;  %v3651_v12 = vpack.c.bf16 %v9093_v63, %v9045_v52  ;;  %v2254_v29 = vpop.xlane.xlu0 %2253  ;;  %6073 = vpow2.f32 %v2890_v23  ;;  %v11022_v0 = vld [vmem:[#allocation62_spill] sm:$0xff]  ;;  %v11026_v8 = vld [vmem:[#allocation211_spill] sm:$0xff] }
 0x4d5   : > { %v9102_v56 = vpop.eup %6055  ;;  %v2516_v5 = vsub.f32 %v11022_v0, %v2254_v29  ;;  %v2517_v40 = vsub.f32 %v11023_v50, %v2254_v29  ;;  %6075 = vpow2.f32 %v2892_v39  ;;  %v9107_v18 = vadd.f32 %v6046_v53, %v6044_v32  ;;  %v11025_v39 = vld [vmem:[#allocation58_spill] sm:$0xff]  ;;  %v11027_v0 = vld [vmem:[#allocation89_spill] sm:$0xff] }
 0x4d6   : > { %v6058_v7 = vpop.eup %6057  ;;  %v3008_v10 = vmul.f32 1.442695, %v2514_v62  ;;  %v3010_v28 = vmul.f32 1.442695, %v2515_v31  ;;  %3800 = vmatprep.subr.bf16.mxu0 %v3651_v12  ;;  %3261 = vadd.xlane.f32.xlu1 %v11024_v33  ;;  %6077 = vpow2.f32 %v2894_v48  ;;  %v2167_v60 = vpop.xlane.xlu1 %2166  ;;  %v9120_v48 = vadd.f32 %v8862_v57, %v8855_v24  ;;  %v11028_v24 = vld [vmem:[#allocation104_spill] sm:$0xff]  ;;  %v11031_v33 = vld [vmem:[#allocation61_spill] sm:$0xff] }
 0x4d7   : > { %v6060_v59 = vpop.eup %6059  ;;  %v3012_v44 = vmul.f32 1.442695, %v2516_v5  ;;  %v3014_v38 = vmul.f32 1.442695, %v2517_v40  ;;  %v3680_v23 = vpack.c.bf16 %v6058_v7, %v9051_v49  ;;  %v2458_v62 = vsub.f32 %v11025_v39, %v2167_v60 }
 0x4d8   : > { %3801 = vmatpush1.bf16.xpose.msra.mxu0 %v3650_v34  ;;  %3240 = vadd.xlane.f32.xlu0 %v8794_v58  ;;  %v9111_v15 = vpop.eup %6061  ;;  %6079 = vpow2.f32 %v3008_v10  ;;  %v2459_v31 = vsub.f32 %v11026_v8, %v2167_v60  ;;  %v3681_v32 = vpack.c.bf16 %v6060_v59, %v9080_v21  ;;  %v3103_v53 = vpop.xlane.xlu0 %3102  ;;  %v9124_v58 = vadd.f32 %v9045_v52, %v9033_v9  ;;  %v11029_v52 = vld [vmem:[#allocation110_spill] sm:$0xff] }
 0x4d9   : > { %v9116_v12 = vpop.eup %6063  ;;  %6081 = vpow2.f32 %v3010_v28  ;;  %v9128_v34 = vadd.f32 %v8841_v13, %v8834_v30  ;;  %v4106_v5 = vrot.slane %v6054_v25, %v11027_v0  ;;  %v2896_v50 = vmul.f32 1.442695, %v2458_v62 }
 0x4da   : > { %v6066_v29 = vpop.eup %6065  ;;  %6083 = vpow2.f32 %v3012_v44  ;;  %v2898_v40 = vmul.f32 1.442695, %v2459_v31  ;;  %3841 = vmatprep.subr.bf16.mxu1 %v3681_v32  ;;  %3264 = vadd.xlane.f32.xlu1 %v8802_v19  ;;  %v2257_v9 = vpop.xlane.xlu1 %2256  ;;  %v9136_v30 = vadd.f32 %v9080_v21, %v9051_v49  ;;  %v9140_v13 = vadd.f32 %v8906_v26, %v8901_v20  ;;  %v11030_v19 = vld [vmem:[#allocation59_spill] sm:$0xff]  ;;  %v11032_v32 = vld [vmem:[#allocation66_spill] sm:$0xff] }
 0x4db   : > { %v6068_v10 = vpop.eup %6067  ;;  %v4110_v57 = vrot.slane %v6066_v29, %v11028_v24  ;;  %6085 = vpow2.f32 %v3014_v38  ;;  %v2518_v28 = vsub.f32 %v11030_v19, %v2257_v9  ;;  %v2519_v44 = vsub.f32 %v11031_v33, %v2257_v9  ;;  %v11033_v29 = vld [vmem:[#allocation219_spill] sm:$0xff] }
 0x4dc   : > { %3842 = vmatpush1.bf16.xpose.msra.mxu1 %v3680_v23  ;;  %3243 = vadd.xlane.f32.xlu0 %v8808_v36  ;;  %v4115_v25 = vrot.slane %v6068_v10, %v11029_v52  ;;  %6087 = vpow2.f32 %v2896_v50  ;;  %v3106_v38 = vpop.xlane.xlu0 %3105  ;;  %v6070_v60 = vpop.eup %6069  ;;  %v9148_v36 = vadd.f32 %v9093_v63, %v9084_v4  ;;  %v9158_v4 = vadd.f32 %v8949_v51, %v8942_v22 }
 0x4dd   : > { %v4111_v23 = vsel %vm4003_vm2, %v4110_v57, %v4106_v5  ;;  %6089 = vpow2.f32 %v2898_v40  ;;  %v6072_v49 = vpop.eup %6071  ;;  %v3016_v26 = vmul.f32 1.442695, %v2518_v28  ;;  %v3018_v21 = vmul.f32 1.442695, %v2519_v44  ;;  %v11035_v57 = vld [vmem:[#allocation216_spill] sm:$0xff] }
 0x4de   : > { %v9151_v20 = vsel %vm4010_vm3, %v4115_v25, %v4111_v23  ;;  %6091 = vrcp.f32 %v3103_v53  ;;  %3354 = vadd.xlane.f32.xlu1 %v8832_v42  ;;  %v6074_v39 = vpop.eup %6073  ;;  %v2173_v62 = vpop.xlane.xlu1 %2172  ;;  %v3652_v8 = vpack.c.bf16 %v6072_v49, %v9102_v56  ;;  %v9160_v63 = vadd.f32 %v6060_v59, %v6058_v7 }
 0x4df   : > { %6093 = vrcp.f32 %v3106_v38  ;;  %v9162_v31 = vpop.eup %6075  ;;  %v2462_v53 = vsub.f32 %v11032_v32, %v2173_v62  ;;  %v2463_v42 = vsub.f32 %v11033_v29, %v2173_v62  ;;  %v3653_v5 = vpack.c.bf16 %v6074_v39, %v9111_v15  ;;  %v11039_v29 = vld [vmem:[#allocation84_spill] sm:$0xff] }
 0x4e0   : > { %3246 = vadd.xlane.f32.xlu0 %v8839_v47  ;;  %6095 = vpow2.f32 %v3016_v26  ;;  %v2170_v50 = vpop.xlane.xlu0 %2169  ;;  %v6078_v40 = vpop.eup %6077  ;;  %v11034_v47 = vld [vmem:[#allocation45_spill] sm:$0xff]  ;;  %v9171_v22 = vadd.f32 %v9025_v46, %v9017_v45  ;;  %v9175_v25 = vadd.f32 %v6070_v60, %v9116_v12  ;;  %v9179_v19 = vadd.f32 %v9111_v15, %v9102_v56 }
 0x4e1   : > { %6097 = vpow2.f32 %v3018_v21  ;;  %v2460_v10 = vsub.f32 %v11034_v47, %v2170_v50  ;;  %v2461_v9 = vsub.f32 %v11035_v57, %v2170_v50  ;;  %v2904_v7 = vmul.f32 1.442695, %v2462_v53  ;;  %3802 = vmatprep.subr.bf16.mxu0 %v3653_v5  ;;  %v11037_v21 = vld [vmem:[#allocation69_spill] sm:$0xff]  ;;  %v11038_v53 = vld [vmem:[#allocation82_spill] sm:$0xff] }
 0x4e2   : > { %v6080_v51 = vpop.eup %6079  ;;  %v2906_v59 = vmul.f32 1.442695, %v2463_v42  ;;  %3357 = vadd.xlane.f32.xlu1 %v8847_v43  ;;  %3803 = vmatpush1.bf16.xpose.msra.mxu0 %v3652_v8  ;;  %v2263_v38 = vpop.xlane.xlu1 %2262  ;;  %v9183_v46 = vadd.f32 %v6074_v39, %v6072_v49  ;;  %v11036_v43 = vld [vmem:[#allocation72_spill] sm:$0xff]  ;;  %v9195_v5 = vadd.f32 %v6078_v40, %v9162_v31 }
 0x4e3   : > { %v6082_v28 = vpop.eup %6081  ;;  %v2900_v33 = vmul.f32 1.442695, %v2460_v10  ;;  %v2902_v44 = vmul.f32 1.442695, %v2461_v9  ;;  %v3682_v45 = vpack.c.bf16 %v6080_v51, %v9116_v12  ;;  %6099 = vpow2.f32 %v2904_v7 }
 0x4e4   : > { %3336 = vadd.xlane.f32.xlu0 %v8853_v54  ;;  %v9185_v23 = vpop.eup %6083  ;;  %v2522_v26 = vsub.f32 %v11036_v43, %v2263_v38  ;;  %v2523_v62 = vsub.f32 %v11037_v21, %v2263_v38  ;;  %v3683_v56 = vpack.c.bf16 %v6082_v28, %v6070_v60  ;;  %v2260_v15 = vpop.xlane.xlu0 %2259  ;;  %6101 = vpow2.f32 %v2906_v59  ;;  %v11041_v59 = vld [vmem:[#allocation225_spill] sm:$0xff]  ;;  %v11042_v43 = vld [vmem:[#allocation99_spill] sm:$0xff]  ;;  %v11043_v21 = vld [vmem:[#allocation118_spill] sm:$0xff] }
 0x4e5   : > { %v6086_v32 = vpop.eup %6085  ;;  %v2520_v8 = vsub.f32 %v11038_v53, %v2260_v15  ;;  %v2521_v42 = vsub.f32 %v11039_v29, %v2260_v15  ;;  %v9191_v54 = vadd.f32 %v6082_v28, %v6080_v51  ;;  %6103 = vpow2.f32 %v2900_v33  ;;  %v11040_v51 = vld [vmem:[#allocation74_spill] sm:$0xff] }
 0x4e6   : > { %v6088_v12 = vpop.eup %6087  ;;  %v3024_v49 = vmul.f32 1.442695, %v2522_v26  ;;  %v3026_v39 = vmul.f32 1.442695, %v2523_v62  ;;  %3843 = vmatprep.subr.bf16.mxu1 %v3683_v56  ;;  %3360 = vadd.xlane.f32.xlu1 %v8860_v6  ;;  %6105 = vpow2.f32 %v2902_v44  ;;  %v2179_v10 = vpop.xlane.xlu1 %2178  ;;  %v11044_v56 = vld [vmem:[#allocation132_spill] sm:$0xff] }
 0x4e7   : > { %v6090_v60 = vpop.eup %6089  ;;  %v3020_v50 = vmul.f32 1.442695, %v2520_v8  ;;  %v3022_v47 = vmul.f32 1.442695, %v2521_v42  ;;  %3844 = vmatpush1.bf16.xpose.msra.mxu1 %v3682_v45  ;;  %v3654_v57 = vpack.c.bf16 %v6088_v12, %v9162_v31  ;;  %v2466_v7 = vsub.f32 %v11040_v51, %v2179_v10  ;;  %v11045_v8 = vld [vmem:[#allocation103_spill] sm:$0xff] }
 0x4e8   : > { %3249 = vadd.xlane.f32.xlu0 %v8879_v27  ;;  %v6092_v9 = vpop.eup %6091  ;;  %6107 = vpow2.f32 %v3024_v49  ;;  %v2467_v28 = vsub.f32 %v11041_v59, %v2179_v10  ;;  %v3655_v6 = vpack.c.bf16 %v6090_v60, %v6078_v40  ;;  %v3109_v33 = vpop.xlane.xlu0 %3108  ;;  %v9202_v44 = vadd.f32 %v6090_v60, %v6088_v12  ;;  %v11046_v12 = vld [vmem:[#allocation92_spill] sm:$0xff] }
 0x4e9   : > { %v6094_v38 = vpop.eup %6093  ;;  %v4120_v26 = vrot.slane %v6092_v9, %v11042_v43  ;;  %6109 = vpow2.f32 %v3026_v39  ;;  %v2912_v27 = vmul.f32 1.442695, %v2466_v7  ;;  %v11047_v39 = vld [vmem:[#allocation78_spill] sm:$0xff]  ;;  %v11048_v9 = vld [vmem:[#allocation51_spill] sm:$0xff] }
 0x4ea   : > { %v6096_v45 = vpop.eup %6095  ;;  %v4125_v62 = vrot.slane %v6094_v38, %v11043_v21  ;;  %6111 = vpow2.f32 %v3020_v50  ;;  %v2914_v31 = vmul.f32 1.442695, %v2467_v28  ;;  %3804 = vmatprep.subr.bf16.mxu0 %v3655_v6  ;;  %3363 = vadd.xlane.f32.xlu1 %v11044_v56  ;;  %v2269_v53 = vpop.xlane.xlu1 %2268  ;;  %v11050_v28 = vld [vmem:[#allocation105_spill] sm:$0xff]  ;;  %v9219_v6 = vadd.f32 %v6086_v32, %v9185_v23 }
 0x4eb   : > { %v6098_v15 = vpop.eup %6097  ;;  %v4121_v40 = vsel %vm4017_vm4, %v4120_v26, %v9151_v20  ;;  %6113 = vpow2.f32 %v3022_v47  ;;  %3805 = vmatpush1.bf16.xpose.msra.mxu0 %v3654_v57  ;;  %v3684_v29 = vpack.c.bf16 %v6096_v45, %v9185_v23  ;;  %v2526_v49 = vsub.f32 %v11046_v12, %v2269_v53  ;;  %v11049_v47 = vld [vmem:[#allocation222_spill] sm:$0xff]  ;;  %v11052_v12 = vld [vmem:[#allocation55_spill] sm:$0xff] }
 0x4ec   : > { %3339 = vadd.xlane.f32.xlu0 %v11045_v8  ;;  %v9211_v42 = vsel %vm4024_vm5, %v4125_v62, %v4121_v40  ;;  %6115 = vpow2.f32 %v2912_v27  ;;  %v2527_v60 = vsub.f32 %v11047_v39, %v2269_v53  ;;  %v2176_v50 = vpop.xlane.xlu0 %2175  ;;  %v3685_v10 = vpack.c.bf16 %v6098_v15, %v6086_v32  ;;  %v11053_v32 = vld [vmem:[#allocation57_spill] sm:$0xff] }
 0x4ed   : > { %6117 = vpow2.f32 %v2914_v31  ;;  %v2464_v20 = vsub.f32 %v11048_v9, %v2176_v50  ;;  %v2465_v57 = vsub.f32 %v11049_v47, %v2176_v50  ;;  %v6100_v51 = vpop.eup %6099  ;;  %v3032_v7 = vmul.f32 1.442695, %v2526_v49  ;;  %v11051_v31 = vld [vmem:[#allocation126_spill] sm:$0xff]  ;;  %v11054_v47 = vld [vmem:[#allocation63_spill] sm:$0xff] }
 0x4ee   : > { %6119 = vrcp.f32 %v3109_v33  ;;  %v3034_v59 = vmul.f32 1.442695, %v2527_v60  ;;  %3366 = vadd.xlane.f32.xlu1 %v11050_v28  ;;  %v6102_v38 = vpop.eup %6101  ;;  %3845 = vmatprep.subr.bf16.mxu1 %v3685_v10  ;;  %v3064_v27 = vpop.xlane.xlu1 %3063  ;;  %v9222_v56 = vadd.f32 %v6098_v15, %v6096_v45 }
 0x4ef   : > { %v2908_v26 = vmul.f32 1.442695, %v2464_v20  ;;  %v2910_v62 = vmul.f32 1.442695, %v2465_v57  ;;  %v6104_v40 = vpop.eup %6103  ;;  %6121 = vpow2.f32 %v3032_v7  ;;  %3846 = vmatpush1.bf16.xpose.msra.mxu1 %v3684_v29  ;;  %v9224_v53 = vadd.f32 %v6102_v38, %v6100_v51 }
 0x4f0   : > { %3252 = vadd.xlane.f32.xlu0 %v11051_v31  ;;  %v2266_v33 = vpop.xlane.xlu0 %2265  ;;  %v6106_v8 = vpop.eup %6105  ;;  %6123 = vpow2.f32 %v3034_v59  ;;  %v3656_v39 = vpack.c.bf16 %v6100_v51, %v6104_v40  ;;  %v11055_v51 = vld [vmem:[#allocation65_spill] sm:$0xff]  ;;  %v11057_v31 = vld [vmem:[#allocation116_spill] sm:$0xff] }
 0x4f1   : > { %v2524_v23 = vsub.f32 %v11052_v12, %v2266_v33  ;;  %v2525_v49 = vsub.f32 %v11053_v32, %v2266_v33  ;;  %6125 = vpow2.f32 %v2908_v26  ;;  %v3657_v50 = vpack.c.bf16 %v6102_v38, %v6106_v8  ;;  %v11056_v38 = vld [vmem:[#allocation93_spill] sm:$0xff] }
 0x4f2   : > { %v6108_v60 = vpop.eup %6107  ;;  %3369 = vadd.xlane.f32.xlu1 %v8966_v37  ;;  %v9229_v45 = vadd.f32 %v6106_v8, %v6104_v40  ;;  %6127 = vpow2.f32 %v2910_v62  ;;  %v2275_v9 = vpop.xlane.xlu1 %2274  ;;  %v4033_v26 = vadd.s32 4294967248, %v11056_v38  ;;  %v11058_v40 = vld [vmem:[#allocation117_spill] sm:$0xff] }
 0x4f3   : > { %v6110_v15 = vpop.eup %6109  ;;  %v3028_v29 = vmul.f32 1.442695, %v2524_v23  ;;  %v3030_v10 = vmul.f32 1.442695, %v2525_v49  ;;  %6129 = vrcp.f32 %v3064_v27  ;;  %3806 = vmatprep.subr.bf16.mxu0 %v3657_v50  ;;  %v2530_v57 = vsub.f32 %v11054_v47, %v2275_v9  ;;  %v11059_v49 = vld [vmem:[#allocation32_spill] sm:$0xff]  ;;  %v11062_v47 = vld [vmem:[#allocation77_spill] sm:$0xff] }
 0x4f4   : > { %3342 = vadd.xlane.f32.xlu0 %v8973_v16  ;;  %v6112_v20 = vpop.eup %6111  ;;  %v2531_v7 = vsub.f32 %v11055_v51, %v2275_v9  ;;  %v3112_v59 = vpop.xlane.xlu0 %3111  ;;  %v9234_v28 = vadd.f32 %v6110_v15, %v6108_v60  ;;  %3807 = vmatpush1.bf16.xpose.msra.mxu0 %v3656_v39  ;;  %v9239_v33 = vadd.f32 %v11058_v40, %v11057_v31  ;;  %v11066_v31 = vld [vmem:[#allocation67_spill] sm:$0xff] }
 0x4f5   : > { %v6114_v37 = vpop.eup %6113  ;;  %6131 = vpow2.f32 %v3028_v29  ;;  %v3686_v62 = vpack.c.bf16 %v6108_v60, %v6112_v20  ;;  %v3040_v27 = vmul.f32 1.442695, %v2530_v57 }
 0x4f6   : > { %v9241_v16 = vpop.eup %6115  ;;  %6133 = vpow2.f32 %v3030_v10  ;;  %v3042_v8 = vmul.f32 1.442695, %v2531_v7  ;;  %3285 = vadd.xlane.f32.xlu1 %v8992_v41  ;;  %v3687_v12 = vpack.c.bf16 %v6110_v15, %v6114_v37  ;;  %v3067_v32 = vpop.xlane.xlu1 %3066  ;;  %v9245_v50 = vadd.f32 %v6114_v37, %v6112_v20  ;;  %v11060_v10 = vld [vmem:[#allocation80_spill] sm:$0xff]  ;;  %v11061_v41 = vld [vmem:[#allocation75_spill] sm:$0xff]  ;;  %v11063_v7 = vld [vmem:[#allocation81_spill] sm:$0xff] }
 0x4f7   : > { %v6118_v23 = vpop.eup %6117  ;;  %6135 = vrcp.f32 %v3112_v59  ;;  %v9254_v59 = vsub.s32 %v4033_v26, %v11063_v7  ;;  %v11064_v20 = vld [vmem:[#allocation197_spill] sm:$0xff]  ;;  %v11065_v37 = vld [vmem:[#allocation70_spill] sm:$0xff] }
 0x4f8   : > { %3255 = vadd.xlane.f32.xlu0 %v11059_v49  ;;  %v6120_v39 = vpop.eup %6119  ;;  %6137 = vpow2.f32 %v3040_v27  ;;  %3847 = vmatprep.subr.bf16.mxu1 %v3687_v12  ;;  %v9248_v29 = vadd.f32 %v6118_v23, %v9241_v16  ;;  %v9259_v40 = vadd.f32 %v11066_v31, %v11065_v37 }
 0x4f9   : > { %v2272_v60 = vpop.xlane.xlu0 %2271  ;;  %v4130_v9 = vrot.slane %v6120_v39, %v11060_v10  ;;  %6139 = vpow2.f32 %v3042_v8  ;;  %3848 = vmatpush1.bf16.xpose.msra.mxu1 %v3686_v62  ;;  %v6122_v51 = vpop.eup %6121  ;;  %v11068_v39 = vld [vmem:[#allocation138_spill] sm:$0xff] }
 0x4fa   : > { %v2528_v15 = vsub.f32 %v11061_v41, %v2272_v60  ;;  %v2529_v57 = vsub.f32 %v11062_v47, %v2272_v60  ;;  %6141 = vrcp.f32 %v3067_v32  ;;  %3291 = vadd.xlane.f32.xlu1 %v11064_v20  ;;  %11067 = vst [vmem:[#allocation140_spill] sm:$0xff] %v9259_v40  ;;  %v6124_v27 = vpop.eup %6123  ;;  %v3070_v49 = vpop.xlane.xlu1 %3069  ;;  %v11069_v60 = vld [vmem:[#allocation128_spill] sm:$0xff]  ;;  %v11070_v41 = vld [vmem:[#allocation185_spill] sm:$0xff]  ;;  %v4040_v47 = vadd.s32 4294967240, %v11056_v38 }
 0x4fb   : > { %v4131_v8 = vsel %vm4031_vm6, %v4130_v9, %v9211_v42  ;;  %v9266_v26 = vadd.f32 %v11070_v41, %v11069_v60  ;;  %v6126_v32 = vpop.eup %6125  ;;  %6143 = vrcp.f32 %v3070_v49  ;;  %v9269_v37 = vadd.f32 %v6124_v27, %v6122_v51  ;;  %v11073_v9 = vld [vmem:[#allocation120_spill] sm:$0xff]  ;;  %v5585_v49 = vld [vmem:[%s9978_s5 + $0x40] sm:$0xff]  }
 0x4fc   : > { %v3036_v62 = vmul.f32 1.442695, %v2528_v15  ;;  %v3038_v12 = vmul.f32 1.442695, %v2529_v57  ;;  %3345 = vadd.xlane.f32.xlu0 %v11068_v39  ;;  %v6128_v31 = vpop.eup %6127  ;;  %v3658_v42 = vpack.c.bf16 %v9241_v16, %v6126_v32  ;;  %v11074_v15 = vld [vmem:[#allocation107_spill] sm:$0xff]  ;;  %v4047_v16 = vadd.s32 4294967232, %v11056_v38 }
 0x4fd   : > { %11071 = vst [vmem:[#allocation111_spill] sm:$0xff] %v9266_v26  ;;  %v3115_v20 = vpop.xlane.xlu0 %3114  ;;  %11072 = vst [vmem:[#allocation114_spill] sm:$0xff] %v9269_v37  ;;  %v3347_v57 = vadd.f32 %v11074_v15, %v11073_v9  ;;  %v6130_v10 = vpop.eup %6129  ;;  %v3659_v39 = vpack.c.bf16 %v6118_v23, %v6128_v31  ;;  %v9275_v60 = vadd.f32 %v6128_v31, %v6126_v32  ;;  %v11075_v31 = vld [vmem:[#allocation130_spill] sm:$0xff] }
 0x4fe   : > { %6145 = vpow2.f32 %v3036_v62  ;;  %3381 = vadd.xlane.f32.xlu1 %v9040_v1  ;;  %v4037_v62 = vrot.slane %v6130_v10, %v9254_v59  ;;  %v3190_v26 = vpop.xlane.xlu1 %3189 }
 0x4ff   : > { %6147 = vpow2.f32 %v3038_v12  ;;  %v6132_v41 = vpop.eup %6131  ;;  %v9283_v12 = vsub.s32 %v4040_v47, %v11063_v7  ;;  %3808 = vmatprep.subr.bf16.mxu0 %v3659_v39 }
 0x500   : > { %6149 = vrcp.f32 %v3115_v20  ;;  %3348 = vadd.xlane.f32.xlu0 %v3347_v57  ;;  %v6134_v9 = vpop.eup %6133  ;;  %v3688_v23 = vpack.c.bf16 %v6122_v51, %v6132_v41  ;;  %v4039_v15 = vsel %vm4038_vm7, %v4037_v62, %v11075_v31  ;;  %3809 = vmatpush1.bf16.xpose.msra.mxu0 %v3658_v42  ;;  %v9292_v57 = vsub.s32 %v4047_v16, %v11063_v7  ;;  %v11077_v31 = vld [vmem:[#allocation9_spill] sm:$0xff] }
 0x501   : > { %v3118_v1 = vpop.xlane.xlu0 %3117  ;;  %v6136_v32 = vpop.eup %6135  ;;  %v3689_v37 = vpack.c.bf16 %v6124_v27, %v6134_v9  ;;  %v9287_v10 = vadd.f32 %v6134_v9, %v6132_v41  ;;  %5464 = vmatprep.subr.bf16.mxu0 %v5585_v49  ;;  %v5586_v49 = vld [vmem:[%s9978_s5] sm:$0xff]   ;;  %v4054_v9 = vadd.s32 4294967224, %v11056_v38 }
 0x502   : > { %6151 = vrcp.f32 %v3118_v1  ;;  %v6138_v40 = vpop.eup %6137  ;;  %v4135_v20 = vrot.slane %v6136_v32, %v9254_v59  ;;  %3294 = vadd.xlane.f32.xlu1 %v9049_v35  ;;  %v11076_v32 = vld [vmem:[#allocation11_spill] sm:$0xff] }
 0x503   : > { %v6140_v47 = vpop.eup %6139  ;;  %3849 = vmatprep.subr.bf16.mxu1 %v3689_v37  ;;  %v3073_v51 = vpop.xlane.xlu1 %3072 }
 0x504   : > { %3351 = vadd.xlane.f32.xlu0 %v9057_v55  ;;  %v6142_v39 = vpop.eup %6141  ;;  %v4136_v42 = vsel %vm4038_vm7, %v4135_v20, %v4131_v8  ;;  %6153 = vrcp.f32 %v3073_v51  ;;  %3850 = vmatpush1.bf16.xpose.msra.mxu1 %v3688_v23  ;;  %v9296_v41 = vadd.f32 %v6140_v47, %v6138_v40  ;;  %v5587_v55 = vld [vmem:[%s9978_s5 + $0x48] sm:$0xff]   ;;  %v11078_v20 = vpack.c.bf16 %v11076_v32, %v11077_v31 }
 0x505   : > { %v3121_v27 = vpop.xlane.xlu0 %3120  ;;  %v4044_v35 = vrot.slane %v6142_v39, %v9283_v12  ;;  %v6144_v37 = vpop.eup %6143 }
 0x506   : > { %6155 = vrcp.f32 %v3121_v27  ;;  %3297 = vadd.xlane.f32.xlu1 %v9062_v61  ;;  %v4051_v16 = vrot.slane %v6144_v37, %v9292_v57 }
 0x507   : > { %v4046_v62 = vsel %vm4045_vm8, %v4044_v35, %v4039_v15  ;;  %6157 = vrcp.f32 %v3190_v26  ;;  %v3142_v1 = vpop.xlane.xlu1 %3141  ;;  %3811 = vmatmul.mubr.bf16.vlgmr.msra.gmra.mrb[136].mxu0 %v11078_v20  ;;  %v5588_v26 = vld [vmem:[%s9978_s5 + $0x8] sm:$0xff]  }
 0x508   : > { %v6146_v8 = vpop.eup %6145  ;;  %3267 = vadd.xlane.f32.xlu0 %v9066_v11  ;;  %v4053_v15 = vsel %vm4052_vm9, %v4051_v16, %v4046_v62  ;;  %5465 = vmatpush3.bf16.msra.mxu0 %v5586_v49 }
 0x509   : > { %v6148_v23 = vpop.eup %6147  ;;  %v3193_v61 = vpop.xlane.xlu0 %3192  ;;  %v3690_v51 = vpack.c.bf16 %v6138_v40, %v6146_v8  ;;  %5466 = vmatprep.subr.bf16.mxu0 %v5587_v55  ;;  %v5589_v40 = vld [vmem:[%s9978_s5 + $0x50] sm:$0xff]  }
 0x50a   : > { %v6150_v39 = vpop.eup %6149  ;;  %6159 = vrcp.f32 %v3193_v61  ;;  %v3691_v27 = vpack.c.bf16 %v6140_v47, %v6148_v23  ;;  %v9314_v35 = vadd.f32 %v6148_v23, %v6146_v8  ;;  %3387 = vadd.xlane.f32.xlu1 %v9070_v3  ;;  %v9325_v47 = vsub.s32 %v4054_v9, %v11063_v7  ;;  %v5590_v55 = vld [vmem:[%s9978_s5 + $0x10] sm:$0xff]  }
 0x50b   : > { %v4140_v11 = vrot.slane %v6150_v39, %v9283_v12  ;;  %6161 = vrcp.f32 %v3142_v1  ;;  %v3196_v49 = vpop.xlane.xlu1 %3195 }
 0x50c   : > { %v6152_v37 = vpop.eup %6151  ;;  %3851 = vmatprep.subr.bf16.mxu1 %v3691_v27  ;;  %3270 = vadd.xlane.f32.xlu0 %v9075_v2  ;;  %6163 = vrcp.f32 %v3196_v49  ;;  %v5591_v2 = vld [vmem:[%s9978_s5 + $0x58] sm:$0xff]   ;;  %v11079_v27 = vld [vmem:[#allocation15_spill] sm:$0xff]  ;;  %v4061_v49 = vadd.s32 4294967216, %v11056_v38 }
 0x50d   : > { %v4141_v8 = vsel %vm4045_vm8, %v4140_v11, %v4136_v42  ;;  %v4145_v62 = vrot.slane %v6152_v37, %v9292_v57  ;;  %3852 = vmatpush1.bf16.xpose.msra.mxu1 %v3690_v51  ;;  %v3145_v3 = vpop.xlane.xlu0 %3144  ;;  %5467 = vmatpush3.bf16.msra.mxu0 %v5588_v26  ;;  %v11080_v26 = vld [vmem:[#allocation13_spill] sm:$0xff] }
 0x50e   : > { %6165 = vrcp.f32 %v3145_v3  ;;  %v6154_v16 = vpop.eup %6153  ;;  %3300 = vadd.xlane.f32.xlu1 %v9087_v17  ;;  %5468 = vmatprep.subr.bf16.mxu0 %v5589_v40  ;;  %v5592_v17 = vld [vmem:[%s9978_s5 + $0x18] sm:$0xff]   ;;  %v11081_v11 = vpack.c.bf16 %v11079_v27, %v11080_v26 }
 0x50f   : > { %v4146_v9 = vsel %vm4052_vm9, %v4145_v62, %v4141_v8  ;;  %v4058_v1 = vrot.slane %v6154_v16, %v9325_v47  ;;  %v3199_v23 = vpop.xlane.xlu1 %3198  ;;  %v5594_v62 = vld [vmem:[%s9978_s5 + $0x20] sm:$0xff]  }
 0x510   : > { %v6156_v42 = vpop.eup %6155  ;;  %3273 = vadd.xlane.f32.xlu0 %v9091_v14  ;;  %6167 = vrcp.f32 %v3199_v23  ;;  %v5593_v14 = vld [vmem:[%s9978_s5 + $0x60] sm:$0xff]   ;;  %v9374_v23 = vsub.s32 %v4061_v49, %v11063_v7 }
 0x511   : > { %v4150_v32 = vrot.slane %v6156_v42, %v9325_v47  ;;  %v3076_v31 = vpop.xlane.xlu0 %3075  ;;  %v6158_v20 = vpop.eup %6157  ;;  %v4060_v61 = vsel %vm4059_vm10, %v4058_v1, %v4053_v15  ;;  %5469 = vmatpush3.bf16.msra.mxu0 %v5590_v55 }
 0x512   : > { %6169 = vrcp.f32 %v3076_v31  ;;  %3390 = vadd.xlane.f32.xlu1 %v9107_v18  ;;  %5470 = vmatprep.subr.bf16.mxu0 %v5591_v2  ;;  %v4264_v40 = vrot.slane %v6158_v20, %v11027_v0  ;;  %v5596_v31 = vld [vmem:[%s9978_s5 + $0x28] sm:$0xff]  }
 0x513   : > { %v9346_v51 = vsel %vm4059_vm10, %v4150_v32, %v4146_v9  ;;  %v3202_v15 = vpop.xlane.xlu1 %3201 }
 0x514   : > { %v6160_v39 = vpop.eup %6159  ;;  %3854 = vmatmul.mubr.bf16.vlgmr.msra.gmra.mrb[180].mxu1 %v11081_v11  ;;  %3276 = vadd.xlane.f32.xlu0 %v9120_v48  ;;  %6171 = vrcp.f32 %v3202_v15  ;;  %v5595_v48 = vld [vmem:[%s9978_s5 + $0x68] sm:$0xff]  }
 0x515   : > { %v4268_v37 = vrot.slane %v6160_v39, %v11028_v24  ;;  %v3148_v18 = vpop.xlane.xlu0 %3147  ;;  %v6162_v8 = vpop.eup %6161  ;;  %5471 = vmatpush3.bf16.msra.mxu0 %v5592_v17 }
 0x516   : > { %6173 = vrcp.f32 %v3148_v18  ;;  %v6164_v3 = vpop.eup %6163  ;;  %3303 = vadd.xlane.f32.xlu1 %v9124_v58  ;;  %5472 = vmatprep.subr.bf16.mxu0 %v5593_v14  ;;  %v4185_v42 = vrot.slane %v6162_v8, %v11027_v0 }
 0x517   : > { %v4269_v55 = vsel %vm4003_vm2, %v4268_v37, %v4264_v40  ;;  %v4273_v9 = vrot.slane %v6164_v3, %v11029_v52  ;;  %v9368_v2 = vpop.xlane.xlu1 %3204 }
 0x518   : > { %v6166_v16 = vpop.eup %6165  ;;  %3279 = vadd.xlane.f32.xlu0 %v9128_v34  ;;  %v5597_v34 = vld [vmem:[%s9978_s5 + $0x70] sm:$0xff]  }
 0x519   : > { %v4189_v1 = vrot.slane %v6166_v16, %v11028_v24  ;;  %v3079_v58 = vpop.xlane.xlu0 %3078  ;;  %v4274_v32 = vsel %vm4010_vm3, %v4273_v9, %v4269_v55  ;;  %5473 = vmatpush3.bf16.msra.mxu0 %v5594_v62 }
 0x51a   : > { %v6168_v20 = vpop.eup %6167  ;;  %3393 = vadd.xlane.f32.xlu1 %v9136_v30  ;;  %5474 = vmatprep.subr.bf16.mxu0 %v5595_v48  ;;  %v5598_v30 = vld [vmem:[%s9978_s5 + $0x30] sm:$0xff]   ;;  %6175 = vrcp.f32 %v3079_v58  ;;  %v4089_v58 = vadd.s32 4294967184, %v11056_v38 }
 0x51b   : > { %v4190_v17 = vsel %vm4003_vm2, %v4189_v1, %v4185_v42  ;;  %v4278_v39 = vrot.slane %v6168_v20, %v11042_v43  ;;  %v9386_v27 = vpop.xlane.xlu1 %3207 }
 0x51c   : > { %v6170_v14 = vpop.eup %6169  ;;  %3282 = vadd.xlane.f32.xlu0 %v9140_v13  ;;  %v5599_v13 = vld [vmem:[%s9978_s5 + $0x78] sm:$0xff]  }
 0x51d   : > { %v4065_v26 = vrot.slane %v6170_v14, %v9374_v23  ;;  %v3151_v11 = vpop.xlane.xlu0 %3150  ;;  %v4279_v15 = vsel %vm4017_vm4, %v4278_v39, %v4274_v32  ;;  %5475 = vmatpush3.bf16.msra.mxu0 %v5596_v31 }
 0x51e   : > { %v6172_v40 = vpop.eup %6171  ;;  %3306 = vadd.xlane.f32.xlu1 %v9148_v36  ;;  %5476 = vmatprep.subr.bf16.mxu0 %v5597_v34  ;;  %v4096_v34 = vadd.s32 4294967176, %v11056_v38 }
 0x51f   : > { %v9396_v37 = vsel %vm4066_vm11, %v4065_v26, %v4060_v61  ;;  %v4283_v18 = vrot.slane %v6172_v40, %v11043_v21  ;;  %v9402_v8 = vpop.xlane.xlu1 %3210  ;;  %v5600_v61 = vld [vmem:[%s9978_s5 + $0x38] sm:$0xff]  }
 0x520   : > { %v6174_v49 = vpop.eup %6173  ;;  %3288 = vadd.xlane.f32.xlu0 %v9158_v4 }
 0x521   : > { %v4194_v62 = vrot.slane %v6174_v49, %v11029_v52  ;;  %v3082_v3 = vpop.xlane.xlu0 %3081  ;;  %v9407_v36 = vsel %vm4024_vm5, %v4283_v18, %v4279_v15  ;;  %5477 = vmatpush3.bf16.msra.mxu0 %v5598_v30  ;;  %v9468_v30 = vsub.s32 %v4096_v34, %v11063_v7  ;;  %v11085_v34 = vld [vmem:[#allocation111_spill] sm:$0xff] }
 0x522   : > { %3396 = vadd.xlane.f32.xlu1 %v9160_v63  ;;  %5478 = vmatprep.subr.bf16.mxu0 %v5599_v13  ;;  %6177 = vrcp.f32 %v3082_v3 }
 0x523   : > { %v9413_v55 = vsel %vm4010_vm3, %v4194_v62, %v4190_v17  ;;  %v9416_v48 = vpop.xlane.xlu1 %3162 }
 0x524   : > { %3384 = vadd.xlane.f32.xlu0 %v9171_v22  ;;  %v6176_v32 = vpop.eup %6175 }
 0x525   : > { %v3154_v4 = vpop.xlane.xlu0 %3153  ;;  %5479 = vmatpush3.bf16.msra.mxu0 %v5600_v61 }
 0x526   : > { %3399 = vadd.xlane.f32.xlu1 %v9175_v25 }
 0x527   : > { %v9420_v16 = vpop.xlane.xlu1 %3165 }
 0x528   : > { %3309 = vadd.xlane.f32.xlu0 %v9179_v19 }
 0x529   : > { %v3085_v9 = vpop.xlane.xlu0 %3084 }
 0x52a   : > { %3402 = vadd.xlane.f32.xlu1 %v9191_v54  ;;  %6179 = vrcp.f32 %v3085_v9  ;;  %v4075_v54 = vadd.s32 4294967200, %v11056_v38 }
 0x52b   : > { %v9424_v42 = vpop.xlane.xlu1 %3168 }
 0x52c   : > { %3312 = vadd.xlane.f32.xlu0 %v9183_v46  ;;  %v4068_v46 = vadd.s32 4294967208, %v11056_v38 }
 0x52d   : > { %v3157_v63 = vpop.xlane.xlu0 %3156 }
 0x52e   : > { %3318 = vadd.xlane.f32.xlu1 %v9202_v44 }
 0x52f   : > { %v9428_v1 = vpop.xlane.xlu1 %3126 }
 0x530   : > { %3315 = vadd.xlane.f32.xlu0 %v9195_v5  ;;  %v4082_v5 = vadd.s32 4294967192, %v11056_v38 }
 0x531   : > { %v3088_v22 = vpop.xlane.xlu0 %3087 }
 0x532   : > { %3321 = vadd.xlane.f32.xlu1 %v9229_v45  ;;  %6181 = vrcp.f32 %v3088_v22  ;;  %v9454_v20 = vsub.s32 %v4082_v5, %v11063_v7 }
 0x533   : > { %v9432_v25 = vpop.xlane.xlu1 %3129 }
 0x534   : > { %3405 = vadd.xlane.f32.xlu0 %v9219_v6  ;;  %v9444_v6 = vsub.s32 %v4068_v46, %v11063_v7 }
 0x535   : > { %v3160_v19 = vpop.xlane.xlu0 %3159 }
 0x536   : > { %3324 = vadd.xlane.f32.xlu1 %v9224_v53  ;;  %v9448_v53 = vsub.s32 %v4075_v54, %v11063_v7  ;;  %v4072_v26 = vrot.slane %v6176_v32, %v9444_v6 }
 0x537   : > { %v9438_v44 = vpop.xlane.xlu1 %3132 }
 0x538   : > { %3408 = vadd.xlane.f32.xlu0 %v9222_v56  ;;  %v6178_v56 = vpop.eup %6177 }
 0x539   : > { %v3091_v45 = vpop.xlane.xlu0 %3090  ;;  %v6180_v14 = vpop.eup %6179 }
 0x53a   : > { %6183 = vrcp.f32 %v3091_v45  ;;  %3327 = vadd.xlane.f32.xlu1 %v9275_v60  ;;  %v9458_v60 = vsub.s32 %v4089_v58, %v11063_v7  ;;  %v4086_v38 = vrot.slane %v6180_v14, %v9454_v20  ;;  %v11084_v58 = vld [vmem:[#allocation80_spill] sm:$0xff] }
 0x53b   : > { %6185 = vrcp.f32 %v3151_v11  ;;  %v9450_v31 = vpop.xlane.xlu1 %3222  ;;  %v4079_v11 = vrot.slane %v6178_v56, %v9448_v53 }
 0x53c   : > { %3411 = vadd.xlane.f32.xlu0 %v9245_v50  ;;  %6187 = vrcp.f32 %v3154_v4  ;;  %v6182_v39 = vpop.eup %6181 }
 0x53d   : > { %v3172_v17 = vpop.xlane.xlu0 %3171  ;;  %6189 = vrcp.f32 %v3157_v63  ;;  %v4093_v40 = vrot.slane %v6182_v39, %v9458_v60  ;;  %v11083_v63 = vld [vmem:[#allocation114_spill] sm:$0xff] }
 0x53e   : > { %6191 = vrcp.f32 %v3160_v19  ;;  %3330 = vadd.xlane.f32.xlu1 %v9248_v29  ;;  %v4074_v29 = vsel %vm4073_vm12, %v4072_v26, %v9396_v37 }
 0x53f   : > { %v9462_v50 = vpop.xlane.xlu1 %3135  ;;  %6193 = vrcp.f32 %v9416_v48  ;;  %v4081_v49 = vsel %vm4080_vm13, %v4079_v11, %v4074_v29  ;;  %v11082_v48 = vld [vmem:[#allocation140_spill] sm:$0xff] }
 0x540   : > { %3414 = vadd.xlane.f32.xlu0 %v9234_v28  ;;  %v4088_v18 = vsel %vm4087_vm14, %v4086_v38, %v4081_v49  ;;  %6195 = vrcp.f32 %v9420_v16 }
 0x541   : > { %v3175_v15 = vpop.xlane.xlu0 %3174  ;;  %v4095_v3 = vsel %vm4094_vm15, %v4093_v40, %v4088_v18  ;;  %6197 = vrcp.f32 %v9424_v42 }
 0x542   : > { %3372 = vadd.xlane.f32.xlu1 %v9239_v33  ;;  %6199 = vrcp.f32 %v3172_v17 }
 0x543   : > { %v9475_v13 = vpop.xlane.xlu1 %3225  ;;  %6201 = vrcp.f32 %v3175_v15 }
 0x544   : > { %v6184_v28 = vpop.eup %6183  ;;  %3417 = vadd.xlane.f32.xlu0 %v9287_v10 }
 0x545   : > { %v3178_v7 = vpop.xlane.xlu0 %3177  ;;  %v4100_v62 = vrot.slane %v6184_v28, %v9468_v30  ;;  %v6186_v33 = vpop.eup %6185 }
 0x546   : > { %v6188_v37 = vpop.eup %6187  ;;  %3375 = vadd.xlane.f32.xlu1 %v11082_v48  ;;  %v4199_v19 = vrot.slane %v6186_v33, %v11042_v43  ;;  %6203 = vrcp.f32 %v3178_v7 }
 0x547   : > { %v4102_v61 = vsel %vm4101_vm0, %v4100_v62, %v4095_v3  ;;  %v6190_v4 = vpop.eup %6189  ;;  %v3726_v10 = vpop.f32.mrb[132].mxu0  ;;  %v4204_v5 = vrot.slane %v6188_v37, %v11043_v21 }
 0x548   : > { %v3139_v9 = vpop.xlane.xlu1 %3138  ;;  %3420 = vadd.xlane.f32.xlu0 %v11083_v63  ;;  %v6192_v22 = vpop.eup %6191  ;;  %v9488_v46 = vmul.f32 %v4102_v61, %v3726_v10  ;;  %v4209_v32 = vrot.slane %v6190_v4, %v11084_v58  ;;  %v4200_v39 = vsel %vm4017_vm4, %v4199_v19, %v9413_v55 }
 0x549   : > { %v9490_v54 = vpop.f32.mrb[133].mxu0  ;;  %v3181_v16 = vpop.xlane.xlu0 %3180  ;;  %v4214_v17 = vrot.slane %v6192_v22, %v9254_v59  ;;  %v4205_v38 = vsel %vm4024_vm5, %v4204_v5, %v4200_v39  ;;  %v4936_v39 = vld [vmem:[%s9979_s6 + $0x8] sm:$0xff] }
 0x54a   : > { %v3730_v45 = vpop.f32.mrb[134].mxu0  ;;  %3378 = vadd.xlane.f32.xlu1 %v11085_v34  ;;  %6205 = vrcp.f32 %v3181_v16  ;;  %v6194_v15 = vpop.eup %6193  ;;  %v4210_v40 = vsel %vm4031_vm6, %v4209_v32, %v4205_v38 }
 0x54b   : > { %v9494_v42 = vmul.f32 %v4102_v61, %v3730_v45  ;;  %v9496_v56 = vpop.f32.mrb[135].mxu0  ;;  %v4215_v29 = vsel %vm4038_vm7, %v4214_v17, %v4210_v40  ;;  %v4219_v55 = vrot.slane %v6194_v15, %v9283_v12 }
 0x54c   : > { %v9500_v14 = vpop.xlane.xlu1 %3228  ;;  %3423 = vadd.xlane.f32.xlu0 %v9314_v35  ;;  %v6196_v35 = vpop.eup %6195 }
 0x54d   : > { %v4734_v26 = vpack.c.bf16 %v9494_v42, %v9488_v46  ;;  %v3184_v11 = vpop.xlane.xlu0 %3183  ;;  %v6198_v62 = vpop.eup %6197  ;;  %v4220_v37 = vsel %vm4045_vm8, %v4219_v55, %v4215_v29  ;;  %v4224_v4 = vrot.slane %v6196_v35, %v9292_v57 }
 0x54e   : > { %6207 = vrcp.f32 %v3184_v11  ;;  %v6200_v3 = vpop.eup %6199  ;;  %v4229_v16 = vrot.slane %v6198_v62, %v9325_v47 }
 0x54f   : > { %v6202_v48 = vpop.eup %6201  ;;  %v4225_v19 = vsel %vm4052_vm9, %v4224_v4, %v4220_v37 }
 0x550   : > { %v3769_v28 = vpop.f32.mrb[176].mxu1  ;;  %v9510_v49 = vpop.xlane.xlu1 %3237  ;;  %3426 = vadd.xlane.f32.xlu0 %v9296_v41  ;;  %v4239_v5 = vrot.slane %v6202_v48, %v9444_v6 }
 0x551   : > { %v9514_v7 = vpop.f32.mrb[177].mxu1  ;;  %v3187_v18 = vpop.xlane.xlu0 %3186 }
 0x552   : > { %v3773_v33 = vpop.f32.mrb[178].mxu1  ;;  %6209 = vrcp.f32 %v3187_v18  ;;  %v6204_v10 = vpop.eup %6203 }
 0x553   : > { %6211 = vrcp.f32 %v9368_v2  ;;  %v9518_v61 = vpop.f32.mrb[179].mxu1  ;;  %v4234_v2 = vrot.slane %v6200_v3, %v9374_v23 }
 0x554   : > { %6213 = vrcp.f32 %v9428_v1  ;;  %v9522_v41 = vpop.xlane.xlu1 %3231  ;;  %v6206_v22 = vpop.eup %6205  ;;  %v4244_v1 = vrot.slane %v6204_v10, %v9448_v53 }
 0x555   : > { %6215 = vrcp.f32 %v9432_v25  ;;  %v3124_v63 = vpop.xlane.xlu0 %3123  ;;  %v4230_v25 = vsel %vm4059_vm10, %v4229_v16, %v4225_v19  ;;  %v4249_v34 = vrot.slane %v6206_v22, %v9454_v20 }
 0x556   : > { %6217 = vrcp.f32 %v3124_v63 }
 0x557   : > { %6219 = vrcp.f32 %v9438_v44  ;;  %v4235_v44 = vsel %vm4066_vm11, %v4234_v2, %v4230_v25 }
 0x558   : > { %v6208_v45 = vpop.eup %6207  ;;  %6221 = vrcp.f32 %v9462_v50  ;;  %v3235_v32 = vpop.xlane.xlu1 %3234  ;;  %v4240_v50 = vsel %vm4073_vm12, %v4239_v5, %v4235_v44  ;;  %v4935_v5 = vld [vmem:[%s9979_s6] sm:$0xff]  ;;  %v4938_v44 = vld [vmem:[%s9979_s6 + $0x18] sm:$0xff] }
 0x559   : > { %6223 = vrcp.f32 %v3139_v9  ;;  %v3214_v17 = vpop.xlane.xlu0 %3213  ;;  %v4254_v11 = vrot.slane %v6208_v45, %v9458_v60  ;;  %v4245_v38 = vsel %vm4080_vm13, %v4244_v1, %v4240_v50 }
 0x55a   : > { %6225 = vrcp.f32 %v9386_v27  ;;  %v4250_v27 = vsel %vm4087_vm14, %v4249_v34, %v4245_v38 }
 0x55b   : > { %6227 = vrcp.f32 %v9402_v8  ;;  %4950 = vperm.xlu1 %5571, %v4936_v39   ;;  %v4991_v8 = vld [vmem:[%s9980_s7] sm:$0xff]  ;;  %v4255_v18 = vsel %vm4094_vm15, %v4254_v11, %v4250_v27 }
 0x55c   : > { %v6210_v15 = vpop.eup %6209  ;;  %6229 = vrcp.f32 %v3214_v17  ;;  %v9542_v9 = vpop.xlane.xlu1 %3333 }
 0x55d   : > { %v9545_v40 = vpop.eup %6211  ;;  %v3217_v29 = vpop.xlane.xlu0 %3216  ;;  %v4259_v35 = vrot.slane %v6210_v15, %v9468_v30 }
 0x55e   : > { %v6214_v55 = vpop.eup %6213  ;;  %6231 = vrcp.f32 %v3217_v29 }
 0x55f   : > { %v6216_v62 = vpop.eup %6215  ;;  %6233 = vrcp.f32 %v9450_v31  ;;  %v4260_v3 = vsel %vm4101_vm0, %v4259_v35, %v4255_v18  ;;  %5001 = vperm.xlu1 %5571, %v4991_v8   ;;  %v4992_v31 = vld [vmem:[%s9980_s7 + $0x8] sm:$0xff] }
 0x560   : > { %v6218_v37 = vpop.eup %6217  ;;  %6235 = vrcp.f32 %v9475_v13  ;;  %v9556_v48 = vpop.xlane.xlu1 %3258  ;;  %v9558_v4 = vmul.f32 %v4260_v3, %v3769_v28  ;;  %v9560_v10 = vmul.f32 %v4260_v3, %v3773_v33  ;;  %v4160_v13 = vrot.slane %v6214_v55, %v9444_v6 }
 0x561   : > { %v6220_v63 = vpop.eup %6219  ;;  %6237 = vrcp.f32 %v9500_v14  ;;  %v4155_v22 = vrot.slane %v6218_v37, %v9374_v23  ;;  %v3220_v19 = vpop.xlane.xlu0 %3219  ;;  %v4165_v16 = vrot.slane %v6216_v62, %v9448_v53 }
 0x562   : > { %v6222_v2 = vpop.eup %6221  ;;  %6239 = vrcp.f32 %v3220_v19  ;;  %v4736_v28 = vpack.c.bf16 %v9560_v10, %v9558_v4  ;;  %v4170_v1 = vrot.slane %v6220_v63, %v9454_v20  ;;  %v4994_v63 = vld [vmem:[%s9980_s7 + $0x18] sm:$0xff]  ;;  %v5067_v4 = vld [vmem:[%s9982_s9] sm:$0xff] }
 0x563   : > { %v6224_v33 = vpop.eup %6223  ;;  %6241 = vrcp.f32 %v9510_v49  ;;  %v4156_v14 = vsel %vm4066_vm11, %v4155_v22, %v9346_v51  ;;  %5006 = vperm.xlu1 %5571, %v4992_v31   ;;  %v4175_v49 = vrot.slane %v6222_v2, %v9458_v60 }
 0x564   : > { %v6226_v45 = vpop.eup %6225  ;;  %6243 = vrcp.f32 %v9522_v41  ;;  %v9579_v25 = vpop.xlane.xlu1 %3261  ;;  %v4161_v34 = vsel %vm4073_vm12, %v4160_v13, %v4156_v14  ;;  %v4288_v41 = vrot.slane %v9545_v40, %v11084_v58  ;;  %v4180_v15 = vrot.slane %v6224_v33, %v9468_v30 }
 0x565   : > { %v6228_v17 = vpop.eup %6227  ;;  %6245 = vrcp.f32 %v3235_v32  ;;  %v3241_v39 = vpop.xlane.xlu0 %3240  ;;  %v4166_v51 = vsel %vm4080_vm13, %v4165_v16, %v4161_v34  ;;  %v4293_v38 = vrot.slane %v6226_v45, %v9254_v59  ;;  %v4937_v32 = vld [vmem:[%s9979_s6 + $0x10] sm:$0xff] }
 0x566   : > { %v6230_v11 = vpop.eup %6229  ;;  %6247 = vrcp.f32 %v3241_v39  ;;  %4945 = vperm.xlu0 %5570, %v4935_v5   ;;  %v4171_v50 = vsel %vm4087_vm14, %v4170_v1, %v4166_v51  ;;  %v4298_v35 = vrot.slane %v6228_v17, %v9283_v12  ;;  %v4289_v19 = vsel %vm4031_vm6, %v4288_v41, %v9407_v36 }
 0x567   : > { %v4176_v29 = vsel %vm4094_vm15, %v4175_v49, %v4171_v50  ;;  %4960 = vperm.xlu1 %5571, %v4938_v44   ;;  %v4303_v18 = vrot.slane %v6230_v11, %v9292_v57  ;;  %v4294_v13 = vsel %vm4038_vm7, %v4293_v38, %v4289_v19  ;;  %v4939_v11 = vld [vmem:[%s9979_s6 + $0x20] sm:$0xff] }
 0x568   : > { %v6232_v27 = vpop.eup %6231  ;;  %v9597_v8 = vpop.xlane.xlu1 %3264  ;;  %v4181_v40 = vsel %vm4101_vm0, %v4180_v15, %v4176_v29  ;;  %v4299_v16 = vsel %vm4045_vm8, %v4298_v35, %v4294_v13  ;;  %v4941_v13 = vld [vmem:[%s9979_s6 + $0x30] sm:$0xff] }
 0x569   : > { %v6234_v55 = vpop.eup %6233  ;;  %v3244_v62 = vpop.xlane.xlu0 %3243  ;;  %v4719_v3 = vmul.f32 %v4181_v40, %v9490_v54  ;;  %v4721_v37 = vmul.f32 %v4181_v40, %v9496_v56  ;;  %v4308_v31 = vrot.slane %v6232_v27, %v9325_v47  ;;  %v4993_v54 = vld [vmem:[%s9980_s7 + $0x10] sm:$0xff]  ;;  %v4304_v36 = vsel %vm4052_vm9, %v4303_v18, %v4299_v16  ;;  %v4995_v40 = vld [vmem:[%s9980_s7 + $0x20] sm:$0xff] }
 0x56a   : > { %v6236_v22 = vpop.eup %6235  ;;  %6249 = vrcp.f32 %v3244_v62  ;;  %4955 = vperm.xlu0 %5570, %v4937_v32   ;;  %v4318_v17 = vrot.slane %v6234_v55, %v9444_v6 }
 0x56b   : > { %v6238_v2 = vpop.eup %6237  ;;  %v4735_v33 = vpack.c.bf16 %v4721_v37, %v4719_v3  ;;  %5016 = vperm.xlu1 %5571, %v4994_v63   ;;  %v4309_v49 = vsel %vm4059_vm10, %v4308_v31, %v4304_v36  ;;  %v4323_v51 = vrot.slane %v6236_v22, %v9448_v53 }
 0x56c   : > { %v6240_v56 = vpop.eup %6239  ;;  %v9614_v14 = vpop.xlane.xlu1 %3354  ;;  %v4328_v50 = vrot.slane %v6238_v2, %v9454_v20 }
 0x56d   : > { %v6242_v5 = vpop.eup %6241  ;;  %v4313_v45 = vrot.slane %v6240_v56, %v9374_v23  ;;  %v3247_v1 = vpop.xlane.xlu0 %3246  ;;  %4902 = vmatprep.mubr.bf16.mxu0 %v4735_v33 }
 0x56e   : > { %v6244_v34 = vpop.eup %6243  ;;  %6251 = vrcp.f32 %v3247_v1  ;;  %5011 = vperm.xlu0 %5570, %v4993_v54   ;;  %4903 = vmatmul.mubr.bf16.vlgmr.msra.gmra.mrb[140].mxu0 %v4734_v26  ;;  %v4343_v46 = vrot.slane %v6242_v5, %v11027_v0 }
 0x56f   : > { %v6246_v39 = vpop.eup %6245  ;;  %v4314_v44 = vsel %vm4066_vm11, %v4313_v45, %v4309_v49  ;;  %6253 = vrcp.f32 %v9542_v9  ;;  %v4333_v42 = vrot.slane %v6244_v34, %v9458_v60 }
 0x570   : > { %v6248_v41 = vpop.eup %6247  ;;  %v9630_v15 = vpop.xlane.xlu1 %3357  ;;  %v4319_v38 = vsel %vm4073_vm12, %v4318_v17, %v4314_v44  ;;  %v4338_v35 = vrot.slane %v6246_v39, %v9468_v30 }
 0x571   : > { %v4347_v26 = vrot.slane %v6248_v41, %v11028_v24  ;;  %v3337_v32 = vpop.xlane.xlu0 %3336  ;;  %v4324_v29 = vsel %vm4080_vm13, %v4323_v51, %v4319_v38 }
 0x572   : > { %6255 = vrcp.f32 %v3337_v32  ;;  %4965 = vperm.xlu0 %5570, %v4939_v11   ;;  %v4329_v27 = vsel %vm4087_vm14, %v4328_v50, %v4324_v29  ;;  %v5069_v11 = vld [vmem:[%s9982_s9 + $0x10] sm:$0xff] }
 0x573   : > { %v4348_v9 = vsel %vm4003_vm2, %v4347_v26, %v4343_v46  ;;  %v4334_v55 = vsel %vm4094_vm15, %v4333_v42, %v4329_v27  ;;  %v5071_v26 = vld [vmem:[%s9982_s9 + $0x20] sm:$0xff] }
 0x574   : > { %v6250_v18 = vpop.eup %6249  ;;  %v9644_v62 = vpop.xlane.xlu1 %3360  ;;  %v4339_v3 = vsel %vm4101_vm0, %v4338_v35, %v4334_v55 }
 0x575   : > { %v4352_v37 = vrot.slane %v6250_v18, %v11029_v52  ;;  %v3250_v63 = vpop.xlane.xlu0 %3249  ;;  %v4723_v22 = vmul.f32 %v4339_v3, %v9514_v7  ;;  %v4725_v19 = vmul.f32 %v4339_v3, %v9518_v61  ;;  %v4997_v61 = vld [vmem:[%s9980_s7 + $0x30] sm:$0xff]  ;;  %v4940_v18 = vld [vmem:[%s9979_s6 + $0x28] sm:$0xff] }
 0x576   : > { %6257 = vrcp.f32 %v3250_v63  ;;  %5021 = vperm.xlu0 %5570, %v4995_v40   ;;  %4970 = vperm.xlu1 %5571, %v4940_v18  }
 0x577   : > { %v4353_v31 = vsel %vm4010_vm3, %v4352_v37, %v4348_v9  ;;  %v4737_v2 = vpack.c.bf16 %v4725_v19, %v4723_v22  ;;  %v4996_v22 = vld [vmem:[%s9980_s7 + $0x28] sm:$0xff] }
 0x578   : > { %v6252_v33 = vpop.eup %6251  ;;  %v9654_v54 = vpop.xlane.xlu1 %3363 }
 0x579   : > { %v4357_v56 = vrot.slane %v6252_v33, %v11042_v43  ;;  %v3340_v16 = vpop.xlane.xlu0 %3339  ;;  %4910 = vmatprep.mubr.bf16.mxu0 %v4737_v2  ;;  %v6254_v5 = vpop.eup %6253 }
 0x57a   : > { %6259 = vrcp.f32 %v3340_v16  ;;  %4975 = vperm.xlu0 %5570, %v4941_v13   ;;  %4911 = vmatmul.mubr.bf16.gmra.mrb[144].mxu0 %v4736_v28  ;;  %v4501_v1 = vrot.slane %v6254_v5, %v11027_v0 }
 0x57b   : > { %v4358_v7 = vsel %vm4017_vm4, %v4357_v56, %v4353_v31  ;;  %5026 = vperm.xlu1 %5571, %v4996_v22  }
 0x57c   : > { %v6256_v36 = vpop.eup %6255  ;;  %v9664_v45 = vpop.xlane.xlu1 %3366 }
 0x57d   : > { %v4505_v34 = vrot.slane %v6256_v36, %v11028_v24  ;;  %v3253_v17 = vpop.xlane.xlu0 %3252 }
 0x57e   : > { %6261 = vrcp.f32 %v3253_v17  ;;  %5031 = vperm.xlu0 %5570, %v4997_v61  }
 0x57f   : > { %v4506_v49 = vsel %vm4003_vm2, %v4505_v34, %v4501_v1 }
 0x580   : > { %v6258_v10 = vpop.eup %6257  ;;  %v3370_v28 = vpop.xlane.xlu1 %3369 }
 0x581   : > { %v4362_v39 = vrot.slane %v6258_v10, %v11043_v21  ;;  %v3343_v51 = vpop.xlane.xlu0 %3342 }
 0x582   : > { %6263 = vrcp.f32 %v3343_v51  ;;  %5077 = vperm.xlu0 %5570, %v5067_v4  }
 0x583   : > { %v4363_v44 = vsel %vm4024_vm5, %v4362_v39, %v4358_v7  ;;  %6265 = vrcp.f32 %v9556_v48 }
 0x584   : > { %v6260_v41 = vpop.eup %6259  ;;  %v9678_v50 = vpop.xlane.xlu1 %3285  ;;  %6267 = vrcp.f32 %v9579_v25 }
 0x585   : > { %v4510_v38 = vrot.slane %v6260_v41, %v11029_v52  ;;  %v3256_v46 = vpop.xlane.xlu0 %3255 }
 0x586   : > { %6269 = vrcp.f32 %v3256_v46  ;;  %5087 = vperm.xlu0 %5570, %v5069_v11   ;;  %v5068_v11 = vld [vmem:[%s9982_s9 + $0x8] sm:$0xff] }
 0x587   : > { %6271 = vrcp.f32 %v9597_v8  ;;  %v4511_v42 = vsel %vm4010_vm3, %v4510_v38, %v4506_v49  ;;  %v5073_v8 = vld [vmem:[%s9982_s9 + $0x30] sm:$0xff] }
 0x588   : > { %v6262_v32 = vpop.eup %6261  ;;  %v9687_v29 = vpop.xlane.xlu1 %3291 }
 0x589   : > { %v4367_v48 = vrot.slane %v6262_v32, %v11084_v58  ;;  %v3346_v27 = vpop.xlane.xlu0 %3345 }
 0x58a   : > { %6273 = vrcp.f32 %v3346_v27  ;;  %5097 = vperm.xlu0 %5570, %v5071_v26  }
 0x58b   : > { %v4368_v25 = vsel %vm4031_vm6, %v4367_v48, %v4363_v44 }
 0x58c   : > { %v6264_v35 = vpop.eup %6263  ;;  %v9694_v9 = vpop.xlane.xlu1 %3381 }
 0x58d   : > { %v4515_v40 = vrot.slane %v6264_v35, %v11042_v43  ;;  %v3349_v55 = vpop.xlane.xlu0 %3348  ;;  %v6266_v3 = vpop.eup %6265  ;;  %v5070_v35 = vld [vmem:[%s9982_s9 + $0x18] sm:$0xff] }
 0x58e   : > { %6275 = vrcp.f32 %v3349_v55  ;;  %5107 = vperm.xlu0 %5570, %v5073_v8   ;;  %v6268_v37 = vpop.eup %6267  ;;  %v4377_v56 = vrot.slane %v6266_v3, %v9283_v12 }
 0x58f   : > { %v4516_v63 = vsel %vm4017_vm4, %v4515_v40, %v4511_v42  ;;  %6277 = vrcp.f32 %v9614_v14  ;;  %v4382_v16 = vrot.slane %v6268_v37, %v9292_v57  ;;  %v4942_v14 = vld [vmem:[%s9979_s6 + $0x38] sm:$0xff] }
 0x590   : > { %v6270_v19 = vpop.eup %6269  ;;  %v9705_v31 = vpop.xlane.xlu1 %3294  ;;  %6279 = vrcp.f32 %v9630_v15  ;;  %4980 = vperm.xlu1 %5571, %v4942_v14  }
 0x591   : > { %v6272_v2 = vpop.eup %6271  ;;  %v4372_v13 = vrot.slane %v6270_v19, %v9254_v59  ;;  %v3352_v33 = vpop.xlane.xlu0 %3351 }
 0x592   : > { %6281 = vrcp.f32 %v3352_v33  ;;  %v4387_v15 = vrot.slane %v6272_v2, %v9325_v47 }
 0x593   : > { %6283 = vrcp.f32 %v9644_v62  ;;  %v4373_v5 = vsel %vm4038_vm7, %v4372_v13, %v4368_v25 }
 0x594   : > { %v6274_v7 = vpop.eup %6273  ;;  %6285 = vrcp.f32 %v9654_v54  ;;  %v4378_v61 = vsel %vm4045_vm8, %v4377_v56, %v4373_v5  ;;  %v9719_v36 = vpop.xlane.xlu1 %3297  ;;  %v4998_v54 = vld [vmem:[%s9980_s7 + $0x38] sm:$0xff]  ;;  %v5072_v56 = vld [vmem:[%s9982_s9 + $0x28] sm:$0xff] }
 0x595   : > { %6287 = vrcp.f32 %v9664_v45  ;;  %v4520_v1 = vrot.slane %v6274_v7, %v11043_v21  ;;  %v9723_v62 = vpop.xlane.xlu0 %3267  ;;  %v4383_v34 = vsel %vm4052_vm9, %v4382_v16, %v4378_v61  ;;  %5036 = vperm.xlu1 %5571, %v4998_v54  }
 0x596   : > { %6289 = vrcp.f32 %v3370_v28  ;;  %v9727_v17 = vsel %vm4059_vm10, %v4387_v15, %v4383_v34  ;;  %v5074_v15 = vld [vmem:[%s9982_s9 + $0x38] sm:$0xff] }
 0x597   : > { %v4521_v49 = vsel %vm4024_vm5, %v4520_v1, %v4516_v63 }
 0x598   : > { %v6276_v4 = vpop.eup %6275  ;;  %v3388_v10 = vpop.xlane.xlu1 %3387 }
 0x599   : > { %v4525_v45 = vrot.slane %v6276_v4, %v11084_v58  ;;  %v3271_v39 = vpop.xlane.xlu0 %3270  ;;  %v6278_v51 = vpop.eup %6277  ;;  %5082 = vperm.xlu1 %5571, %v5068_v11  }
 0x59a   : > { %v6280_v44 = vpop.eup %6279  ;;  %v4535_v48 = vrot.slane %v6278_v51, %v9283_v12 }
 0x59b   : > { %v4526_v28 = vsel %vm4031_vm6, %v4525_v45, %v4521_v49  ;;  %v4540_v25 = vrot.slane %v6280_v44, %v9292_v57 }
 0x59c   : > { %v6282_v41 = vpop.eup %6281  ;;  %v3301_v38 = vpop.xlane.xlu1 %3300 }
 0x59d   : > { %v6284_v46 = vpop.eup %6283  ;;  %v4530_v42 = vrot.slane %v6282_v41, %v9254_v59  ;;  %v3274_v26 = vpop.xlane.xlu0 %3273  ;;  %5092 = vperm.xlu1 %5571, %v5070_v35  }
 0x59e   : > { %v6286_v32 = vpop.eup %6285  ;;  %v4545_v55 = vrot.slane %v6284_v46, %v9325_v47 }
 0x59f   : > { %v6288_v27 = vpop.eup %6287  ;;  %v4531_v8 = vsel %vm4038_vm7, %v4530_v42, %v4526_v28  ;;  %v4550_v37 = vrot.slane %v6286_v32, %v9374_v23 }
 0x5a0   : > { %v6290_v40 = vpop.eup %6289  ;;  %v4536_v18 = vsel %vm4045_vm8, %v4535_v48, %v4531_v8  ;;  %v3391_v3 = vpop.xlane.xlu1 %3390  ;;  %v4555_v19 = vrot.slane %v6288_v27, %v9444_v6 }
 0x5a1   : > { %v3277_v63 = vpop.xlane.xlu0 %3276  ;;  %v4541_v22 = vsel %vm4052_vm9, %v4540_v25, %v4536_v18  ;;  %v4560_v13 = vrot.slane %v6290_v40, %v9448_v53  ;;  %5102 = vperm.xlu1 %5571, %v5072_v56  }
 0x5a2   : > { %v4546_v2 = vsel %vm4059_vm10, %v4545_v55, %v4541_v22 }
 0x5a3   : > { %v4551_v33 = vsel %vm4066_vm11, %v4550_v37, %v4546_v2 }
 0x5a4   : > { %v3304_v16 = vpop.xlane.xlu1 %3303  ;;  %v4556_v5 = vsel %vm4073_vm12, %v4555_v19, %v4551_v33 }
 0x5a5   : > { %v3280_v14 = vpop.xlane.xlu0 %3279  ;;  %v9758_v7 = vsel %vm4080_vm13, %v4560_v13, %v4556_v5  ;;  %5112 = vperm.xlu1 %5571, %v5074_v15  }
 0x5a8   : > { %v3394_v61 = vpop.xlane.xlu1 %3393 }
 0x5a9   : > { %v3283_v1 = vpop.xlane.xlu0 %3282 }
 0x5ac   : > { %v3307_v34 = vpop.xlane.xlu1 %3306 }
 0x5ad   : > { %v3289_v49 = vpop.xlane.xlu0 %3288 }
 0x5ae   : > { %6291 = vrcp.f32 %v3289_v49 }
 0x5af   : > { %6293 = vrcp.f32 %v9678_v50 }
 0x5b0   : > { %v3397_v54 = vpop.xlane.xlu1 %3396  ;;  %6295 = vrcp.f32 %v9687_v29 }
 0x5b1   : > { %v3385_v4 = vpop.xlane.xlu0 %3384  ;;  %6297 = vrcp.f32 %v9705_v31 }
 0x5b2   : > { %6299 = vrcp.f32 %v9694_v9 }
 0x5b3   : > { %6301 = vrcp.f32 %v9719_v36 }
 0x5b4   : > { %v9765_v45 = vpop.xlane.xlu1 %3399  ;;  %6303 = vrcp.f32 %v9723_v62 }
 0x5b5   : > { %v3310_v51 = vpop.xlane.xlu0 %3309  ;;  %6305 = vrcp.f32 %v3388_v10 }
 0x5b6   : > { %6307 = vrcp.f32 %v3271_v39 }
 0x5b7   : > { %6309 = vrcp.f32 %v3301_v38 }
 0x5b8   : > { %v6292_v44 = vpop.eup %6291  ;;  %v9770_v28 = vpop.xlane.xlu1 %3402  ;;  %6311 = vrcp.f32 %v3274_v26 }
 0x5b9   : > { %v3313_v11 = vpop.xlane.xlu0 %3312  ;;  %v6294_v50 = vpop.eup %6293  ;;  %v4426_v29 = vrot.slane %v6292_v44, %v11028_v24  ;;  %6313 = vrcp.f32 %v3304_v16 }
 0x5ba   : > { %v6296_v46 = vpop.eup %6295  ;;  %v4422_v31 = vrot.slane %v6294_v50, %v11027_v0  ;;  %6315 = vrcp.f32 %v3385_v4 }
 0x5bb   : > { %v6298_v42 = vpop.eup %6297  ;;  %v4431_v62 = vrot.slane %v6296_v46, %v11029_v52  ;;  %6317 = vrcp.f32 %v3391_v3 }
 0x5bc   : > { %v3319_v41 = vpop.xlane.xlu1 %3318  ;;  %v4427_v36 = vsel %vm4003_vm2, %v4426_v29, %v4422_v31  ;;  %v6300_v10 = vpop.eup %6299  ;;  %6319 = vrcp.f32 %v3277_v63  ;;  %v4436_v26 = vrot.slane %v6298_v42, %v11042_v43 }
 0x5bd   : > { %v3316_v9 = vpop.xlane.xlu0 %3315  ;;  %v6302_v48 = vpop.eup %6301  ;;  %6321 = vrcp.f32 %v3307_v34  ;;  %v4432_v38 = vsel %vm4010_vm3, %v4431_v62, %v4427_v36 }
 0x5be   : > { %v9778_v27 = vpop.eup %6303  ;;  %6323 = vrcp.f32 %v3310_v51  ;;  %v4437_v40 = vsel %vm4017_vm4, %v4436_v26, %v4432_v38  ;;  %v4441_v3 = vrot.slane %v6302_v48, %v11043_v21 }
 0x5bf   : > { %v6306_v25 = vpop.eup %6305  ;;  %6325 = vrcp.f32 %v3313_v11  ;;  %v4392_v11 = vrot.slane %v9778_v27, %v9374_v23 }
 0x5c0   : > { %v3322_v32 = vpop.xlane.xlu1 %3321  ;;  %v9781_v35 = vpop.eup %6307  ;;  %6327 = vrcp.f32 %v3316_v9  ;;  %v4442_v22 = vsel %vm4024_vm5, %v4441_v3, %v4437_v40  ;;  %v4589_v29 = vrot.slane %v6306_v25, %v11029_v52 }
 0x5c1   : > { %v3406_v39 = vpop.xlane.xlu0 %3405  ;;  %v6310_v18 = vpop.eup %6309  ;;  %6329 = vrcp.f32 %v3280_v14  ;;  %v4397_v9 = vrot.slane %v9781_v35, %v9444_v6 }
 0x5c2   : > { %v9785_v37 = vpop.eup %6311  ;;  %6331 = vrcp.f32 %v3394_v61  ;;  %v4446_v13 = vrot.slane %v6310_v18, %v11084_v58 }
 0x5c3   : > { %v6314_v63 = vpop.eup %6313  ;;  %6333 = vrcp.f32 %v3283_v1  ;;  %v4402_v38 = vrot.slane %v9785_v37, %v9448_v53 }
 0x5c4   : > { %v3325_v8 = vpop.xlane.xlu1 %3324  ;;  %v6316_v2 = vpop.eup %6315  ;;  %6335 = vrcp.f32 %v3397_v54  ;;  %v4447_v5 = vsel %vm4031_vm6, %v4446_v13, %v4442_v22  ;;  %v4451_v15 = vrot.slane %v6314_v63, %v9254_v59  ;;  %v4580_v54 = vrot.slane %v6300_v10, %v11027_v0 }
 0x5c5   : > { %v3409_v55 = vpop.xlane.xlu0 %3408  ;;  %v6318_v56 = vpop.eup %6317  ;;  %6337 = vrcp.f32 %v3319_v41  ;;  %v4584_v61 = vrot.slane %v6316_v2, %v11028_v24 }
 0x5c6   : > { %v9789_v16 = vpop.eup %6319  ;;  %6339 = vrcp.f32 %v3322_v32  ;;  %v4452_v51 = vsel %vm4038_vm7, %v4451_v15, %v4447_v5  ;;  %v4594_v27 = vrot.slane %v6318_v56, %v11042_v43 }
 0x5c7   : > { %v6322_v14 = vpop.eup %6321  ;;  %6341 = vrcp.f32 %v3325_v8  ;;  %v4585_v41 = vsel %vm4003_vm2, %v4584_v61, %v4580_v54  ;;  %v4407_v18 = vrot.slane %v9789_v16, %v9454_v20 }
 0x5c8   : > { %v3328_v19 = vpop.xlane.xlu1 %3327  ;;  %v6324_v34 = vpop.eup %6323  ;;  %v4456_v50 = vrot.slane %v6322_v14, %v9283_v12  ;;  %v4590_v10 = vsel %vm4010_vm3, %v4589_v29, %v4585_v41 }
 0x5c9   : > { %v3412_v33 = vpop.xlane.xlu0 %3411  ;;  %6343 = vrcp.f32 %v3328_v19  ;;  %v6326_v4 = vpop.eup %6325  ;;  %v4461_v46 = vrot.slane %v6324_v34, %v9292_v57 }
 0x5ca   : > { %v6328_v44 = vpop.eup %6327  ;;  %v4457_v36 = vsel %vm4045_vm8, %v4456_v50, %v4452_v51  ;;  %v4466_v42 = vrot.slane %v6326_v4, %v9325_v47 }
 0x5cb   : > { %v6330_v24 = vpop.eup %6329  ;;  %v4471_v52 = vrot.slane %v6328_v44, %v9374_v23 }
 0x5cc   : > { %v3331_v1 = vpop.xlane.xlu1 %3330  ;;  %v6332_v31 = vpop.eup %6331  ;;  %v4412_v22 = vrot.slane %v6330_v24, %v9458_v60 }
 0x5cd   : > { %v3415_v49 = vpop.xlane.xlu0 %3414  ;;  %6345 = vrcp.f32 %v3331_v1  ;;  %v6334_v62 = vpop.eup %6333  ;;  %v4599_v37 = vrot.slane %v6332_v31, %v11043_v21 }
 0x5ce   : > { %6347 = vrcp.f32 %v9765_v45  ;;  %v6336_v32 = vpop.eup %6335  ;;  %v4417_v56 = vrot.slane %v6334_v62, %v9468_v30 }
 0x5cf   : > { %6349 = vrcp.f32 %v9770_v28  ;;  %v4393_v28 = vsel %vm4066_vm11, %v4392_v11, %v9727_v17  ;;  %v6338_v48 = vpop.eup %6337  ;;  %v4595_v17 = vsel %vm4017_vm4, %v4594_v27, %v4590_v10  ;;  %v4604_v1 = vrot.slane %v6336_v32, %v11084_v58 }
 0x5d0   : > { %v3373_v0 = vpop.xlane.xlu1 %3372  ;;  %6351 = vrcp.f32 %v3406_v39  ;;  %v4462_v39 = vsel %vm4052_vm9, %v4461_v46, %v4457_v36  ;;  %v6340_v25 = vpop.eup %6339  ;;  %v4398_v35 = vsel %vm4073_vm12, %v4397_v9, %v4393_v28  ;;  %v4476_v63 = vrot.slane %v6338_v48, %v9444_v6 }
 0x5d1   : > { %v3418_v45 = vpop.xlane.xlu0 %3417  ;;  %6353 = vrcp.f32 %v3409_v55  ;;  %v4467_v40 = vsel %vm4059_vm10, %v4466_v42, %v4462_v39  ;;  %v6342_v55 = vpop.eup %6341  ;;  %v4481_v2 = vrot.slane %v6340_v25, %v9448_v53  ;;  %v4600_v5 = vsel %vm4024_vm5, %v4599_v37, %v4595_v17 }
 0x5d2   : > { %6355 = vrcp.f32 %v3373_v0  ;;  %v4472_v43 = vsel %vm4066_vm11, %v4471_v52, %v4467_v40  ;;  %v4486_v15 = vrot.slane %v6342_v55, %v9454_v20  ;;  %v4605_v11 = vsel %vm4031_vm6, %v4604_v1, %v4600_v5 }
 0x5d3   : > { %6357 = vrcp.f32 %v3412_v33  ;;  %v6344_v3 = vpop.eup %6343  ;;  %v4403_v33 = vsel %vm4080_vm13, %v4402_v38, %v4398_v35  ;;  %v4477_v21 = vsel %vm4073_vm12, %v4476_v63, %v4472_v43 }
 0x5d4   : > { %v3376_v26 = vpop.xlane.xlu1 %3375  ;;  %v4408_v34 = vsel %vm4087_vm14, %v4407_v18, %v4403_v33  ;;  %v4482_v29 = vsel %vm4080_vm13, %v4481_v2, %v4477_v21 }
 0x5d5   : > { %6359 = vrcp.f32 %v3376_v26  ;;  %v3421_v8 = vpop.xlane.xlu0 %3420  ;;  %v4413_v54 = vsel %vm4094_vm15, %v4412_v22, %v4408_v34  ;;  %v4487_v31 = vsel %vm4087_vm14, %v4486_v15, %v4482_v29 }
 0x5d6   : > { %6361 = vrcp.f32 %v3415_v49  ;;  %v4491_v49 = vrot.slane %v6344_v3, %v9458_v60  ;;  %v4418_v24 = vsel %vm4101_vm0, %v4417_v56, %v4413_v54 }
 0x5d7   : > { %6363 = vrcp.f32 %v3418_v45  ;;  %v6346_v19 = vpop.eup %6345 }
 0x5d8   : > { %6365 = vrcp.f32 %v3421_v8  ;;  %v3379_v13 = vpop.xlane.xlu1 %3378  ;;  %v6348_v16 = vpop.eup %6347  ;;  %v4496_v51 = vrot.slane %v6346_v19, %v9468_v30  ;;  %v4492_v42 = vsel %vm4094_vm15, %v4491_v49, %v4487_v31 }
 0x5d9   : > { %6367 = vrcp.f32 %v3379_v13  ;;  %v3424_v14 = vpop.xlane.xlu0 %3423  ;;  %v6350_v61 = vpop.eup %6349  ;;  %v4609_v58 = vrot.slane %v6348_v16, %v9254_v59 }
 0x5da   : > { %6369 = vrcp.f32 %v3424_v14  ;;  %v6352_v4 = vpop.eup %6351  ;;  %v3812_v50 = vpop.f32.mrb[136].mxu0  ;;  %v4614_v32 = vrot.slane %v6350_v61, %v9283_v12  ;;  %v4497_v10 = vsel %vm4101_vm0, %v4496_v51, %v4492_v42 }
 0x5db   : > { %v6354_v44 = vpop.eup %6353  ;;  %v4726_v46 = vmul.f32 %v4418_v24, %v3812_v50  ;;  %v3814_v0 = vpop.f32.mrb[137].mxu0  ;;  %v4610_v52 = vsel %vm4038_vm7, %v4609_v58, %v4605_v11  ;;  %v4619_v38 = vrot.slane %v6352_v4, %v9292_v57 }
 0x5dc   : > { %v6356_v41 = vpop.eup %6355  ;;  %v3816_v45 = vpop.f32.mrb[138].mxu0  ;;  %v4727_v27 = vmul.f32 %v4497_v10, %v3814_v0  ;;  %v4624_v8 = vrot.slane %v6354_v44, %v9325_v47  ;;  %v4615_v43 = vsel %vm4045_vm8, %v4614_v32, %v4610_v52 }
 0x5dd   : > { %v3427_v9 = vpop.xlane.xlu0 %3426  ;;  %v6358_v36 = vpop.eup %6357  ;;  %v4728_v28 = vmul.f32 %v4418_v24, %v3816_v45  ;;  %v4565_v26 = vrot.slane %v6356_v41, %v9454_v20  ;;  %v4620_v37 = vsel %vm4052_vm9, %v4619_v38, %v4615_v43 }
 0x5de   : > { %6371 = vrcp.f32 %v3427_v9  ;;  %v3818_v48 = vpop.f32.mrb[139].mxu0  ;;  %v4629_v12 = vrot.slane %v6358_v36, %v9374_v23  ;;  %v4625_v19 = vsel %vm4059_vm10, %v4624_v8, %v4620_v37  ;;  %v4951_v44 = vpop.permute.xlu1 %4950 }
 0x5df   : > { %v6360_v62 = vpop.eup %6359  ;;  %v4729_v39 = vmul.f32 %v4497_v10, %v3818_v48  ;;  %v4738_v35 = vpack.c.bf16 %v4728_v28, %v4726_v46  ;;  %v4566_v47 = vsel %vm4087_vm14, %v4565_v26, %v9758_v7 }
 0x5e0   : > { %v6362_v59 = vpop.eup %6361  ;;  %v4570_v40 = vrot.slane %v6360_v62, %v9458_v60  ;;  %v4630_v13 = vsel %vm4066_vm11, %v4629_v12, %v4625_v19 }
 0x5e1   : > { %v6364_v25 = vpop.eup %6363  ;;  %v4739_v17 = vpack.c.bf16 %v4729_v39, %v4727_v27  ;;  %v4634_v3 = vrot.slane %v6362_v59, %v9444_v6 }
 0x5e2   : > { %v6366_v55 = vpop.eup %6365  ;;  %v4639_v63 = vrot.slane %v6364_v25, %v9448_v53  ;;  %v4571_v23 = vsel %vm4094_vm15, %v4570_v40, %v4566_v47  ;;  %v5002_v11 = vpop.permute.xlu1 %5001 }
 0x5e3   : > { %v6368_v18 = vpop.eup %6367  ;;  %4918 = vmatprep.mubr.bf16.mxu0 %v4739_v17  ;;  %v4644_v2 = vrot.slane %v6366_v55, %v9454_v20  ;;  %v4635_v56 = vsel %vm4073_vm12, %v4634_v3, %v4630_v13  ;;  %v5601_v55 = vld [vmem:[%s9981_s8] sm:$0xff]  }
 0x5e4   : > { %v6370_v57 = vpop.eup %6369  ;;  %v4575_v22 = vrot.slane %v6368_v18, %v9468_v30  ;;  %4919 = vmatmul.mubr.bf16.gmra.mrb[148].mxu0 %v4738_v35  ;;  %v4640_v14 = vsel %vm4080_vm13, %v4639_v63, %v4635_v56 }
 0x5e5   : > { %v4649_v33 = vrot.slane %v6370_v57, %v9458_v60  ;;  %v4645_v21 = vsel %vm4087_vm14, %v4644_v2, %v4640_v14 }
 0x5e6   : > { %v4576_v6 = vsel %vm4101_vm0, %v4575_v22, %v4571_v23  ;;  %v5007_v31 = vpop.permute.xlu1 %5006 }
 0x5e7   : > { %v3855_v53 = vpop.f32.mrb[180].mxu1  ;;  %v4650_v20 = vsel %vm4094_vm15, %v4649_v33, %v4645_v21 }
 0x5e8   : > { %v6372_v16 = vpop.eup %6371  ;;  %v4730_v7 = vmul.f32 %v4576_v6, %v3855_v53  ;;  %v3857_v5 = vpop.f32.mrb[181].mxu1 }
 0x5e9   : > { %v4654_v15 = vrot.slane %v6372_v16, %v9468_v30  ;;  %v3859_v61 = vpop.f32.mrb[182].mxu1  ;;  %v4946_v30 = vpop.permute.xlu0 %4945 }
 0x5ea   : > { %v4732_v1 = vmul.f32 %v4576_v6, %v3859_v61  ;;  %v3861_v34 = vpop.f32.mrb[183].mxu1  ;;  %v4961_v32 = vpop.permute.xlu1 %4960 }
 0x5eb   : > { %v4655_v49 = vsel %vm4101_vm0, %v4654_v15, %v4650_v20 }
 0x5ec   : > { %v4731_v60 = vmul.f32 %v4655_v49, %v3857_v5  ;;  %v4740_v4 = vpack.c.bf16 %v4732_v1, %v4730_v7  ;;  %v4733_v54 = vmul.f32 %v4655_v49, %v3861_v34 }
 0x5ed   : > { %v4956_v52 = vpop.permute.xlu0 %4955 }
 0x5ee   : > { %v4741_v51 = vpack.c.bf16 %v4733_v54, %v4731_v60  ;;  %v5017_v8 = vpop.permute.xlu1 %5016 }
 0x5f0   : > { %4926 = vmatprep.mubr.bf16.mxu0 %v4741_v51 }
 0x5f1   : > { %4927 = vmatmul.mubr.bf16.gmra.mrb[152].mxu0 %v4740_v4  ;;  %v5012_v25 = vpop.permute.xlu0 %5011 }
 0x5f2   : > { %5520 = vmatprep.mubr.msk.bf16.mxu0 %vm5135_vm1, %v5601_v55 }
 0x5f5   : > { %v4966_v3 = vpop.permute.xlu0 %4965  ;;  %v4971_v37 = vpop.permute.xlu1 %4970 }
 0x5f9   : > { %v5022_v6 = vpop.permute.xlu0 %5021 }
 0x5fa   : > { %v5027_v53 = vpop.permute.xlu1 %5026 }
 0x5fd   : > { %v4976_v5 = vpop.permute.xlu0 %4975 }
 0x601   : > { %v5032_v4 = vpop.permute.xlu0 %5031 }
 0x60f   : > { %v4981_v15 = vpop.permute.xlu1 %4980 }
 0x641   : > { %v5480_v50 = vpop.f32.mrb[140].mxu0 }
 0x642   : > { %v5481_v24 = vpop.f32.mrb[141].mxu0 }
 0x643   : > { %v5482_v29 = vadd.f32 %v5481_v24, %v5480_v50  ;;  %v5483_v41 = vpop.f32.mrb[142].mxu0 }
 0x644   : > { %v5484_v58 = vpop.f32.mrb[143].mxu0 }
 0x645   : > { %v5485_v46 = vadd.f32 %v5484_v58, %v5483_v41  ;;  %v4983_v0 = vmul.f32 %v5482_v29, %v4946_v30  ;;  %v5602_v41 = vld [vmem:[%s9981_s8 + $0x8] sm:$0xff]   ;;  %v5603_v30 = vld [vmem:[%s9981_s8 + $0x10] sm:$0xff]   ;;  %v5604_v58 = vld [vmem:[%s9981_s8 + $0x18] sm:$0xff]  }
 0x647   : > { %v5039_v9 = vadd.f32 %v5002_v11, %v4983_v0  ;;  %v4984_v36 = vmul.f32 %v5485_v46, %v4951_v44  ;;  %v5037_v44 = vpop.permute.xlu1 %5036  ;;  %v5078_v46 = vpop.permute.xlu0 %5077 }
 0x649   : > { %v5040_v42 = vadd.f32 %v5007_v31, %v4984_v36  ;;  %v5047_v45 = vmax.f32 %v5039_v9, 0.0 }
 0x64b   : > { %v5048_v62 = vmax.f32 %v5040_v42, 0.0  ;;  %v5083_v0 = vpop.permute.xlu1 %5082  ;;  %v5088_v31 = vpop.permute.xlu0 %5087  ;;  %v5215_v42 = vld [vmem:[%s9890_s14 + $0x10] sm:$0xff] }
 0x64d   : > { %v5063_v10 = vpack.c.bf16 %v5048_v62, %v5047_v45  ;;  %v5486_v28 = vpop.f32.mrb[144].mxu0 }
 0x64e   : > { %v5487_v48 = vpop.f32.mrb[145].mxu0 }
 0x64f   : > { %v5488_v59 = vadd.f32 %v5487_v48, %v5486_v28  ;;  %v5489_v38 = vpop.f32.mrb[146].mxu0  ;;  %5512 = vmatprep.subr.bf16.mxu0 %v5063_v10  ;;  %v5093_v9 = vpop.permute.xlu1 %5092  ;;  %v5216_v48 = vld [vmem:[%s9890_s14 + $0x18] sm:$0xff] }
 0x650   : > { %v5490_v27 = vpop.f32.mrb[147].mxu0  ;;  %5513 = vmatpush3.bf16.msra.mxu0 %v5063_v10 }
 0x651   : > { %v4985_v39 = vmul.f32 %v5488_v59, %v4956_v52  ;;  %v5491_v26 = vadd.f32 %v5490_v27, %v5489_v38  ;;  %v5213_v52 = vld [vmem:[%s9890_s14] sm:$0xff] }
 0x653   : > { %v5041_v35 = vadd.f32 %v5012_v25, %v4985_v39  ;;  %v4986_v40 = vmul.f32 %v5491_v26, %v4961_v32  ;;  %v5098_v32 = vpop.permute.xlu0 %5097  ;;  %v5214_v39 = vld [vmem:[%s9890_s14 + $0x8] sm:$0xff]  ;;  %v5103_v26 = vpop.permute.xlu1 %5102 }
 0x655   : > { %v5042_v12 = vadd.f32 %v5017_v8, %v4986_v40  ;;  %v5049_v17 = vmax.f32 %v5041_v35, 0.0 }
 0x657   : > { %v5050_v18 = vmax.f32 %v5042_v12, 0.0 }
 0x659   : > { %v5064_v43 = vpack.c.bf16 %v5050_v18, %v5049_v17  ;;  %v5108_v18 = vpop.permute.xlu0 %5107 }
 0x65b   : > { %5514 = vmatprep.subr.bf16.mxu0 %v5064_v43 }
 0x65c   : > { %5515 = vmatpush3.bf16.msra.mxu0 %v5064_v43 }
 0x6b7   : > { %v5492_v57 = vpop.f32.mrb[148].mxu0 }
 0x6b8   : > { %v5493_v63 = vpop.f32.mrb[149].mxu0 }
 0x6b9   : > { %v5494_v47 = vadd.f32 %v5493_v63, %v5492_v57  ;;  %v5495_v22 = vpop.f32.mrb[150].mxu0  ;;  %v5219_v57 = vld [vmem:[%s9890_s14 + $0x30] sm:$0xff] }
 0x6ba   : > { %v5496_v23 = vpop.f32.mrb[151].mxu0 }
 0x6bb   : > { %v4987_v19 = vmul.f32 %v5494_v47, %v4966_v3  ;;  %v5497_v2 = vadd.f32 %v5496_v23, %v5495_v22  ;;  %v5217_v47 = vld [vmem:[%s9890_s14 + $0x20] sm:$0xff]  ;;  %v5113_v22 = vpop.permute.xlu1 %5112 }
 0x6bd   : > { %v5043_v13 = vadd.f32 %v5022_v6, %v4987_v19  ;;  %v4988_v33 = vmul.f32 %v5497_v2, %v4971_v37  ;;  %v5220_v2 = vld [vmem:[%s9890_s14 + $0x38] sm:$0xff] }
 0x6bf   : > { %v5044_v56 = vadd.f32 %v5027_v53, %v4988_v33  ;;  %v5051_v16 = vmax.f32 %v5043_v13, 0.0  ;;  %v5218_v53 = vld [vmem:[%s9890_s14 + $0x28] sm:$0xff]  ;;  %s6438_s14 = smov [#allocation2]  }
 0x6c0   : > { %s6377_s22 = sshll.u32 %s6438_s14, 4  ;;  %s6378_s22 = int_to_ptr.vmem [resolvable:$false] %s6377_s22 }
 0x6c1   : > { %v5052_v7 = vmax.f32 %v5044_v56, 0.0  ;;  %s6379_s15 = scalar_lea.vmem %s6378_s22, 2048  ;;  %p6380_p0 = scmp.lt.s32.totalorder %s9922_s24, %s6378_s22 }
 0x6c2   : > { %p6381_p1 = scmp.lt.s32.totalorder %s6379_s15, %s6373_s13 }
 0x6c3   : > { %v5065_v21 = vpack.c.bf16 %v5052_v7, %v5051_v16 }
 0x6c4   : > { %v5498_v14 = vpop.f32.mrb[152].mxu0  ;;  %p6382_p2 = por %p6381_p1, %p6380_p0 }
 0x6c5   : > { %v5499_v61 = vpop.f32.mrb[153].mxu0  ;;  %5516 = vmatprep.subr.bf16.mxu0 %v5065_v21 }
 0x6c6   : > { %v5500_v20 = vadd.f32 %v5499_v61, %v5498_v14  ;;  %v5501_v1 = vpop.f32.mrb[154].mxu0  ;;  %5517 = vmatpush3.bf16.msra.mxu0 %v5065_v21  ;;  %p6383_p3 = pnand %p6382_p2, %p6376_p13 }
 0x6c7   : > { %v5502_v34 = vpop.f32.mrb[155].mxu0 }
 0x6c8   : > { %v4989_v49 = vmul.f32 %v5500_v20, %v4976_v5  ;;  %v5503_v60 = vadd.f32 %v5502_v34, %v5501_v1 }
 0x6ca   : > { %v5045_v54 = vadd.f32 %v5032_v4, %v4989_v49  ;;  %v4990_v51 = vmul.f32 %v5503_v60, %v4981_v15 }
 0x6cc   : > { %v5046_v11 = vadd.f32 %v5037_v44, %v4990_v51  ;;  %v5053_v50 = vmax.f32 %v5045_v54, 0.0 }
 0x6ce   : > { %v5054_v24 = vmax.f32 %v5046_v11, 0.0 }
 0x6d0   : > { %v5066_v29 = vpack.c.bf16 %v5054_v24, %v5053_v50 }
 0x6d2   : > { %5518 = vmatprep.subr.bf16.mxu0 %v5066_v29 }
 0x6d3   : > { %5519 = vmatpush3.bf16.msra.mxu0 %v5066_v29 }
 0x6d6   : > { %5521 = vmatmul.mubr.msk.bf16.vlgmr.msra.gmra.mrb[156].mxu0 %vm5135_vm1, %v5602_v41 }
 0x6d7   : > { %5524 = vmatprep.mubr.msk.bf16.mxu0 %vm5135_vm1, %v5603_v30 }
 0x6de   : > { %5525 = vmatmul.mubr.msk.bf16.gmra.mrb[160].mxu0 %vm5135_vm1, %v5604_v58 }
 0x7a9   : > { %v5522_v36 = vpop.f32.mrb[156].mxu0 }
 0x7aa   : > { %v5191_v45 = vadd.f32 %v5522_v36, %v5088_v31  ;;  %v5182_v62 = vpop.f32.mrb[157].mxu0 }
 0x7ab   : > { %v5183_v10 = vadd.f32 %v5182_v62, %v5078_v46  ;;  %v5523_v28 = vpop.f32.mrb[158].mxu0 }
 0x7ac   : > { %v5223_v59 = vadd.f32 %v5215_v42, %v5191_v45  ;;  %v5194_v38 = vadd.f32 %v5523_v28, %v5093_v9  ;;  %v5185_v27 = vpop.f32.mrb[159].mxu0 }
 0x7ad   : > { %v5221_v25 = vadd.f32 %v5213_v52, %v5183_v10  ;;  %v5186_v8 = vadd.f32 %v5185_v27, %v5083_v0 }
 0x7ae   : > { %v5231_v35 = vmax.f32 %v5223_v59, 0.0  ;;  %v5224_v40 = vadd.f32 %v5216_v48, %v5194_v38 }
 0x7af   : > { %v5229_v55 = vmax.f32 %v5221_v25, 0.0  ;;  %v5222_v12 = vadd.f32 %v5214_v39, %v5186_v8 }
 0x7b0   : > { %5239 = vst.msk [vmem:[%s9899_s12 + $0x10] sm:$0xff] %vm5135_vm1, %v5231_v35  ;;  %v5232_v17 = vmax.f32 %v5224_v40, 0.0 }
 0x7b1   : > { %5237 = vst.msk [vmem:[%s9899_s12] sm:$0xff] %vm5135_vm1, %v5229_v55  ;;  %v5230_v43 = vmax.f32 %v5222_v12, 0.0  ;;  %v5526_v3 = vpop.f32.mrb[160].mxu0 }
 0x7b2   : > { %5240 = vst.msk [vmem:[%s9899_s12 + $0x18] sm:$0xff] %vm5135_vm1, %v5232_v17  ;;  %v5207_v37 = vadd.f32 %v5526_v3, %v5108_v18  ;;  %v5198_v63 = vpop.f32.mrb[161].mxu0 }
 0x7b3   : > { %5238 = vst.msk [vmem:[%s9899_s12 + $0x8] sm:$0xff] %vm5135_vm1, %v5230_v43  ;;  %v5199_v23 = vadd.f32 %v5198_v63, %v5098_v32  ;;  %v5527_v19 = vpop.f32.mrb[162].mxu0 }
 0x7b4   : > { %v5227_v6 = vadd.f32 %v5219_v57, %v5207_v37  ;;  %v5210_v13 = vadd.f32 %v5527_v19, %v5113_v22  ;;  %v5201_v33 = vpop.f32.mrb[163].mxu0 }
 0x7b5   : > { %v5225_v56 = vadd.f32 %v5217_v47, %v5199_v23  ;;  %v5202_v16 = vadd.f32 %v5201_v33, %v5103_v26 }
 0x7b6   : > { %v5235_v7 = vmax.f32 %v5227_v6, 0.0  ;;  %v5228_v5 = vadd.f32 %v5220_v2, %v5210_v13 }
 0x7b7   : > { %v5233_v14 = vmax.f32 %v5225_v56, 0.0  ;;  %v5226_v21 = vadd.f32 %v5218_v53, %v5202_v16 }
 0x7b8   : > { %5243 = vst.msk [vmem:[%s9899_s12 + $0x30] sm:$0xff] %vm5135_vm1, %v5235_v7  ;;  %v5236_v15 = vmax.f32 %v5228_v5, 0.0 }
 0x7b9   : > { %5241 = vst.msk [vmem:[%s9899_s12 + $0x20] sm:$0xff] %vm5135_vm1, %v5233_v14  ;;  %v5234_v61 = vmax.f32 %v5226_v21, 0.0 }
 0x7ba   : > { %5244 = vst.msk [vmem:[%s9899_s12 + $0x38] sm:$0xff] %vm5135_vm1, %v5236_v15 }
 0x7bb   : > { %5242 = vst.msk [vmem:[%s9899_s12 + $0x28] sm:$0xff] %vm5135_vm1, %v5234_v61 }
 0x7bc   : > { %6386 = shalt.err (!%p6383_p3)
}
 0x7bd   : > { %s6387_s16 = scalar_lea.hbm %s9920_s30, 1024  ;;  %s6391_s29 = scalar_lea.hbm %s9984_s11, 2048 }
 0x7be   : > { %p6388_p4 = scmp.ne.s32.totalorder %s9920_s30, %s6387_s16  ;;  %p6392_p9 = scmp.lt.u32.totalorder %s9920_s30, %s9984_s11 }
 0x7bf   : > { %p6393_p10 = scmp.lt.u32.totalorder %s6391_s29, %s6387_s16  ;;  %p6395_p12 = scmp.lt.u32.totalorder %s6387_s16, %s9920_s30 }
 0x7c0   : > { %p6389_p7 = pnand %p6388_p4, %p6539_p5 }
 0x7c1   : > { %p6394_p11 = por %p6393_p10, %p6392_p9 }
 0x7c2   : > { %p6390_p8 = pneg %p6389_p7 }
 0x7c3   : > { %p6396_p13 = por %p6395_p12, %p6394_p11 }
 0x7c5   : > { %p6397_p0 = pnand %p6396_p13, %p6390_p8 }
 0x7c7   : > { %6400 = shalt.err (!%p6397_p0)
}
 0x7c8   : > { %s6439_s13 = smov 128   ;;  %s6440_s15 = smov 8  }
 0x7c9   : > { %5528 = dma.vmem_to_hbm [thread:$0]  (%p6539_p5), %s9922_s24, 1024, %s9920_s30, %s9932_s21, %s6439_s13, %s6439_s13, %s6440_s15  }
 0x7ca PF: > { %p5534_p1 = scmp.ge.s32.totalorder %s6435_s20, 2  ;;  %s5274_s12 = sand.u32 1, %s6423_s17  }
 0x7cb   : > { %s5275_s16 = scalar_lea.sflag [#allocation3], %s5274_s12 }
 0x7cc   : > { %p5531_p2 = pnand %p5534_p1, %p6543_p6 }
 0x7ce   : > { %6418 = dma.done.wait (!%p5531_p2), %s5275_s16, 1024  }
 0x7cf   : > { %6420 = vsyncadd (!%p5531_p2), %s5275_s16, 4294966272  ;;  %p21_p3 = scmp.ge.s32.totalorder %s6526_s23, 4   ;;  %s11086_s17 = smov %s6427_s18 }
 0x7d0   : > { %s11087_s18 = smov %s6431_s19  ;;  %s11088_s19 = smov %s6537_s26 }
 0x7d1   : > { %s11089_s20 = smov %s6526_s23  ;;  %23 = sbr.rel (!%p21_p3) target bundleno = 3 (0x3), region = 102 }
 0x7d8   :  { %5280 = vsyncpa [#allocation3], 1 }
 0x7d9   :  { %5282 = vsyncpa [#allocation3 + $0x1], 1 }

</bundles_post_ra>
